<compile_context>
chip_gen: v6e
topology: v6e:2x2x1
jax: 0.10.0
libtpu: 0.0.40
codegen_flags: <defaults>
</compile_context>

<pallas_src>
import math

import jax
import jax.numpy as jnp
from jax.experimental import pallas as pl
from jax.experimental.pallas import tpu as pltpu

# ---- module hyper-parameters (small, consistent with the PyTorch module) ----
VOCAB = 20          # vocab_size
NUM_CLASSES = 10    # num_classes
NB_FILTERS = 32     # nb_filters
MAX_KERNEL = 24     # max_kernel -> kernel sizes [8, 16]
MAX_LEN = 32        # max_len (== sequence length L)
BATCH = 2
CONV1_OUT = 128
KERNEL_SIZES = list(range(8, MAX_KERNEL, 8))  # [8, 16]
CLS_PAD = 128       # classifier output padded to a full 128-lane slab


# ---------------------------------------------------------------------------
# Fused kernel: one-hot -> conv1 -> BaseFilters -> MLP head, one invocation.
# ---------------------------------------------------------------------------
def fused_forward_kernel(tok_ref, conv1_w_ref, conv1_b_ref,
                         bf8_w_ref, bf8_b_ref, bf16_w_ref, bf16_b_ref,
                         l1_w_ref, l1_b_ref, bn_w_ref, bn_b_ref,
                         l2_w_ref, l2_b_ref, cls_w_ref, cls_b_ref,
                         out_ref):
    B, L, _ = tok_ref.shape
    V = VOCAB

    def mm(x, w_ref):
        # Cast activations to the weight dtype (bf16 for the MLP, f32 for the
        # convs); always accumulate in f32 on the MXU.
        return jnp.dot(x.astype(w_ref.dtype), w_ref[...],
                       preferred_element_type=jnp.float32)

    zrow = jnp.zeros((1, V), jnp.float32)
    feat_rows = []
    for b in range(B):  # B == 2: static unroll, single grid point (no batch grid)
        # One-hot built in-kernel from int tokens (removes the XLA one_hot/pad
        # ops and the lane-sparse one-hot HBM transfer).
        tok_b = tok_ref[b]                                            # (L, 1) i32
        iota = jax.lax.broadcasted_iota(jnp.int32, (L, V), 1)
        oh = (tok_b == iota).astype(jnp.float32)                      # (L, V)
        ohp = jnp.concatenate([zrow, oh, zrow], axis=0)               # (L+2, V)

        # conv1 (k=3, padding='same') as a single im2col matmul.
        cols1 = jnp.concatenate([ohp[t:t + L, :] for t in range(3)], axis=1)
        c1 = mm(cols1, conv1_w_ref) + conv1_b_ref[...]                # (L, 128)

        # BaseFilters: valid conv(K) -> global max-pool -> relu, im2col'd so
        # each filter is ONE deep matmul instead of K tiny shifted matmuls.
        pooled = []
        for w_ref, b_ref in ((bf8_w_ref, bf8_b_ref), (bf16_w_ref, bf16_b_ref)):
            K = w_ref.shape[0] // CONV1_OUT
            Lout = L - K + 1
            cols = jnp.concatenate([c1[t:t + Lout, :] for t in range(K)], axis=1)
            conv = mm(cols, w_ref) + b_ref[...]                       # (Lout, F)
            pooled.append(jnp.maximum(jnp.max(conv, axis=0, keepdims=True), 0.0))
        feat_rows.append(jnp.concatenate(pooled, axis=1))             # (1, 2F)

    feat = jnp.concatenate(feat_rows, axis=0)                         # (B, 64)

    # TODO(synk): nn.Dropout(p=0.5) is identity in eval mode; no train-mode RNG.
    # MLP head (bf16 weights, f32 accumulate):
    #   l1 -> relu -> bottleneck -> relu -> l2 -> relu -> classifier.
    h1 = jnp.maximum(mm(feat, l1_w_ref) + l1_b_ref[...], 0.0)         # (B, 1024)
    emb = mm(h1, bn_w_ref) + bn_b_ref[...]                            # (B, 128)
    h2 = jnp.maximum(emb, 0.0)
    h3 = jnp.maximum(mm(h2, l2_w_ref) + l2_b_ref[...], 0.0)           # (B, 1024)
    # Classifier is zero-padded to 128 lanes -> unmasked full-lane store.
    out_ref[...] = mm(h3, cls_w_ref) + cls_b_ref[...]                 # (B, 128)


def dpg_conv_seq_forward(x_tokens, pk):
    """x_tokens: (B, L) int tokens; pk: packed/kernel-ready params."""
    B, L = x_tokens.shape
    tok = x_tokens.astype(jnp.int32)[..., None]                       # (B, L, 1)
    out = pl.pallas_call(
        fused_forward_kernel,
        out_shape=jax.ShapeDtypeStruct((B, CLS_PAD), jnp.float32),
        # No grid / BlockSpecs: single invocation, every operand fully resident
        # in VMEM.  If B, L or CONV1_OUT ever grow, block the MLP M dim at 128
        # ("parallel") and make the contraction the trailing "arbitrary" axis.
        compiler_params=pltpu.CompilerParams(vmem_limit_bytes=32 * 1024 * 1024),
    )(tok,
      pk['conv1_w_flat'], pk['conv1_b'],
      pk['bf8_w_flat'], pk['bf8_b'],
      pk['bf16_w_flat'], pk['bf16_b'],
      pk['l1_w'], pk['l1_b'],
      pk['bn_w'], pk['bn_b'],
      pk['l2_w'], pk['l2_b'],
      pk['cls_w'], pk['cls_b'])
    return out[:, :NUM_CLASSES]


# ---------------------------------------------------------------------------
# One-time parameter packing into the kernel-ready layout.
# ---------------------------------------------------------------------------
def pack_params(p):
    pk = {
        # conv1 weights flattened tap-major: (3, V, 128) -> (3V, 128)
        'conv1_w_flat': p['conv1_w'].reshape(3 * VOCAB, CONV1_OUT),
        'conv1_b': p['conv1_b'],
    }
    for K in KERNEL_SIZES:
        pk[f'bf{K}_w_flat'] = p[f'bf{K}_w'].reshape(K * CONV1_OUT, NB_FILTERS)
        pk[f'bf{K}_b'] = p[f'bf{K}_b']
    # MLP weights stored bf16 (weight-bandwidth-bound head); biases stay f32.
    pk['l1_w'] = p['w1'].astype(jnp.bfloat16)
    pk['l1_b'] = p['b1']
    pk['bn_w'] = p['wb'].astype(jnp.bfloat16)
    pk['bn_b'] = p['bb']
    pk['l2_w'] = p['w2'].astype(jnp.bfloat16)
    pk['l2_b'] = p['b2']
    # Classifier zero-padded from 10 -> 128 output columns.
    cls_w = jnp.zeros((1024, CLS_PAD), jnp.float32).at[:, :NUM_CLASSES].set(p['wc'])
    cls_b = jnp.zeros((1, CLS_PAD), jnp.float32).at[:, :NUM_CLASSES].set(p['bc'])
    pk['cls_w'] = cls_w.astype(jnp.bfloat16)
    pk['cls_b'] = cls_b
    return pk


# ---------------------------------------------------------------------------
# Pure-JAX reference (same math; MLP mirrors the bf16 weight storage so the
# comparison is apples-to-apples).
# ---------------------------------------------------------------------------
def reference_forward(x_tokens, p):
    oh = jax.nn.one_hot(x_tokens, VOCAB, dtype=jnp.float32)
    ohp = jnp.pad(oh, ((0, 0), (1, 1), (0, 0)))
    L = oh.shape[1]
    c1 = sum(jnp.einsum('blv,vc->blc', ohp[:, t:t + L, :], p['conv1_w'][t])
             for t in range(3)) + p['conv1_b']
    feats = []
    for K in KERNEL_SIZES:
        Lout = L - K + 1
        w, b = p[f'bf{K}_w'], p[f'bf{K}_b']
        c = sum(jnp.einsum('blc,cf->blf', c1[:, t:t + Lout, :], w[t])
                for t in range(K)) + b
        feats.append(jnp.maximum(jnp.max(c, axis=1), 0.0))
    feat = jnp.concatenate(feats, axis=1)

    def mm(x, w):  # mirror bf16 weight/activation storage, f32 accumulate
        return jnp.dot(x.astype(jnp.bfloat16).astype(jnp.float32),
                       w.astype(jnp.bfloat16).astype(jnp.float32),
                       preferred_element_type=jnp.float32)

    h = jnp.maximum(mm(feat, p['w1']) + p['b1'], 0.0)
    emb = mm(h, p['wb']) + p['bb']
    h3 = jnp.maximum(mm(jnp.maximum(emb, 0.0), p['w2']) + p['b2'], 0.0)
    return mm(h3, p['wc']) + p['bc']


# ---------------------------------------------------------------------------
# Deterministic parameter init (xavier-normal BaseFilter convs, zero biases
# there; uniform fan-in init elsewhere, mirroring PyTorch defaults).
# ---------------------------------------------------------------------------
def init_params(key):
    ks = jax.random.split(key, 16)
    p = {}
    bound = 1.0 / math.sqrt(VOCAB * 3)
    p['conv1_w'] = jax.random.uniform(ks[0], (3, VOCAB, CONV1_OUT),
                                      jnp.float32, -bound, bound)
    p['conv1_b'] = jax.random.uniform(ks[1], (1, CONV1_OUT),
                                      jnp.float32, -bound, bound)
    for idx, K in enumerate(KERNEL_SIZES):
        std = math.sqrt(2.0 / (CONV1_OUT * K + NB_FILTERS * K))
        p[f'bf{K}_w'] = std * jax.random.normal(
            ks[2 + idx], (K, CONV1_OUT, NB_FILTERS), jnp.float32)
        p[f'bf{K}_b'] = jnp.zeros((1, NB_FILTERS), jnp.float32)

    def linear(kw, kb, din, dout):
        b = 1.0 / math.sqrt(din)
        return (jax.random.uniform(kw, (din, dout), jnp.float32, -b, b),
                jax.random.uniform(kb, (1, dout), jnp.float32, -b, b))

    p['w1'], p['b1'] = linear(ks[6], ks[7],
                              NB_FILTERS * len(KERNEL_SIZES), 1024)
    p['wb'], p['bb'] = linear(ks[8], ks[9], 1024, 128)
    p['w2'], p['b2'] = linear(ks[10], ks[11], 128, 1024)
    p['wc'], p['bc'] = linear(ks[12], ks[13], 1024, NUM_CLASSES)
    return p


if __name__ == "__main__":
    key = jax.random.PRNGKey(0)
    pkey, xkey = jax.random.split(key)
    params = init_params(pkey)
    packed = pack_params(params)
    x = jax.random.randint(xkey, (BATCH, MAX_LEN), 0, VOCAB, dtype=jnp.int32)

    fwd = jax.jit(dpg_conv_seq_forward)
    out = jax.block_until_ready(fwd(x, packed))
    assert out.shape == (BATCH, NUM_CLASSES)

    ref = reference_forward(x, params)
    diff = jnp.max(jnp.abs(out - ref))
    assert jnp.allclose(out, ref, atol=2e-3, rtol=2e-3), \
        f"mismatch vs reference (max abs diff {diff})"

    print("KERNEL_OK")
</pallas_src>

<mosaic_0001>
module attributes {stable_mosaic.version = 11 : i64} {
  func.func @fused_forward_kernel(%arg0: memref<2x32x1xi32, #tpu.memory_space<vmem>>, %arg1: memref<60x128xf32, #tpu.memory_space<vmem>>, %arg2: memref<1x128xf32, #tpu.memory_space<vmem>>, %arg3: memref<1024x32xf32, #tpu.memory_space<vmem>>, %arg4: memref<1x32xf32, #tpu.memory_space<vmem>>, %arg5: memref<2048x32xf32, #tpu.memory_space<vmem>>, %arg6: memref<1x32xf32, #tpu.memory_space<vmem>>, %arg7: memref<64x1024xbf16, #tpu.memory_space<vmem>>, %arg8: memref<1x1024xf32, #tpu.memory_space<vmem>>, %arg9: memref<1024x128xbf16, #tpu.memory_space<vmem>>, %arg10: memref<1x128xf32, #tpu.memory_space<vmem>>, %arg11: memref<128x1024xbf16, #tpu.memory_space<vmem>>, %arg12: memref<1x1024xf32, #tpu.memory_space<vmem>>, %arg13: memref<1024x128xbf16, #tpu.memory_space<vmem>>, %arg14: memref<1x128xf32, #tpu.memory_space<vmem>>, %arg15: memref<2x128xf32, #tpu.memory_space<vmem>>) attributes {dimension_semantics = [], scalar_prefetch = 0 : i64, scratch_operands = 0 : i64, tpu.core_type = #tpu.core_type<tc>} {
    %cst = arith.constant 0.000000e+00 : f32
    %0 = vector.broadcast %cst : f32 to vector<1x20xf32>
    %c0 = arith.constant 0 : index
    %c0_0 = arith.constant 0 : index
    %c0_1 = arith.constant 0 : index
    %1 = vector.load %arg0[%c0, %c0_0, %c0_1] : memref<2x32x1xi32, #tpu.memory_space<vmem>>, vector<1x32x1xi32>
    %2 = vector.shape_cast %1 : vector<1x32x1xi32> to vector<32x1xi32>
    %3 = tpu.iota {dimensions = array<i32: 1>} : vector<32x20xi32>
    %4 = vector.broadcast %2 : vector<32x1xi32> to vector<32x20xi32>
    %5 = arith.cmpi eq, %4, %3 : vector<32x20xi32>
    %6 = arith.extui %5 : vector<32x20xi1> to vector<32x20xi32>
    %7 = arith.sitofp %6 : vector<32x20xi32> to vector<32x20xf32>
    %8 = tpu.concatenate %0, %7, %0 in 0 : vector<1x20xf32>, vector<32x20xf32>, vector<1x20xf32> -> vector<34x20xf32>
    %9 = vector.extract_strided_slice %8 {offsets = [0, 0], sizes = [32, 20], strides = [1, 1]} : vector<34x20xf32> to vector<32x20xf32>
    %10 = vector.extract_strided_slice %8 {offsets = [1, 0], sizes = [32, 20], strides = [1, 1]} : vector<34x20xf32> to vector<32x20xf32>
    %11 = vector.extract_strided_slice %8 {offsets = [2, 0], sizes = [32, 20], strides = [1, 1]} : vector<34x20xf32> to vector<32x20xf32>
    %12 = tpu.concatenate %9, %10, %11 in 1 : vector<32x20xf32>, vector<32x20xf32>, vector<32x20xf32> -> vector<32x60xf32>
    %c0_2 = arith.constant 0 : index
    %c0_3 = arith.constant 0 : index
    %13 = vector.load %arg1[%c0_2, %c0_3] : memref<60x128xf32, #tpu.memory_space<vmem>>, vector<60x128xf32>
    %cst_4 = arith.constant dense<0.000000e+00> : vector<32x128xf32>
    %14 = tpu.matmul %12, %13, %cst_4 {dimension_numbers = #tpu.dot_dimension_numbers<[1], [0], [0], [1], [0, 0, 1, 1], [], []>} : vector<32x60xf32>, vector<60x128xf32>, vector<32x128xf32> -> vector<32x128xf32>
    %c0_5 = arith.constant 0 : index
    %c0_6 = arith.constant 0 : index
    %15 = vector.load %arg2[%c0_5, %c0_6] : memref<1x128xf32, #tpu.memory_space<vmem>>, vector<1x128xf32>
    %16 = vector.broadcast %15 : vector<1x128xf32> to vector<32x128xf32>
    %17 = arith.addf %14, %16 : vector<32x128xf32>
    %18 = vector.extract_strided_slice %17 {offsets = [0, 0], sizes = [25, 128], strides = [1, 1]} : vector<32x128xf32> to vector<25x128xf32>
    %19 = vector.extract_strided_slice %17 {offsets = [1, 0], sizes = [25, 128], strides = [1, 1]} : vector<32x128xf32> to vector<25x128xf32>
    %20 = vector.extract_strided_slice %17 {offsets = [2, 0], sizes = [25, 128], strides = [1, 1]} : vector<32x128xf32> to vector<25x128xf32>
    %21 = vector.extract_strided_slice %17 {offsets = [3, 0], sizes = [25, 128], strides = [1, 1]} : vector<32x128xf32> to vector<25x128xf32>
    %22 = vector.extract_strided_slice %17 {offsets = [4, 0], sizes = [25, 128], strides = [1, 1]} : vector<32x128xf32> to vector<25x128xf32>
    %23 = vector.extract_strided_slice %17 {offsets = [5, 0], sizes = [25, 128], strides = [1, 1]} : vector<32x128xf32> to vector<25x128xf32>
    %24 = vector.extract_strided_slice %17 {offsets = [6, 0], sizes = [25, 128], strides = [1, 1]} : vector<32x128xf32> to vector<25x128xf32>
    %25 = vector.extract_strided_slice %17 {offsets = [7, 0], sizes = [25, 128], strides = [1, 1]} : vector<32x128xf32> to vector<25x128xf32>
    %26 = tpu.concatenate %18, %19, %20, %21, %22, %23, %24, %25 in 1 : vector<25x128xf32>, vector<25x128xf32>, vector<25x128xf32>, vector<25x128xf32>, vector<25x128xf32>, vector<25x128xf32>, vector<25x128xf32>, vector<25x128xf32> -> vector<25x1024xf32>
    %c0_7 = arith.constant 0 : index
    %c0_8 = arith.constant 0 : index
    %27 = vector.load %arg3[%c0_7, %c0_8] : memref<1024x32xf32, #tpu.memory_space<vmem>>, vector<1024x32xf32>
    %cst_9 = arith.constant dense<0.000000e+00> : vector<25x32xf32>
    %28 = tpu.matmul %26, %27, %cst_9 {dimension_numbers = #tpu.dot_dimension_numbers<[1], [0], [0], [1], [0, 0, 1, 1], [], []>} : vector<25x1024xf32>, vector<1024x32xf32>, vector<25x32xf32> -> vector<25x32xf32>
    %c0_10 = arith.constant 0 : index
    %c0_11 = arith.constant 0 : index
    %29 = vector.load %arg4[%c0_10, %c0_11] : memref<1x32xf32, #tpu.memory_space<vmem>>, vector<1x32xf32>
    %30 = vector.broadcast %29 : vector<1x32xf32> to vector<25x32xf32>
    %31 = arith.addf %28, %30 : vector<25x32xf32>
    %cst_12 = arith.constant dense<0xFF800000> : vector<32xf32>
    %32 = vector.multi_reduction <maximumf>, %31, %cst_12 [0] : vector<25x32xf32> to vector<32xf32>
    %33 = vector.shape_cast %32 : vector<32xf32> to vector<1x32xf32>
    %cst_13 = arith.constant 0.000000e+00 : f32
    %34 = vector.broadcast %cst_13 : f32 to vector<1x32xf32>
    %35 = arith.maximumf %33, %34 : vector<1x32xf32>
    %36 = vector.extract_strided_slice %17 {offsets = [0, 0], sizes = [17, 128], strides = [1, 1]} : vector<32x128xf32> to vector<17x128xf32>
    %37 = vector.extract_strided_slice %17 {offsets = [1, 0], sizes = [17, 128], strides = [1, 1]} : vector<32x128xf32> to vector<17x128xf32>
    %38 = vector.extract_strided_slice %17 {offsets = [2, 0], sizes = [17, 128], strides = [1, 1]} : vector<32x128xf32> to vector<17x128xf32>
    %39 = vector.extract_strided_slice %17 {offsets = [3, 0], sizes = [17, 128], strides = [1, 1]} : vector<32x128xf32> to vector<17x128xf32>
    %40 = vector.extract_strided_slice %17 {offsets = [4, 0], sizes = [17, 128], strides = [1, 1]} : vector<32x128xf32> to vector<17x128xf32>
    %41 = vector.extract_strided_slice %17 {offsets = [5, 0], sizes = [17, 128], strides = [1, 1]} : vector<32x128xf32> to vector<17x128xf32>
    %42 = vector.extract_strided_slice %17 {offsets = [6, 0], sizes = [17, 128], strides = [1, 1]} : vector<32x128xf32> to vector<17x128xf32>
    %43 = vector.extract_strided_slice %17 {offsets = [7, 0], sizes = [17, 128], strides = [1, 1]} : vector<32x128xf32> to vector<17x128xf32>
    %44 = vector.extract_strided_slice %17 {offsets = [8, 0], sizes = [17, 128], strides = [1, 1]} : vector<32x128xf32> to vector<17x128xf32>
    %45 = vector.extract_strided_slice %17 {offsets = [9, 0], sizes = [17, 128], strides = [1, 1]} : vector<32x128xf32> to vector<17x128xf32>
    %46 = vector.extract_strided_slice %17 {offsets = [10, 0], sizes = [17, 128], strides = [1, 1]} : vector<32x128xf32> to vector<17x128xf32>
    %47 = vector.extract_strided_slice %17 {offsets = [11, 0], sizes = [17, 128], strides = [1, 1]} : vector<32x128xf32> to vector<17x128xf32>
    %48 = vector.extract_strided_slice %17 {offsets = [12, 0], sizes = [17, 128], strides = [1, 1]} : vector<32x128xf32> to vector<17x128xf32>
    %49 = vector.extract_strided_slice %17 {offsets = [13, 0], sizes = [17, 128], strides = [1, 1]} : vector<32x128xf32> to vector<17x128xf32>
    %50 = vector.extract_strided_slice %17 {offsets = [14, 0], sizes = [17, 128], strides = [1, 1]} : vector<32x128xf32> to vector<17x128xf32>
    %51 = vector.extract_strided_slice %17 {offsets = [15, 0], sizes = [17, 128], strides = [1, 1]} : vector<32x128xf32> to vector<17x128xf32>
    %52 = tpu.concatenate %36, %37, %38, %39, %40, %41, %42, %43, %44, %45, %46, %47, %48, %49, %50, %51 in 1 : vector<17x128xf32>, vector<17x128xf32>, vector<17x128xf32>, vector<17x128xf32>, vector<17x128xf32>, vector<17x128xf32>, vector<17x128xf32>, vector<17x128xf32>, vector<17x128xf32>, vector<17x128xf32>, vector<17x128xf32>, vector<17x128xf32>, vector<17x128xf32>, vector<17x128xf32>, vector<17x128xf32>, vector<17x128xf32> -> vector<17x2048xf32>
    %c0_14 = arith.constant 0 : index
    %c0_15 = arith.constant 0 : index
    %53 = vector.load %arg5[%c0_14, %c0_15] : memref<2048x32xf32, #tpu.memory_space<vmem>>, vector<2048x32xf32>
    %cst_16 = arith.constant dense<0.000000e+00> : vector<17x32xf32>
    %54 = tpu.matmul %52, %53, %cst_16 {dimension_numbers = #tpu.dot_dimension_numbers<[1], [0], [0], [1], [0, 0, 1, 1], [], []>} : vector<17x2048xf32>, vector<2048x32xf32>, vector<17x32xf32> -> vector<17x32xf32>
    %c0_17 = arith.constant 0 : index
    %c0_18 = arith.constant 0 : index
    %55 = vector.load %arg6[%c0_17, %c0_18] : memref<1x32xf32, #tpu.memory_space<vmem>>, vector<1x32xf32>
    %56 = vector.broadcast %55 : vector<1x32xf32> to vector<17x32xf32>
    %57 = arith.addf %54, %56 : vector<17x32xf32>
    %cst_19 = arith.constant dense<0xFF800000> : vector<32xf32>
    %58 = vector.multi_reduction <maximumf>, %57, %cst_19 [0] : vector<17x32xf32> to vector<32xf32>
    %59 = vector.shape_cast %58 : vector<32xf32> to vector<1x32xf32>
    %cst_20 = arith.constant 0.000000e+00 : f32
    %60 = vector.broadcast %cst_20 : f32 to vector<1x32xf32>
    %61 = arith.maximumf %59, %60 : vector<1x32xf32>
    %62 = tpu.concatenate %35, %61 in 1 : vector<1x32xf32>, vector<1x32xf32> -> vector<1x64xf32>
    %c1 = arith.constant 1 : index
    %c0_21 = arith.constant 0 : index
    %c0_22 = arith.constant 0 : index
    %63 = vector.load %arg0[%c1, %c0_21, %c0_22] : memref<2x32x1xi32, #tpu.memory_space<vmem>>, vector<1x32x1xi32>
    %64 = vector.shape_cast %63 : vector<1x32x1xi32> to vector<32x1xi32>
    %65 = tpu.iota {dimensions = array<i32: 1>} : vector<32x20xi32>
    %66 = vector.broadcast %64 : vector<32x1xi32> to vector<32x20xi32>
    %67 = arith.cmpi eq, %66, %65 : vector<32x20xi32>
    %68 = arith.extui %67 : vector<32x20xi1> to vector<32x20xi32>
    %69 = arith.sitofp %68 : vector<32x20xi32> to vector<32x20xf32>
    %70 = tpu.concatenate %0, %69, %0 in 0 : vector<1x20xf32>, vector<32x20xf32>, vector<1x20xf32> -> vector<34x20xf32>
    %71 = vector.extract_strided_slice %70 {offsets = [0, 0], sizes = [32, 20], strides = [1, 1]} : vector<34x20xf32> to vector<32x20xf32>
    %72 = vector.extract_strided_slice %70 {offsets = [1, 0], sizes = [32, 20], strides = [1, 1]} : vector<34x20xf32> to vector<32x20xf32>
    %73 = vector.extract_strided_slice %70 {offsets = [2, 0], sizes = [32, 20], strides = [1, 1]} : vector<34x20xf32> to vector<32x20xf32>
    %74 = tpu.concatenate %71, %72, %73 in 1 : vector<32x20xf32>, vector<32x20xf32>, vector<32x20xf32> -> vector<32x60xf32>
    %c0_23 = arith.constant 0 : index
    %c0_24 = arith.constant 0 : index
    %75 = vector.load %arg1[%c0_23, %c0_24] : memref<60x128xf32, #tpu.memory_space<vmem>>, vector<60x128xf32>
    %cst_25 = arith.constant dense<0.000000e+00> : vector<32x128xf32>
    %76 = tpu.matmul %74, %75, %cst_25 {dimension_numbers = #tpu.dot_dimension_numbers<[1], [0], [0], [1], [0, 0, 1, 1], [], []>} : vector<32x60xf32>, vector<60x128xf32>, vector<32x128xf32> -> vector<32x128xf32>
    %c0_26 = arith.constant 0 : index
    %c0_27 = arith.constant 0 : index
    %77 = vector.load %arg2[%c0_26, %c0_27] : memref<1x128xf32, #tpu.memory_space<vmem>>, vector<1x128xf32>
    %78 = vector.broadcast %77 : vector<1x128xf32> to vector<32x128xf32>
    %79 = arith.addf %76, %78 : vector<32x128xf32>
    %80 = vector.extract_strided_slice %79 {offsets = [0, 0], sizes = [25, 128], strides = [1, 1]} : vector<32x128xf32> to vector<25x128xf32>
    %81 = vector.extract_strided_slice %79 {offsets = [1, 0], sizes = [25, 128], strides = [1, 1]} : vector<32x128xf32> to vector<25x128xf32>
    %82 = vector.extract_strided_slice %79 {offsets = [2, 0], sizes = [25, 128], strides = [1, 1]} : vector<32x128xf32> to vector<25x128xf32>
    %83 = vector.extract_strided_slice %79 {offsets = [3, 0], sizes = [25, 128], strides = [1, 1]} : vector<32x128xf32> to vector<25x128xf32>
    %84 = vector.extract_strided_slice %79 {offsets = [4, 0], sizes = [25, 128], strides = [1, 1]} : vector<32x128xf32> to vector<25x128xf32>
    %85 = vector.extract_strided_slice %79 {offsets = [5, 0], sizes = [25, 128], strides = [1, 1]} : vector<32x128xf32> to vector<25x128xf32>
    %86 = vector.extract_strided_slice %79 {offsets = [6, 0], sizes = [25, 128], strides = [1, 1]} : vector<32x128xf32> to vector<25x128xf32>
    %87 = vector.extract_strided_slice %79 {offsets = [7, 0], sizes = [25, 128], strides = [1, 1]} : vector<32x128xf32> to vector<25x128xf32>
    %88 = tpu.concatenate %80, %81, %82, %83, %84, %85, %86, %87 in 1 : vector<25x128xf32>, vector<25x128xf32>, vector<25x128xf32>, vector<25x128xf32>, vector<25x128xf32>, vector<25x128xf32>, vector<25x128xf32>, vector<25x128xf32> -> vector<25x1024xf32>
    %c0_28 = arith.constant 0 : index
    %c0_29 = arith.constant 0 : index
    %89 = vector.load %arg3[%c0_28, %c0_29] : memref<1024x32xf32, #tpu.memory_space<vmem>>, vector<1024x32xf32>
    %cst_30 = arith.constant dense<0.000000e+00> : vector<25x32xf32>
    %90 = tpu.matmul %88, %89, %cst_30 {dimension_numbers = #tpu.dot_dimension_numbers<[1], [0], [0], [1], [0, 0, 1, 1], [], []>} : vector<25x1024xf32>, vector<1024x32xf32>, vector<25x32xf32> -> vector<25x32xf32>
    %c0_31 = arith.constant 0 : index
    %c0_32 = arith.constant 0 : index
    %91 = vector.load %arg4[%c0_31, %c0_32] : memref<1x32xf32, #tpu.memory_space<vmem>>, vector<1x32xf32>
    %92 = vector.broadcast %91 : vector<1x32xf32> to vector<25x32xf32>
    %93 = arith.addf %90, %92 : vector<25x32xf32>
    %cst_33 = arith.constant dense<0xFF800000> : vector<32xf32>
    %94 = vector.multi_reduction <maximumf>, %93, %cst_33 [0] : vector<25x32xf32> to vector<32xf32>
    %95 = vector.shape_cast %94 : vector<32xf32> to vector<1x32xf32>
    %cst_34 = arith.constant 0.000000e+00 : f32
    %96 = vector.broadcast %cst_34 : f32 to vector<1x32xf32>
    %97 = arith.maximumf %95, %96 : vector<1x32xf32>
    %98 = vector.extract_strided_slice %79 {offsets = [0, 0], sizes = [17, 128], strides = [1, 1]} : vector<32x128xf32> to vector<17x128xf32>
    %99 = vector.extract_strided_slice %79 {offsets = [1, 0], sizes = [17, 128], strides = [1, 1]} : vector<32x128xf32> to vector<17x128xf32>
    %100 = vector.extract_strided_slice %79 {offsets = [2, 0], sizes = [17, 128], strides = [1, 1]} : vector<32x128xf32> to vector<17x128xf32>
    %101 = vector.extract_strided_slice %79 {offsets = [3, 0], sizes = [17, 128], strides = [1, 1]} : vector<32x128xf32> to vector<17x128xf32>
    %102 = vector.extract_strided_slice %79 {offsets = [4, 0], sizes = [17, 128], strides = [1, 1]} : vector<32x128xf32> to vector<17x128xf32>
    %103 = vector.extract_strided_slice %79 {offsets = [5, 0], sizes = [17, 128], strides = [1, 1]} : vector<32x128xf32> to vector<17x128xf32>
    %104 = vector.extract_strided_slice %79 {offsets = [6, 0], sizes = [17, 128], strides = [1, 1]} : vector<32x128xf32> to vector<17x128xf32>
    %105 = vector.extract_strided_slice %79 {offsets = [7, 0], sizes = [17, 128], strides = [1, 1]} : vector<32x128xf32> to vector<17x128xf32>
    %106 = vector.extract_strided_slice %79 {offsets = [8, 0], sizes = [17, 128], strides = [1, 1]} : vector<32x128xf32> to vector<17x128xf32>
    %107 = vector.extract_strided_slice %79 {offsets = [9, 0], sizes = [17, 128], strides = [1, 1]} : vector<32x128xf32> to vector<17x128xf32>
    %108 = vector.extract_strided_slice %79 {offsets = [10, 0], sizes = [17, 128], strides = [1, 1]} : vector<32x128xf32> to vector<17x128xf32>
    %109 = vector.extract_strided_slice %79 {offsets = [11, 0], sizes = [17, 128], strides = [1, 1]} : vector<32x128xf32> to vector<17x128xf32>
    %110 = vector.extract_strided_slice %79 {offsets = [12, 0], sizes = [17, 128], strides = [1, 1]} : vector<32x128xf32> to vector<17x128xf32>
    %111 = vector.extract_strided_slice %79 {offsets = [13, 0], sizes = [17, 128], strides = [1, 1]} : vector<32x128xf32> to vector<17x128xf32>
    %112 = vector.extract_strided_slice %79 {offsets = [14, 0], sizes = [17, 128], strides = [1, 1]} : vector<32x128xf32> to vector<17x128xf32>
    %113 = vector.extract_strided_slice %79 {offsets = [15, 0], sizes = [17, 128], strides = [1, 1]} : vector<32x128xf32> to vector<17x128xf32>
    %114 = tpu.concatenate %98, %99, %100, %101, %102, %103, %104, %105, %106, %107, %108, %109, %110, %111, %112, %113 in 1 : vector<17x128xf32>, vector<17x128xf32>, vector<17x128xf32>, vector<17x128xf32>, vector<17x128xf32>, vector<17x128xf32>, vector<17x128xf32>, vector<17x128xf32>, vector<17x128xf32>, vector<17x128xf32>, vector<17x128xf32>, vector<17x128xf32>, vector<17x128xf32>, vector<17x128xf32>, vector<17x128xf32>, vector<17x128xf32> -> vector<17x2048xf32>
    %c0_35 = arith.constant 0 : index
    %c0_36 = arith.constant 0 : index
    %115 = vector.load %arg5[%c0_35, %c0_36] : memref<2048x32xf32, #tpu.memory_space<vmem>>, vector<2048x32xf32>
    %cst_37 = arith.constant dense<0.000000e+00> : vector<17x32xf32>
    %116 = tpu.matmul %114, %115, %cst_37 {dimension_numbers = #tpu.dot_dimension_numbers<[1], [0], [0], [1], [0, 0, 1, 1], [], []>} : vector<17x2048xf32>, vector<2048x32xf32>, vector<17x32xf32> -> vector<17x32xf32>
    %c0_38 = arith.constant 0 : index
    %c0_39 = arith.constant 0 : index
    %117 = vector.load %arg6[%c0_38, %c0_39] : memref<1x32xf32, #tpu.memory_space<vmem>>, vector<1x32xf32>
    %118 = vector.broadcast %117 : vector<1x32xf32> to vector<17x32xf32>
    %119 = arith.addf %116, %118 : vector<17x32xf32>
    %cst_40 = arith.constant dense<0xFF800000> : vector<32xf32>
    %120 = vector.multi_reduction <maximumf>, %119, %cst_40 [0] : vector<17x32xf32> to vector<32xf32>
    %121 = vector.shape_cast %120 : vector<32xf32> to vector<1x32xf32>
    %cst_41 = arith.constant 0.000000e+00 : f32
    %122 = vector.broadcast %cst_41 : f32 to vector<1x32xf32>
    %123 = arith.maximumf %121, %122 : vector<1x32xf32>
    %124 = tpu.concatenate %97, %123 in 1 : vector<1x32xf32>, vector<1x32xf32> -> vector<1x64xf32>
    %125 = tpu.concatenate %62, %124 in 0 : vector<1x64xf32>, vector<1x64xf32> -> vector<2x64xf32>
    %126 = arith.truncf %125 : vector<2x64xf32> to vector<2x64xbf16>
    %c0_42 = arith.constant 0 : index
    %c0_43 = arith.constant 0 : index
    %127 = vector.load %arg7[%c0_42, %c0_43] : memref<64x1024xbf16, #tpu.memory_space<vmem>>, vector<64x1024xbf16>
    %cst_44 = arith.constant dense<0.000000e+00> : vector<2x1024xf32>
    %128 = tpu.matmul %126, %127, %cst_44 {dimension_numbers = #tpu.dot_dimension_numbers<[1], [0], [0], [1], [0, 0, 1, 1], [], []>} : vector<2x64xbf16>, vector<64x1024xbf16>, vector<2x1024xf32> -> vector<2x1024xf32>
    %c0_45 = arith.constant 0 : index
    %c0_46 = arith.constant 0 : index
    %129 = vector.load %arg8[%c0_45, %c0_46] : memref<1x1024xf32, #tpu.memory_space<vmem>>, vector<1x1024xf32>
    %130 = vector.broadcast %129 : vector<1x1024xf32> to vector<2x1024xf32>
    %131 = arith.addf %128, %130 : vector<2x1024xf32>
    %cst_47 = arith.constant 0.000000e+00 : f32
    %132 = vector.broadcast %cst_47 : f32 to vector<2x1024xf32>
    %133 = arith.maximumf %131, %132 : vector<2x1024xf32>
    %134 = arith.truncf %133 : vector<2x1024xf32> to vector<2x1024xbf16>
    %c0_48 = arith.constant 0 : index
    %c0_49 = arith.constant 0 : index
    %135 = vector.load %arg9[%c0_48, %c0_49] : memref<1024x128xbf16, #tpu.memory_space<vmem>>, vector<1024x128xbf16>
    %cst_50 = arith.constant dense<0.000000e+00> : vector<2x128xf32>
    %136 = tpu.matmul %134, %135, %cst_50 {dimension_numbers = #tpu.dot_dimension_numbers<[1], [0], [0], [1], [0, 0, 1, 1], [], []>} : vector<2x1024xbf16>, vector<1024x128xbf16>, vector<2x128xf32> -> vector<2x128xf32>
    %c0_51 = arith.constant 0 : index
    %c0_52 = arith.constant 0 : index
    %137 = vector.load %arg10[%c0_51, %c0_52] : memref<1x128xf32, #tpu.memory_space<vmem>>, vector<1x128xf32>
    %138 = vector.broadcast %137 : vector<1x128xf32> to vector<2x128xf32>
    %139 = arith.addf %136, %138 : vector<2x128xf32>
    %cst_53 = arith.constant 0.000000e+00 : f32
    %140 = vector.broadcast %cst_53 : f32 to vector<2x128xf32>
    %141 = arith.maximumf %139, %140 : vector<2x128xf32>
    %142 = arith.truncf %141 : vector<2x128xf32> to vector<2x128xbf16>
    %c0_54 = arith.constant 0 : index
    %c0_55 = arith.constant 0 : index
    %143 = vector.load %arg11[%c0_54, %c0_55] : memref<128x1024xbf16, #tpu.memory_space<vmem>>, vector<128x1024xbf16>
    %cst_56 = arith.constant dense<0.000000e+00> : vector<2x1024xf32>
    %144 = tpu.matmul %142, %143, %cst_56 {dimension_numbers = #tpu.dot_dimension_numbers<[1], [0], [0], [1], [0, 0, 1, 1], [], []>} : vector<2x128xbf16>, vector<128x1024xbf16>, vector<2x1024xf32> -> vector<2x1024xf32>
    %c0_57 = arith.constant 0 : index
    %c0_58 = arith.constant 0 : index
    %145 = vector.load %arg12[%c0_57, %c0_58] : memref<1x1024xf32, #tpu.memory_space<vmem>>, vector<1x1024xf32>
    %146 = vector.broadcast %145 : vector<1x1024xf32> to vector<2x1024xf32>
    %147 = arith.addf %144, %146 : vector<2x1024xf32>
    %cst_59 = arith.constant 0.000000e+00 : f32
    %148 = vector.broadcast %cst_59 : f32 to vector<2x1024xf32>
    %149 = arith.maximumf %147, %148 : vector<2x1024xf32>
    %150 = arith.truncf %149 : vector<2x1024xf32> to vector<2x1024xbf16>
    %c0_60 = arith.constant 0 : index
    %c0_61 = arith.constant 0 : index
    %151 = vector.load %arg13[%c0_60, %c0_61] : memref<1024x128xbf16, #tpu.memory_space<vmem>>, vector<1024x128xbf16>
    %cst_62 = arith.constant dense<0.000000e+00> : vector<2x128xf32>
    %152 = tpu.matmul %150, %151, %cst_62 {dimension_numbers = #tpu.dot_dimension_numbers<[1], [0], [0], [1], [0, 0, 1, 1], [], []>} : vector<2x1024xbf16>, vector<1024x128xbf16>, vector<2x128xf32> -> vector<2x128xf32>
    %c0_63 = arith.constant 0 : index
    %c0_64 = arith.constant 0 : index
    %153 = vector.load %arg14[%c0_63, %c0_64] : memref<1x128xf32, #tpu.memory_space<vmem>>, vector<1x128xf32>
    %154 = vector.broadcast %153 : vector<1x128xf32> to vector<2x128xf32>
    %155 = arith.addf %152, %154 : vector<2x128xf32>
    %c0_65 = arith.constant 0 : index
    %c0_66 = arith.constant 0 : index
    %156 = vector.load %arg15[%c0_65, %c0_66] : memref<2x128xf32, #tpu.memory_space<vmem>>, vector<2x128xf32>
    tpu.vector_store %arg15[%c0_65, %c0_66], %155 {strides = array<i32>} : memref<2x128xf32, #tpu.memory_space<vmem>>, vector<2x128xf32>,
    return
  }
}

</mosaic_0001>

<bundles_post_ra>
// kernel: dpg_conv_seq_forward.1
= control target key start
LH: loop header
LB: loop body
LE: loop exit
PB: predicated region body
PF: predicated region fallthrough
CT: control target
= control target key end

     0   :  { %v7575_v2 = vmov 0   ;;  %vm185_vm0 = vcmask 1043456   ;;  %s11455_s0 = inlined_call_operand.vmem [shape: s32[2,32,1], index: 0, kind: input, shape index: {}]   ;;  %s11456_s1 = inlined_call_operand.vmem [shape: f32[60,128], index: 1, kind: input, shape index: {}]   ;;  %s11457_s2 = inlined_call_operand.vmem [shape: f32[1,128], index: 2, kind: input, shape index: {}]   ;;  %s11458_s3 = inlined_call_operand.vmem [shape: f32[1024,32], index: 3, kind: input, shape index: {}]   ;;  %s11459_s4 = inlined_call_operand.vmem [shape: f32[1,32], index: 4, kind: input, shape index: {}]   ;;  %s11460_s5 = inlined_call_operand.vmem [shape: f32[2048,32], index: 5, kind: input, shape index: {}]   ;;  %s11461_s6 = inlined_call_operand.vmem [shape: f32[1,32], index: 6, kind: input, shape index: {}]   ;;  %s11462_s7 = inlined_call_operand.vmem [shape: bf16[64,1024], index: 7, kind: input, shape index: {}]   ;;  %s11463_s8 = inlined_call_operand.vmem [shape: f32[1,1024], index: 8, kind: input, shape index: {}]   ;;  %s11464_s9 = inlined_call_operand.vmem [shape: bf16[1024,128], index: 9, kind: input, shape index: {}]   ;;  %s11465_s10 = inlined_call_operand.vmem [shape: f32[1,128], index: 10, kind: input, shape index: {}]   ;;  %s11466_s11 = inlined_call_operand.vmem [shape: bf16[128,1024], index: 11, kind: input, shape index: {}]   ;;  %s11467_s12 = inlined_call_operand.vmem [shape: f32[1,1024], index: 12, kind: input, shape index: {}]   ;;  %s11468_s13 = inlined_call_operand.vmem [shape: bf16[1024,128], index: 13, kind: input, shape index: {}]   ;;  %s11469_s14 = inlined_call_operand.vmem [shape: f32[1,128], index: 14, kind: input, shape index: {}]   ;;  %s11470_s15 = inlined_call_operand.hbm [shape: f32[2,128], index: 15, kind: output, shape index: {}]  }
   0x1   :  { %v54_v0 = vld [vmem:[%s11455_s0 + $0x10] sm:$0xff]  ;;  %v52_v1 = vld [vmem:[%s11455_s0] sm:$0xff]  ;;  %6989 = vset.pattern.permute.xlu1 %v7575_v2  ;;  %6988 = vset.pattern.permute.xlu0 %v7575_v2  ;;  %v55_v3 = vld [vmem:[%s11455_s0 + $0x18] sm:$0xff] }
   0x2   :  { %65 = vperm.xlu1 %6989, %v54_v0   ;;  %59 = vperm.xlu0 %6988, %v52_v1   ;;  %v53_v4 = vld [vmem:[%s11455_s0 + $0x8] sm:$0xff]  ;;  %v164_v5 = vld [vmem:[%s11456_s1 + $0x38] sm:$0xf]  ;;  %v163_v6 = vld [vmem:[%s11456_s1 + $0x30] sm:$0xff] }
   0x3   :  { %6938 = vmatprep.subr.msk.mxu0 %vm185_vm0, %v164_v5  ;;  %v162_v7 = vld [vmem:[%s11456_s1 + $0x28] sm:$0xff]  ;;  %v161_v8 = vld [vmem:[%s11456_s1 + $0x20] sm:$0xff]  ;;  %v160_v9 = vld [vmem:[%s11456_s1 + $0x18] sm:$0xff] }
   0x4   :  { %6939 = vmatpush3.msk.msra.mxu0 %vm185_vm0, %v164_v5  ;;  %v159_v10 = vld [vmem:[%s11456_s1 + $0x10] sm:$0xff] }
   0x5   :  { %6940 = vmatprep.subr.mxu0 %v163_v6 }
   0x6   :  { %68 = vperm.xlu1 %6989, %v55_v3   ;;  %62 = vperm.xlu0 %6988, %v53_v4  }
   0x7   :  { %6941 = vmatpush3.msra.mxu0 %v163_v6 }
   0x8   :  { %6942 = vmatprep.subr.mxu0 %v162_v7 }
   0x9   :  { %6943 = vmatpush3.msra.mxu0 %v162_v7 }
   0xa   :  { %6944 = vmatprep.subr.mxu0 %v161_v8 }
   0xb   :  { %6945 = vmatpush3.msra.mxu0 %v161_v8 }
   0xc   :  { %6946 = vmatprep.subr.mxu0 %v160_v9 }
   0xd   :  { %6947 = vmatpush3.msra.mxu0 %v160_v9 }
   0xe   :  { %6948 = vmatprep.subr.mxu0 %v159_v10 }
   0xf   :  { %6949 = vmatpush3.msra.mxu0 %v159_v10 }
  0x10   :  { %20 = vsyncpa [#allocation3], 0  ;;  %v56_v11 = vlaneseq  ;;  %v7576_v15 = vmov 0.0   ;;  %vm86_vm3 = vcmask 1040384   ;;  %v158_v19 = vld [vmem:[%s11456_s1 + $0x8] sm:$0xff]  ;;  %v157_v20 = vld [vmem:[%s11456_s1] sm:$0xff] }
  0x11   :  { %6950 = vmatprep.subr.mxu0 %v158_v19  ;;  %vm125_vm6 = vcmask 1045504   ;;  %vm103_vm7 = vcmask 1046528   ;;  %s7577_s27 = smov 40   ;;  %s7578_s28 = smov 20   ;;  %v5488_v55 = vld [vmem:[%s11455_s0 + $0x28] sm:$0xff]  ;;  %v5487_v56 = vld [vmem:[%s11455_s0 + $0x20] sm:$0xff] }
  0x12   :  { %v7696_v12 = vand.u32 127, %v56_v11  ;;  %6951 = vmatpush3.msra.mxu0 %v158_v19  ;;  %v5490_v57 = vld [vmem:[%s11455_s0 + $0x38] sm:$0xff]  ;;  %v5489_v58 = vld [vmem:[%s11455_s0 + $0x30] sm:$0xff]  ;;  %vm147_vm8 = vcmask 162816   ;;  %vm152_vm9 = vcmask 326656   ;;  %vm172_vm10 = vcmask 490496  }
  0x13   :  { %6952 = vmatprep.subr.mxu0 %v157_v20  ;;  %vm300_vm15 = vcmask 1044480   ;;  %s7579_s20 = smov 32   ;;  %s7580_s19 = smov [#allocation2]  }
  0x14   :  { %6953 = vmatpush3.msra.mxu0 %v157_v20 }
  0x7d   :  { %v66_v13 = vpop.permute.xlu1 %65  ;;  %v60_v14 = vpop.permute.xlu0 %59 }
  0x7e   :  { %vm72_vm1 = vcmp.eq.s32.totalorder %v66_v13, %v7696_v12  ;;  %vm70_vm2 = vcmp.eq.s32.totalorder %v60_v14, %v7696_v12 }
  0x7f   :  { %v5477_v16 = vsel %vm72_vm1, 1.0, %v7576_v15  ;;  %v5475_v17 = vsel %vm70_vm2, 1.0, %v7576_v15  ;;  %vm323_vm1 = vcmask 1042432   ;;  %vm335_vm2 = vcmask 1041408  }
  0x80   :  { %v87_v18 = vrot.slane %v5475_v17, 7  ;;  %v90_v23 = vrot.slane %v5477_v16, 7 }
  0x81   :  { %v69_v21 = vpop.permute.xlu1 %68  ;;  %v63_v22 = vpop.permute.xlu0 %62 }
  0x82   :  { %v99_v24 = vsel %vm86_vm3, 0.0, %v87_v18  ;;  %vm73_vm4 = vcmp.eq.s32.totalorder %v69_v21, %v7696_v12  ;;  %vm71_vm5 = vcmp.eq.s32.totalorder %v63_v22, %v7696_v12 }
  0x83   :  { %v5478_v25 = vsel %vm73_vm4, 1.0, %v7576_v15  ;;  %v5476_v26 = vsel %vm71_vm5, 1.0, %v7576_v15  ;;  %v104_v29 = vrot.slane %v99_v24, 1  ;;  %v126_v30 = vrot.slane %v99_v24, 2 }
  0x84   :  { %v92_v27 = vrot.slane %v5478_v25, 7  ;;  %v88_v28 = vrot.slane %v5476_v26, 7  ;;  %vm833_vm4 = vcmask 261120   ;;  %vm837_vm5 = vcmask 253952  }
  0x86   :  { %v93_v31 = vsel %vm86_vm3, %v90_v23, %v92_v27  ;;  %v100_v32 = vsel %vm86_vm3, %v92_v27, 0.0  ;;  %v89_v33 = vsel %vm86_vm3, %v87_v18, %v88_v28  ;;  %v91_v34 = vsel %vm86_vm3, %v88_v28, %v90_v23 }
  0x87   :  { %v109_v35 = vrot.slane %v93_v31, 1  ;;  %v111_v36 = vrot.slane %v100_v32, 1  ;;  %v131_v37 = vrot.slane %v93_v31, 2  ;;  %v133_v38 = vrot.slane %v100_v32, 2 }
  0x88   :  { %v105_v39 = vrot.slane %v89_v33, 1  ;;  %v107_v40 = vrot.slane %v91_v34, 1  ;;  %v127_v41 = vrot.slane %v89_v33, 2  ;;  %v129_v42 = vrot.slane %v91_v34, 2 }
  0x89   :  { %v134_v50 = vsel %vm125_vm6, %v131_v37, %v133_v38  ;;  %v112_v52 = vsel %vm103_vm7, %v109_v35, %v111_v36  ;;  %v388_v38 = vld [vmem:[%s11458_s3 + $0xf0] sm:$0xff] }
  0x8a   :  { %v128_v43 = vsel %vm125_vm6, %v126_v30, %v127_v41  ;;  %v130_v44 = vsel %vm125_vm6, %v127_v41, %v129_v42  ;;  %v106_v45 = vsel %vm103_vm7, %v104_v29, %v105_v39  ;;  %v108_v46 = vsel %vm103_vm7, %v105_v39, %v107_v40  ;;  %v420_v39 = vld [vmem:[%s11458_s3 + $0x1f0] sm:$0xff] }
  0x8b   :  { %v6995_v47 = vpack.i.bf16 %v130_v44, %v128_v43  ;;  %v6990_v48 = vpack.i.bf16 %v108_v46, %v106_v45  ;;  %v132_v49 = vsel %vm125_vm6, %v129_v42, %v131_v37  ;;  %v110_v51 = vsel %vm103_vm7, %v107_v40, %v109_v35  ;;  %v405_v37 = vld [vmem:[%s11458_s3 + $0x178] sm:$0xff]  ;;  %v372_v44 = vld [vmem:[%s11458_s3 + $0x70] sm:$0xff]  ;;  %v387_v46 = vld [vmem:[%s11458_s3 + $0xe8] sm:$0xff] }
  0x8c   :  { %v7005_v53 = vpack.i.bf16 %v134_v50, %v132_v49  ;;  %v7000_v54 = vpack.i.bf16 %v112_v52, %v110_v51  ;;  %v404_v45 = vld [vmem:[%s11458_s3 + $0x170] sm:$0xff]  ;;  %v419_v50 = vld [vmem:[%s11458_s3 + $0x1e8] sm:$0xff] }
  0x8d   :  { %6996 = vrot.lane.b32.xlu1 %v6995_v47, %s7577_s27  ;;  %6991 = vrot.lane.b32.xlu0 %v6990_v48, %s7578_s28  ;;  %v371_v51 = vld [vmem:[%s11458_s3 + $0x68] sm:$0xff] }
  0x91   :  { %7006 = vrot.lane.b32.xlu1 %v7005_v53, %s7577_s27  ;;  %7001 = vrot.lane.b32.xlu0 %v7000_v54, %s7578_s28 }
  0x95   :  { %1785 = vperm.xlu1 %6989, %v5488_v55   ;;  %1782 = vperm.xlu0 %6988, %v5487_v56   ;;  %v403_v55 = vld [vmem:[%s11458_s3 + $0x168] sm:$0xff]  ;;  %v386_v56 = vld [vmem:[%s11458_s3 + $0xe0] sm:$0xff] }
  0x99   :  { %1791 = vperm.xlu1 %6989, %v5490_v57   ;;  %1788 = vperm.xlu0 %6988, %v5489_v58  }
  0xff   :  { %v6997_v59 = vpop.permute.xlu1 %6996  ;;  %v6992_v60 = vpop.permute.xlu0 %6991 }
 0x100   :  { %v6999_v61 = vunpack.i.h.bf16 %v6997_v59  ;;  %v6998_v62 = vunpack.i.l.bf16 %v6997_v59  ;;  %v6994_v63 = vunpack.i.h.bf16 %v6992_v60  ;;  %v6993_v0 = vunpack.i.l.bf16 %v6992_v60  ;;  %v418_v59 = vld [vmem:[%s11458_s3 + $0x1e0] sm:$0xff] }
 0x102   :  { %v148_v1 = vsel %vm147_vm8, %v99_v24, %v6993_v0  ;;  %v149_v3 = vsel %vm147_vm8, %v89_v33, %v6994_v63  ;;  %v389_v33 = vld [vmem:[%s11458_s3 + $0xf8] sm:$0xff]  ;;  %v370_v63 = vld [vmem:[%s11458_s3 + $0x60] sm:$0xff] }
 0x103   :  { %v7007_v4 = vpop.permute.xlu1 %7006  ;;  %v7002_v5 = vpop.permute.xlu0 %7001  ;;  %v153_v6 = vsel %vm152_vm9, %v148_v1, %v6998_v62  ;;  %v154_v7 = vsel %vm152_vm9, %v149_v3, %v6999_v61  ;;  %5742 = vmatprep.subr.mxu1 %v389_v33  ;;  %v397_v33 = vld [vmem:[%s11458_s3 + $0x138] sm:$0xff] }
 0x104   :  { %v7009_v8 = vunpack.i.h.bf16 %v7007_v4  ;;  %v7008_v9 = vunpack.i.l.bf16 %v7007_v4  ;;  %v7004_v10 = vunpack.i.h.bf16 %v7002_v5  ;;  %v7003_v13 = vunpack.i.l.bf16 %v7002_v5  ;;  %6954 = vmatprep.mubr.msk.f32.mxu0 %vm172_vm10, %v153_v6  ;;  %v402_v4 = vld [vmem:[%s11458_s3 + $0x160] sm:$0xff]  ;;  %v385_v5 = vld [vmem:[%s11458_s3 + $0xd8] sm:$0xff] }
 0x105   :  { %6955 = vmatmul.mubr.msk.f32.vlgmr.msra.gmra.mxu0 %vm172_vm10, %v154_v7 }
 0x106   :  { %v150_v14 = vsel %vm147_vm8, %v91_v34, %v7003_v13  ;;  %v151_v16 = vsel %vm147_vm8, %v93_v31, %v7004_v10  ;;  %v373_v34 = vld [vmem:[%s11458_s3 + $0x78] sm:$0xff] }
 0x107   :  { %v155_v17 = vsel %vm152_vm9, %v150_v14, %v7008_v9  ;;  %v156_v18 = vsel %vm152_vm9, %v151_v16, %v7009_v8  ;;  %5743 = vmatpush3.msra.mxu1 %v373_v34  ;;  %v417_v8 = vld [vmem:[%s11458_s3 + $0x1d8] sm:$0xff]  ;;  %v384_v14 = vld [vmem:[%s11458_s3 + $0xd0] sm:$0xff] }
 0x108   :  { %6957 = vmatprep.mubr.msk.f32.mxu0 %vm172_vm10, %v155_v17  ;;  %5744 = vmatprep.subr.mxu1 %v388_v38  ;;  %v369_v9 = vld [vmem:[%s11458_s3 + $0x58] sm:$0xff]  ;;  %v416_v17 = vld [vmem:[%s11458_s3 + $0x1d0] sm:$0xff]  ;;  %v363_v38 = vld [vmem:[%s11458_s3 + $0x28] sm:$0xff] }
 0x109   :  { %6958 = vmatmul.mubr.msk.f32.gmra.mxu0 %vm172_vm10, %v156_v18  ;;  %5745 = vmatpush3.msra.mxu1 %v372_v44  ;;  %v401_v10 = vld [vmem:[%s11458_s3 + $0x158] sm:$0xff]  ;;  %v368_v18 = vld [vmem:[%s11458_s3 + $0x50] sm:$0xff]  ;;  %v362_v44 = vld [vmem:[%s11458_s3 + $0x20] sm:$0xff] }
 0x10a   :  { %5746 = vmatprep.subr.mxu1 %v387_v46  ;;  %v412_v34 = vld [vmem:[%s11458_s3 + $0x1b0] sm:$0xff]  ;;  %v377_v46 = vld [vmem:[%s11458_s3 + $0x98] sm:$0xff] }
 0x10b   :  { %5747 = vmatpush3.msra.mxu1 %v371_v51  ;;  %v408_v51 = vld [vmem:[%s11458_s3 + $0x190] sm:$0xff] }
 0x10c   :  { %5748 = vmatprep.subr.mxu1 %v386_v56  ;;  %v359_v56 = vld [vmem:[%s11458_s3 + $0x8] sm:$0xff] }
 0x10d   :  { %5749 = vmatpush3.msra.mxu1 %v370_v63  ;;  %v485_v63 = vld [vmem:[%s11458_s3 + $0x3f8] sm:$0xff] }
 0x10e   :  { %5750 = vmatprep.subr.mxu1 %v385_v5 }
 0x10f   :  { %5751 = vmatpush3.msra.mxu1 %v369_v9 }
 0x110   :  { %v1786_v19 = vpop.permute.xlu1 %1785  ;;  %v1783_v20 = vpop.permute.xlu0 %1782  ;;  %5752 = vmatprep.subr.mxu1 %v384_v14 }
 0x111   :  { %vm1794_vm11 = vcmp.eq.s32.totalorder %v1786_v19, %v7696_v12  ;;  %vm1793_vm12 = vcmp.eq.s32.totalorder %v1783_v20, %v7696_v12  ;;  %v400_v19 = vld [vmem:[%s11458_s3 + $0x150] sm:$0xff]  ;;  %v383_v20 = vld [vmem:[%s11458_s3 + $0xc8] sm:$0xff]  ;;  %5753 = vmatpush3.msra.mxu1 %v368_v18 }
 0x112   :  { %v5492_v21 = vsel %vm1794_vm11, 1.0, %v7576_v15  ;;  %v5491_v22 = vsel %vm1793_vm12, 1.0, %v7576_v15  ;;  %5754 = vmatprep.subr.mxu1 %v383_v20 }
 0x113   :  { %v1810_v23 = vrot.slane %v5492_v21, 7  ;;  %v1809_v24 = vrot.slane %v5491_v22, 7  ;;  %v415_v21 = vld [vmem:[%s11458_s3 + $0x1c8] sm:$0xff] }
 0x114   :  { %v1792_v25 = vpop.permute.xlu1 %1791  ;;  %v1789_v26 = vpop.permute.xlu0 %1788  ;;  %v367_v22 = vld [vmem:[%s11458_s3 + $0x48] sm:$0xff] }
 0x115   :  { %vm1796_vm13 = vcmp.eq.s32.totalorder %v1792_v25, %v7696_v12  ;;  %vm1795_vm14 = vcmp.eq.s32.totalorder %v1789_v26, %v7696_v12  ;;  %v7760_v27 = vsel %vm86_vm3, %v1809_v24, %v1810_v23  ;;  %v7763_v28 = vsel %vm86_vm3, 0.0, %v1809_v24  ;;  %v421_v12 = vld [vmem:[%s11458_s3 + $0x1f8] sm:$0xff]  ;;  %v382_v24 = vld [vmem:[%s11458_s3 + $0xc0] sm:$0xff]  ;;  %5755 = vmatpush3.msra.mxu1 %v367_v22 }
 0x116   :  { %v5494_v29 = vsel %vm1796_vm13, 1.0, %v7576_v15  ;;  %v5493_v30 = vsel %vm1795_vm14, 1.0, %v7576_v15  ;;  %v1825_v35 = vrot.slane %v7763_v28, 1  ;;  %v1826_v36 = vrot.slane %v7760_v27, 1  ;;  %5786 = vmatprep.subr.mxu0 %v421_v12  ;;  %v414_v25 = vld [vmem:[%s11458_s3 + $0x1c0] sm:$0xff]  ;;  %5756 = vmatprep.subr.mxu1 %v382_v24  ;;  %v380_v12 = vld [vmem:[%s11458_s3 + $0xb0] sm:$0xff] }
 0x117   :  { %v1814_v31 = vrot.slane %v5494_v29, 7  ;;  %v1812_v32 = vrot.slane %v5493_v30, 7  ;;  %v1846_v15 = vrot.slane %v7763_v28, 2  ;;  %v1847_v40 = vrot.slane %v7760_v27, 2  ;;  %5787 = vmatpush3.msra.mxu0 %v405_v37  ;;  %v366_v26 = vld [vmem:[%s11458_s3 + $0x40] sm:$0xff]  ;;  %v381_v30 = vld [vmem:[%s11458_s3 + $0xb8] sm:$0xff] }
 0x118   :  { %5788 = vmatprep.subr.mxu0 %v420_v39  ;;  %v1827_v57 = vsel %vm103_vm7, %v1825_v35, %v1826_v36  ;;  %v398_v29 = vld [vmem:[%s11458_s3 + $0x140] sm:$0xff]  ;;  %5757 = vmatpush3.msra.mxu1 %v366_v26  ;;  %v364_v35 = vld [vmem:[%s11458_s3 + $0x30] sm:$0xff]  ;;  %v411_v37 = vld [vmem:[%s11458_s3 + $0x1a8] sm:$0xff] }
 0x119   :  { %v1822_v41 = vsel %vm86_vm3, %v1814_v31, 0.0  ;;  %v7791_v42 = vsel %vm86_vm3, %v1810_v23, %v1812_v32  ;;  %v7794_v43 = vsel %vm86_vm3, %v1812_v32, %v1814_v31  ;;  %5789 = vmatpush3.msra.mxu0 %v404_v45  ;;  %v1848_v60 = vsel %vm125_vm6, %v1846_v15, %v1847_v40  ;;  %v399_v23 = vld [vmem:[%s11458_s3 + $0x148] sm:$0xff]  ;;  %v413_v31 = vld [vmem:[%s11458_s3 + $0x1b8] sm:$0xff]  ;;  %5758 = vmatprep.subr.mxu1 %v381_v30  ;;  %v394_v45 = vld [vmem:[%s11458_s3 + $0x120] sm:$0xff] }
 0x11a   :  { %v1832_v47 = vrot.slane %v1822_v41, 1  ;;  %v1828_v48 = vrot.slane %v7791_v42, 1  ;;  %v1830_v49 = vrot.slane %v7794_v43, 1  ;;  %v1853_v52 = vrot.slane %v1822_v41, 2  ;;  %5790 = vmatprep.subr.mxu0 %v419_v50  ;;  %v365_v32 = vld [vmem:[%s11458_s3 + $0x38] sm:$0xff]  ;;  %v379_v15 = vld [vmem:[%s11458_s3 + $0xa8] sm:$0xff] }
 0x11b   :  { %v1849_v53 = vrot.slane %v7791_v42, 2  ;;  %v1851_v54 = vrot.slane %v7794_v43, 2  ;;  %5791 = vmatpush3.msra.mxu0 %v403_v55  ;;  %5759 = vmatpush3.msra.mxu1 %v365_v32  ;;  %v395_v39 = vld [vmem:[%s11458_s3 + $0x128] sm:$0xff]  ;;  %v410_v41 = vld [vmem:[%s11458_s3 + $0x1a0] sm:$0xff]  ;;  %v376_v50 = vld [vmem:[%s11458_s3 + $0x90] sm:$0xff] }
 0x11c   :  { %v1829_v58 = vsel %vm103_vm7, %v1826_v36, %v1828_v48  ;;  %v1831_v1 = vsel %vm103_vm7, %v1828_v48, %v1830_v49  ;;  %v1833_v3 = vsel %vm103_vm7, %v1830_v49, %v1832_v47  ;;  %5792 = vmatprep.subr.mxu0 %v418_v59  ;;  %v396_v36 = vld [vmem:[%s11458_s3 + $0x130] sm:$0xff]  ;;  %5760 = vmatprep.subr.mxu1 %v380_v12  ;;  %v409_v47 = vld [vmem:[%s11458_s3 + $0x198] sm:$0xff]  ;;  %v407_v55 = vld [vmem:[%s11458_s3 + $0x188] sm:$0xff] }
 0x11d   :  { %v1850_v61 = vsel %vm125_vm6, %v1847_v40, %v1849_v53  ;;  %v7010_v62 = vpack.i.bf16 %v1829_v58, %v1827_v57  ;;  %v1852_v6 = vsel %vm125_vm6, %v1849_v53, %v1851_v54  ;;  %v1854_v7 = vsel %vm125_vm6, %v1851_v54, %v1853_v52  ;;  %5793 = vmatpush3.msra.mxu0 %v402_v4  ;;  %v378_v40 = vld [vmem:[%s11458_s3 + $0xa0] sm:$0xff]  ;;  %v361_v48 = vld [vmem:[%s11458_s3 + $0x18] sm:$0xff]  ;;  %v360_v52 = vld [vmem:[%s11458_s3 + $0x10] sm:$0xff] }
 0x11e   :  { %v7015_v0 = vpack.i.bf16 %v1850_v61, %v1848_v60  ;;  %v7020_v13 = vpack.i.bf16 %v1833_v3, %v1831_v1  ;;  %v7025_v16 = vpack.i.bf16 %v1854_v7, %v1852_v6  ;;  %5794 = vmatprep.subr.mxu0 %v417_v8  ;;  %5761 = vmatpush3.msra.mxu1 %v364_v35  ;;  %v393_v49 = vld [vmem:[%s11458_s3 + $0x118] sm:$0xff]  ;;  %v392_v53 = vld [vmem:[%s11458_s3 + $0x110] sm:$0xff]  ;;  %v375_v54 = vld [vmem:[%s11458_s3 + $0x88] sm:$0xff] }
 0x11f   :  { %7011 = vrot.lane.b32.xlu0 %v7010_v62, %s7578_s28  ;;  %5795 = vmatpush3.msra.mxu0 %v401_v10  ;;  %v391_v57 = vld [vmem:[%s11458_s3 + $0x108] sm:$0xff]  ;;  %v374_v58 = vld [vmem:[%s11458_s3 + $0x80] sm:$0xff]  ;;  %v453_v62 = vld [vmem:[%s11458_s3 + $0x2f8] sm:$0xff] }
 0x120   :  { %7016 = vrot.lane.b32.xlu1 %v7015_v0, %s7577_s27  ;;  %5796 = vmatprep.subr.mxu0 %v416_v17  ;;  %v406_v59 = vld [vmem:[%s11458_s3 + $0x180] sm:$0xff]  ;;  %v469_v22 = vld [vmem:[%s11458_s3 + $0x378] sm:$0xff]  ;;  %v484_v24 = vld [vmem:[%s11458_s3 + $0x3f0] sm:$0xff] }
 0x121   :  { %5797 = vmatpush3.msra.mxu0 %v400_v19  ;;  %5762 = vmatprep.subr.mxu1 %v379_v15  ;;  %v358_v60 = vld [vmem:[%s11458_s3] sm:$0xff]  ;;  %v468_v26 = vld [vmem:[%s11458_s3 + $0x370] sm:$0xff]  ;;  %v483_v35 = vld [vmem:[%s11458_s3 + $0x3e8] sm:$0xff] }
 0x122   :  { %5798 = vmatprep.subr.mxu0 %v415_v21  ;;  %5763 = vmatpush3.msra.mxu1 %v363_v38  ;;  %v390_v61 = vld [vmem:[%s11458_s3 + $0x100] sm:$0xff]  ;;  %v437_v21 = vld [vmem:[%s11458_s3 + $0x278] sm:$0xff]  ;;  %v435_v15 = vld [vmem:[%s11458_s3 + $0x268] sm:$0xff] }
 0x123   :  { %7021 = vrot.lane.b32.xlu0 %v7020_v13, %s7578_s28  ;;  %5799 = vmatpush3.msra.mxu0 %v399_v23  ;;  %v5479_v0 = vld [vmem:[%s11457_s2] ss:$0 sm:$0xff]  ;;  %v452_v23 = vld [vmem:[%s11458_s3 + $0x2f0] sm:$0xff] }
 0x124   :  { %7026 = vrot.lane.b32.xlu1 %v7025_v16, %s7577_s27  ;;  %5800 = vmatprep.subr.mxu0 %v414_v25  ;;  %v436_v25 = vld [vmem:[%s11458_s3 + $0x270] sm:$0xff] }
 0x125   :  { %5801 = vmatpush3.msra.mxu0 %v398_v29  ;;  %5764 = vmatprep.subr.mxu1 %v378_v40  ;;  %v450_v40 = vld [vmem:[%s11458_s3 + $0x2e0] sm:$0xff] }
 0x126   :  { %5802 = vmatprep.subr.mxu0 %v413_v31  ;;  %5765 = vmatpush3.msra.mxu1 %v362_v44 }
 0x127   :  { %5803 = vmatpush3.msra.mxu0 %v397_v33  ;;  %5766 = vmatprep.subr.mxu1 %v377_v46  ;;  %v434_v46 = vld [vmem:[%s11458_s3 + $0x260] sm:$0xff] }
 0x128   :  { %5804 = vmatprep.subr.mxu0 %v412_v34  ;;  %5767 = vmatpush3.msra.mxu1 %v361_v48  ;;  %v451_v34 = vld [vmem:[%s11458_s3 + $0x2e8] sm:$0xff]  ;;  %v449_v48 = vld [vmem:[%s11458_s3 + $0x2d8] sm:$0xff] }
 0x129   :  { %5805 = vmatpush3.msra.mxu0 %v396_v36  ;;  %5768 = vmatprep.subr.mxu1 %v376_v50 }
 0x12a   :  { %5806 = vmatprep.subr.mxu0 %v411_v37  ;;  %5769 = vmatpush3.msra.mxu1 %v360_v52  ;;  %v467_v37 = vld [vmem:[%s11458_s3 + $0x368] sm:$0xff]  ;;  %v465_v52 = vld [vmem:[%s11458_s3 + $0x358] sm:$0xff] }
 0x12b   :  { %5807 = vmatpush3.msra.mxu0 %v395_v39  ;;  %5770 = vmatprep.subr.mxu1 %v375_v54  ;;  %v448_v54 = vld [vmem:[%s11458_s3 + $0x2d0] sm:$0xff] }
 0x12c   :  { %5808 = vmatprep.subr.mxu0 %v410_v41  ;;  %5771 = vmatpush3.msra.mxu1 %v359_v56  ;;  %v482_v41 = vld [vmem:[%s11458_s3 + $0x3e0] sm:$0xff]  ;;  %v432_v56 = vld [vmem:[%s11458_s3 + $0x250] sm:$0xff] }
 0x12d   :  { %5809 = vmatpush3.msra.mxu0 %v394_v45  ;;  %5772 = vmatprep.subr.mxu1 %v374_v58  ;;  %v447_v58 = vld [vmem:[%s11458_s3 + $0x2c8] sm:$0xff] }
 0x12e   :  { %5810 = vmatprep.subr.mxu0 %v409_v47  ;;  %5773 = vmatpush3.msra.mxu1 %v358_v60  ;;  %v466_v47 = vld [vmem:[%s11458_s3 + $0x360] sm:$0xff] }
 0x12f   :  { %5811 = vmatpush3.msra.mxu0 %v393_v49  ;;  %5830 = vmatprep.subr.mxu1 %v453_v62  ;;  %v481_v49 = vld [vmem:[%s11458_s3 + $0x3d8] sm:$0xff]  ;;  %v463_v62 = vld [vmem:[%s11458_s3 + $0x348] sm:$0xff] }
 0x130   :  { %5812 = vmatprep.subr.mxu0 %v408_v51  ;;  %v433_v51 = vld [vmem:[%s11458_s3 + $0x258] sm:$0xff] }
 0x131   :  { %5813 = vmatpush3.msra.mxu0 %v392_v53 }
 0x132   :  { %5814 = vmatprep.subr.mxu0 %v407_v55  ;;  %v480_v55 = vld [vmem:[%s11458_s3 + $0x3d0] sm:$0xff] }
 0x133   :  { %5815 = vmatpush3.msra.mxu0 %v391_v57  ;;  %v464_v57 = vld [vmem:[%s11458_s3 + $0x350] sm:$0xff] }
 0x134   :  { %5816 = vmatprep.subr.mxu0 %v406_v59  ;;  %v479_v59 = vld [vmem:[%s11458_s3 + $0x3c8] sm:$0xff] }
 0x135   :  { %5817 = vmatpush3.msra.mxu0 %v390_v61  ;;  %v431_v61 = vld [vmem:[%s11458_s3 + $0x248] sm:$0xff] }
 0x136   :  { %5874 = vmatprep.subr.mxu0 %v485_v63 }
 0x1c5   :  { %v6956_v1 = vpop.f32.mrf.mxu0 }
 0x1c6   :  { %v7995_v3 = vadd.f32 %v6956_v1, %v5479_v0 }
 0x1c7   :  { %v255_v4 = vpop.f32.mrf.mxu0 }
 0x1c8   :  { %v7997_v5 = vadd.f32 %v5479_v0, %v255_v4  ;;  %v279_v7 = vrot.slane %v7995_v3, 1  ;;  %v302_v8 = vrot.slane %v7995_v3, 3  ;;  %v290_v14 = vrot.slane %v7995_v3, 2  ;;  %v478_v4 = vld [vmem:[%s11458_s3 + $0x3c0] sm:$0xff] }
 0x1c9   :  { %v6959_v6 = vpop.f32.mrf.mxu0  ;;  %v325_v1 = vrot.slane %v7995_v3, 5 }
 0x1ca   :  { %v278_v9 = vrot.slane %v7997_v5, 1  ;;  %v301_v10 = vrot.slane %v7997_v5, 3  ;;  %v289_v13 = vrot.slane %v7997_v5, 2  ;;  %v8047_v32 = vadd.f32 %v6959_v6, %v5479_v0 }
 0x1cb   :  { %v265_v16 = vpop.f32.mrf.mxu0  ;;  %v324_v60 = vrot.slane %v7997_v5, 5  ;;  %v347_v63 = vrot.slane %v7997_v5, 7  ;;  %v348_v6 = vrot.slane %v7995_v3, 7 }
 0x1cc   :  { %v8005_v17 = vadd.f32 %v5479_v0, %v265_v16  ;;  %v8008_v18 = vsel %vm103_vm7, %v278_v9, %v279_v7  ;;  %v8011_v19 = vsel %vm300_vm15, %v301_v10, %v302_v8  ;;  %v8014_v20 = vsel %vm125_vm6, %v289_v13, %v290_v14  ;;  %v446_v0 = vld [vmem:[%s11458_s3 + $0x2c0] sm:$0xff]  ;;  %v445_v13 = vld [vmem:[%s11458_s3 + $0x2b8] sm:$0xff] }
 0x1cd   :  { %557 = vmatprep.mubr.f32.mxu1 %v8008_v18  ;;  %642 = vmatprep.mubr.f32.mxu0 %v8011_v19  ;;  %v8076_v38 = vrot.slane %v8047_v32, 1  ;;  %v8079_v39 = vrot.slane %v8047_v32, 3  ;;  %v8114_v50 = vrot.slane %v8047_v32, 2  ;;  %v462_v9 = vld [vmem:[%s11458_s3 + $0x340] sm:$0xff]  ;;  %v8182_v10 = vsel %vm86_vm3, %v347_v63, %v348_v6  ;;  %v429_v16 = vld [vmem:[%s11458_s3 + $0x238] sm:$0xff] }
 0x1ce   :  { %558 = vmatmul.mubr.f32.vlgmr.msra.gmra.mxu1 %v7997_v5  ;;  %643 = vmatmul.mubr.f32.vlgmr.msra.gmra.mxu0 %v8014_v20  ;;  %v8039_v29 = vrot.slane %v8005_v17, 1  ;;  %v8042_v30 = vrot.slane %v8005_v17, 3  ;;  %v8045_v31 = vrot.slane %v8005_v17, 2  ;;  %v312_v63 = vrot.slane %v7997_v5, 4 }
 0x1cf   :  { %5831 = vmatpush3.msra.mxu1 %v437_v21  ;;  %5875 = vmatpush3.msra.mxu0 %v469_v22  ;;  %v461_v21 = vld [vmem:[%s11458_s3 + $0x338] sm:$0xff]  ;;  %v444_v22 = vld [vmem:[%s11458_s3 + $0x2b0] sm:$0xff] }
 0x1d0   :  { %5832 = vmatprep.subr.mxu1 %v452_v23  ;;  %5876 = vmatprep.subr.mxu0 %v484_v24  ;;  %v8051_v33 = vsel %vm103_vm7, %v279_v7, %v8039_v29  ;;  %v8055_v12 = vsel %vm300_vm15, %v302_v8, %v8042_v30  ;;  %v8065_v36 = vsel %vm125_vm6, %v290_v14, %v8045_v31  ;;  %v430_v8 = vld [vmem:[%s11458_s3 + $0x240] sm:$0xff]  ;;  %v477_v14 = vld [vmem:[%s11458_s3 + $0x3b8] sm:$0xff]  ;;  %v476_v23 = vld [vmem:[%s11458_s3 + $0x3b0] sm:$0xff] }
 0x1d1   :  { %5833 = vmatpush3.msra.mxu1 %v436_v25  ;;  %5877 = vmatpush3.msra.mxu0 %v468_v26  ;;  %v8092_v44 = vsel %vm103_vm7, %v8039_v29, %v8076_v38  ;;  %v8097_v45 = vsel %vm300_vm15, %v8042_v30, %v8079_v39  ;;  %v8125_v53 = vsel %vm125_vm6, %v8045_v31, %v8114_v50  ;;  %v428_v24 = vld [vmem:[%s11458_s3 + $0x230] sm:$0xff]  ;;  %v443_v26 = vld [vmem:[%s11458_s3 + $0x2a8] sm:$0xff] }
 0x1d2   :  { %562 = vmatprep.mubr.f32.mxu1 %v8051_v33  ;;  %647 = vmatprep.mubr.f32.mxu0 %v8055_v12  ;;  %v8170_v7 = vsel %vm323_vm1, %v324_v60, %v325_v1  ;;  %v460_v25 = vld [vmem:[%s11458_s3 + $0x330] sm:$0xff]  ;;  %v455_v60 = vld [vmem:[%s11458_s3 + $0x308] sm:$0xff] }
 0x1d3   :  { %5834 = vmatprep.subr.mxu1 %v451_v34  ;;  %5878 = vmatprep.subr.mxu0 %v483_v35  ;;  %v475_v34 = vld [vmem:[%s11458_s3 + $0x3a8] sm:$0xff] }
 0x1d4   :  { %563 = vmatmul.mubr.f32.gmra.mxu1 %v7995_v3  ;;  %648 = vmatmul.mubr.f32.gmra.mxu0 %v8065_v36  ;;  %v427_v35 = vld [vmem:[%s11458_s3 + $0x228] sm:$0xff] }
 0x1d5   :  { %5835 = vmatpush3.msra.mxu1 %v435_v15  ;;  %5879 = vmatpush3.msra.mxu0 %v467_v37  ;;  %v459_v15 = vld [vmem:[%s11458_s3 + $0x328] sm:$0xff]  ;;  %v442_v37 = vld [vmem:[%s11458_s3 + $0x2a0] sm:$0xff] }
 0x1d6   :  { %567 = vmatprep.mubr.f32.mxu1 %v8092_v44  ;;  %652 = vmatprep.mubr.f32.mxu0 %v8097_v45 }
 0x1d7   :  { %5836 = vmatprep.subr.mxu1 %v450_v40  ;;  %5880 = vmatprep.subr.mxu0 %v482_v41  ;;  %v474_v40 = vld [vmem:[%s11458_s3 + $0x3a0] sm:$0xff] }
 0x1d8   :  { %5837 = vmatpush3.msra.mxu1 %v434_v46  ;;  %5881 = vmatpush3.msra.mxu0 %v466_v47  ;;  %v426_v41 = vld [vmem:[%s11458_s3 + $0x220] sm:$0xff]  ;;  %v441_v47 = vld [vmem:[%s11458_s3 + $0x298] sm:$0xff] }
 0x1d9   :  { %5838 = vmatprep.subr.mxu1 %v449_v48  ;;  %5882 = vmatprep.subr.mxu0 %v481_v49  ;;  %v458_v46 = vld [vmem:[%s11458_s3 + $0x320] sm:$0xff]  ;;  %v473_v48 = vld [vmem:[%s11458_s3 + $0x398] sm:$0xff] }
 0x1da   :  { %568 = vmatmul.mubr.f32.gmra.mxu1 %v8005_v17  ;;  %653 = vmatmul.mubr.f32.gmra.mxu0 %v8125_v53  ;;  %v425_v49 = vld [vmem:[%s11458_s3 + $0x218] sm:$0xff] }
 0x1db   :  { %5839 = vmatpush3.msra.mxu1 %v433_v51  ;;  %5883 = vmatpush3.msra.mxu0 %v465_v52  ;;  %v457_v51 = vld [vmem:[%s11458_s3 + $0x318] sm:$0xff]  ;;  %v440_v52 = vld [vmem:[%s11458_s3 + $0x290] sm:$0xff] }
 0x1dc   :  { %572 = vmatprep.mubr.f32.mxu1 %v8076_v38  ;;  %657 = vmatprep.mubr.f32.mxu0 %v8079_v39 }
 0x1dd   :  { %5840 = vmatprep.subr.mxu1 %v448_v54  ;;  %5884 = vmatprep.subr.mxu0 %v480_v55  ;;  %v472_v54 = vld [vmem:[%s11458_s3 + $0x390] sm:$0xff] }
 0x1de   :  { %5841 = vmatpush3.msra.mxu1 %v432_v56  ;;  %5885 = vmatpush3.msra.mxu0 %v464_v57  ;;  %v424_v55 = vld [vmem:[%s11458_s3 + $0x210] sm:$0xff]  ;;  %v439_v57 = vld [vmem:[%s11458_s3 + $0x288] sm:$0xff] }
 0x1df   :  { %5842 = vmatprep.subr.mxu1 %v447_v58  ;;  %5886 = vmatprep.subr.mxu0 %v479_v59  ;;  %v456_v56 = vld [vmem:[%s11458_s3 + $0x310] sm:$0xff]  ;;  %v471_v58 = vld [vmem:[%s11458_s3 + $0x388] sm:$0xff] }
 0x1e0   :  { %573 = vmatmul.mubr.f32.gmra.mxu1 %v8047_v32  ;;  %658 = vmatmul.mubr.f32.gmra.mxu0 %v8114_v50  ;;  %v423_v59 = vld [vmem:[%s11458_s3 + $0x208] sm:$0xff] }
 0x1e1   :  { %5843 = vmatpush3.msra.mxu1 %v431_v61  ;;  %5887 = vmatpush3.msra.mxu0 %v463_v62  ;;  %v438_v61 = vld [vmem:[%s11458_s3 + $0x280] sm:$0xff] }
 0x1e2   :  { %5844 = vmatprep.subr.mxu1 %v446_v0  ;;  %727 = vmatprep.mubr.f32.mxu1 %v8170_v7  ;;  %v470_v62 = vld [vmem:[%s11458_s3 + $0x380] sm:$0xff]  ;;  %v336_v0 = vrot.slane %v7997_v5, 6 }
 0x1e3   :  { %5888 = vmatprep.subr.mxu0 %v478_v4  ;;  %812 = vmatprep.mubr.f32.mxu0 %v8182_v10  ;;  %v422_v4 = vld [vmem:[%s11458_s3 + $0x200] sm:$0xff] }
 0x1e4   :  { %5845 = vmatpush3.msra.mxu1 %v430_v8  ;;  %5889 = vmatpush3.msra.mxu0 %v462_v9  ;;  %v454_v8 = vld [vmem:[%s11458_s3 + $0x300] sm:$0xff]  ;;  %v313_v9 = vrot.slane %v7995_v3, 4 }
 0x1e5   :  { %5846 = vmatprep.subr.mxu1 %v445_v13  ;;  %5890 = vmatprep.subr.mxu0 %v477_v14  ;;  %v337_v13 = vrot.slane %v7995_v3, 6  ;;  %v8286_v14 = vrot.slane %v8005_v17, 5 }
 0x1e6   :  { %5847 = vmatpush3.msra.mxu1 %v429_v16  ;;  %5891 = vmatpush3.msra.mxu0 %v461_v21  ;;  %v8289_v16 = vrot.slane %v8005_v17, 7  ;;  %v887_v21 = vld [vmem:[%s11460_s5 + $0xf8] sm:$0xff] }
 0x1e7   :  { %5848 = vmatprep.subr.mxu1 %v444_v22  ;;  %5892 = vmatprep.subr.mxu0 %v476_v23  ;;  %v919_v22 = vld [vmem:[%s11460_s5 + $0x1f8] sm:$0xff]  ;;  %v8298_v23 = vsel %vm185_vm0, %v312_v63, %v313_v9  ;;  %v8399_v63 = vrot.slane %v8047_v32, 6 }
 0x1e8   :  { %5849 = vmatpush3.msra.mxu1 %v428_v24  ;;  %5893 = vmatpush3.msra.mxu0 %v460_v25  ;;  %v8301_v24 = vsel %vm335_vm2, %v336_v0, %v337_v13  ;;  %v871_v25 = vld [vmem:[%s11460_s5 + $0x78] sm:$0xff] }
 0x1e9   :  { %5850 = vmatprep.subr.mxu1 %v443_v26  ;;  %5894 = vmatprep.subr.mxu0 %v475_v34  ;;  %v903_v26 = vld [vmem:[%s11460_s5 + $0x178] sm:$0xff]  ;;  %v8315_v34 = vsel %vm323_vm1, %v325_v1, %v8286_v14  ;;  %v8333_v1 = vrot.slane %v8005_v17, 6 }
 0x1ea   :  { %5851 = vmatpush3.msra.mxu1 %v427_v35  ;;  %5895 = vmatpush3.msra.mxu0 %v459_v15  ;;  %v8321_v35 = vsel %vm86_vm3, %v348_v6, %v8289_v16  ;;  %v886_v15 = vld [vmem:[%s11460_s5 + $0xf0] sm:$0xff]  ;;  %v883_v0 = vld [vmem:[%s11460_s5 + $0xd8] sm:$0xff] }
 0x1eb   :  { %5852 = vmatprep.subr.mxu1 %v442_v37  ;;  %5896 = vmatprep.subr.mxu0 %v474_v40  ;;  %v918_v37 = vld [vmem:[%s11460_s5 + $0x1f0] sm:$0xff]  ;;  %v8330_v40 = vrot.slane %v8005_v17, 4 }
 0x1ec   :  { %5853 = vmatpush3.msra.mxu1 %v426_v41  ;;  %5897 = vmatpush3.msra.mxu0 %v458_v46  ;;  %v870_v6 = vld [vmem:[%s11460_s5 + $0x70] sm:$0xff]  ;;  %v885_v46 = vld [vmem:[%s11460_s5 + $0xe8] sm:$0xff] }
 0x1ed   :  { %5854 = vmatprep.subr.mxu1 %v441_v47  ;;  %5898 = vmatprep.subr.mxu0 %v473_v48  ;;  %v902_v41 = vld [vmem:[%s11460_s5 + $0x170] sm:$0xff]  ;;  %v917_v47 = vld [vmem:[%s11460_s5 + $0x1e8] sm:$0xff]  ;;  %v8351_v48 = vsel %vm185_vm0, %v313_v9, %v8330_v40  ;;  %v8415_v9 = vsel %vm335_vm2, %v8333_v1, %v8399_v63 }
 0x1ee   :  { %5855 = vmatpush3.msra.mxu1 %v425_v49  ;;  %5899 = vmatpush3.msra.mxu0 %v457_v51  ;;  %v8355_v49 = vsel %vm335_vm2, %v337_v13, %v8333_v1  ;;  %v8358_v51 = vrot.slane %v8047_v32, 5  ;;  %v867_v13 = vld [vmem:[%s11460_s5 + $0x58] sm:$0xff] }
 0x1ef   :  { %5856 = vmatprep.subr.mxu1 %v440_v52  ;;  %5900 = vmatprep.subr.mxu0 %v472_v54  ;;  %v8361_v52 = vrot.slane %v8047_v32, 7  ;;  %v869_v54 = vld [vmem:[%s11460_s5 + $0x68] sm:$0xff] }
 0x1f0   :  { %5857 = vmatpush3.msra.mxu1 %v424_v55  ;;  %5901 = vmatpush3.msra.mxu0 %v456_v56  ;;  %v901_v55 = vld [vmem:[%s11460_s5 + $0x168] sm:$0xff]  ;;  %v8374_v56 = vsel %vm323_vm1, %v8286_v14, %v8358_v51 }
 0x1f1   :  { %5858 = vmatprep.subr.mxu1 %v439_v57  ;;  %5902 = vmatprep.subr.mxu0 %v471_v58  ;;  %v8379_v57 = vsel %vm86_vm3, %v8289_v16, %v8361_v52  ;;  %v884_v58 = vld [vmem:[%s11460_s5 + $0xe0] sm:$0xff] }
 0x1f2   :  { %5859 = vmatpush3.msra.mxu1 %v423_v59  ;;  %5903 = vmatpush3.msra.mxu0 %v455_v60  ;;  %v916_v59 = vld [vmem:[%s11460_s5 + $0x1e0] sm:$0xff] }
 0x1f3   :  { %5860 = vmatprep.subr.mxu1 %v438_v61  ;;  %5904 = vmatprep.subr.mxu0 %v470_v62  ;;  %v868_v60 = vld [vmem:[%s11460_s5 + $0x60] sm:$0xff]  ;;  %v8396_v62 = vrot.slane %v8047_v32, 4 }
 0x1f4   :  { %5861 = vmatpush3.msra.mxu1 %v422_v4  ;;  %5905 = vmatpush3.msra.mxu0 %v454_v8  ;;  %v900_v61 = vld [vmem:[%s11460_s5 + $0x160] sm:$0xff]  ;;  %v915_v4 = vld [vmem:[%s11460_s5 + $0x1d8] sm:$0xff] }
 0x1f5   :  { %728 = vmatmul.mubr.f32.vlgmr.msra.gmra.mxu1 %v8298_v23  ;;  %813 = vmatmul.mubr.f32.vlgmr.msra.gmra.mxu0 %v8301_v24  ;;  %v8410_v8 = vsel %vm185_vm0, %v8330_v40, %v8396_v62 }
 0x1f6   :  { %5918 = vmatprep.subr.mxu1 %v887_v21  ;;  %5959 = vmatprep.subr.mxu0 %v919_v22  ;;  %v899_v21 = vld [vmem:[%s11460_s5 + $0x158] sm:$0xff]  ;;  %v882_v22 = vld [vmem:[%s11460_s5 + $0xd0] sm:$0xff] }
 0x1f7   :  { %732 = vmatprep.mubr.f32.mxu1 %v8315_v34  ;;  %817 = vmatprep.mubr.f32.mxu0 %v8321_v35 }
 0x1f8   :  { %5919 = vmatpush3.msra.mxu1 %v871_v25  ;;  %5960 = vmatpush3.msra.mxu0 %v903_v26  ;;  %v914_v25 = vld [vmem:[%s11460_s5 + $0x1d0] sm:$0xff] }
 0x1f9   :  { %5920 = vmatprep.subr.mxu1 %v886_v15  ;;  %5961 = vmatprep.subr.mxu0 %v918_v37  ;;  %v866_v26 = vld [vmem:[%s11460_s5 + $0x50] sm:$0xff]  ;;  %v881_v37 = vld [vmem:[%s11460_s5 + $0xc8] sm:$0xff] }
 0x1fa   :  { %5921 = vmatpush3.msra.mxu1 %v870_v6  ;;  %5962 = vmatpush3.msra.mxu0 %v902_v41  ;;  %v898_v15 = vld [vmem:[%s11460_s5 + $0x150] sm:$0xff]  ;;  %v913_v6 = vld [vmem:[%s11460_s5 + $0x1c8] sm:$0xff] }
 0x1fb   :  { %733 = vmatmul.mubr.f32.gmra.mxu1 %v8351_v48  ;;  %818 = vmatmul.mubr.f32.gmra.mxu0 %v8355_v49  ;;  %v865_v41 = vld [vmem:[%s11460_s5 + $0x48] sm:$0xff] }
 0x1fc   :  { %5922 = vmatprep.subr.mxu1 %v885_v46  ;;  %5963 = vmatprep.subr.mxu0 %v917_v47  ;;  %v897_v46 = vld [vmem:[%s11460_s5 + $0x148] sm:$0xff]  ;;  %v880_v47 = vld [vmem:[%s11460_s5 + $0xc0] sm:$0xff] }
 0x1fd   :  { %737 = vmatprep.mubr.f32.mxu1 %v8374_v56  ;;  %822 = vmatprep.mubr.f32.mxu0 %v8379_v57 }
 0x1fe   :  { %5923 = vmatpush3.msra.mxu1 %v869_v54  ;;  %5964 = vmatpush3.msra.mxu0 %v901_v55  ;;  %v912_v54 = vld [vmem:[%s11460_s5 + $0x1c0] sm:$0xff] }
 0x1ff   :  { %5924 = vmatprep.subr.mxu1 %v884_v58  ;;  %5965 = vmatprep.subr.mxu0 %v916_v59  ;;  %v864_v55 = vld [vmem:[%s11460_s5 + $0x40] sm:$0xff]  ;;  %v879_v59 = vld [vmem:[%s11460_s5 + $0xb8] sm:$0xff] }
 0x200   :  { %5925 = vmatpush3.msra.mxu1 %v868_v60  ;;  %5966 = vmatpush3.msra.mxu0 %v900_v61  ;;  %v896_v58 = vld [vmem:[%s11460_s5 + $0x140] sm:$0xff]  ;;  %v911_v60 = vld [vmem:[%s11460_s5 + $0x1b8] sm:$0xff] }
 0x201   :  { %738 = vmatmul.mubr.f32.gmra.mxu1 %v8410_v8  ;;  %823 = vmatmul.mubr.f32.gmra.mxu0 %v8415_v9  ;;  %v895_v61 = vld [vmem:[%s11460_s5 + $0x138] sm:$0xff] }
 0x202   :  { %5926 = vmatprep.subr.mxu1 %v883_v0  ;;  %5967 = vmatprep.subr.mxu0 %v915_v4  ;;  %v910_v0 = vld [vmem:[%s11460_s5 + $0x1b0] sm:$0xff] }
 0x203   :  { %742 = vmatprep.mubr.f32.mxu1 %v8358_v51  ;;  %827 = vmatprep.mubr.f32.mxu0 %v8361_v52  ;;  %v862_v4 = vld [vmem:[%s11460_s5 + $0x30] sm:$0xff] }
 0x204   :  { %5927 = vmatpush3.msra.mxu1 %v867_v13  ;;  %5968 = vmatpush3.msra.mxu0 %v899_v21  ;;  %v894_v13 = vld [vmem:[%s11460_s5 + $0x130] sm:$0xff]  ;;  %v877_v21 = vld [vmem:[%s11460_s5 + $0xa8] sm:$0xff] }
 0x205   :  { %5928 = vmatprep.subr.mxu1 %v882_v22  ;;  %5969 = vmatprep.subr.mxu0 %v914_v25  ;;  %v909_v22 = vld [vmem:[%s11460_s5 + $0x1a8] sm:$0xff] }
 0x206   :  { %5929 = vmatpush3.msra.mxu1 %v866_v26  ;;  %5970 = vmatpush3.msra.mxu0 %v898_v15  ;;  %v861_v25 = vld [vmem:[%s11460_s5 + $0x28] sm:$0xff]  ;;  %v876_v15 = vld [vmem:[%s11460_s5 + $0xa0] sm:$0xff] }
 0x207   :  { %743 = vmatmul.mubr.f32.gmra.mxu1 %v8396_v62  ;;  %828 = vmatmul.mubr.f32.gmra.mxu0 %v8399_v63  ;;  %v893_v26 = vld [vmem:[%s11460_s5 + $0x128] sm:$0xff] }
 0x208   :  { %5930 = vmatprep.subr.mxu1 %v881_v37  ;;  %5971 = vmatprep.subr.mxu0 %v913_v6  ;;  %v908_v37 = vld [vmem:[%s11460_s5 + $0x1a0] sm:$0xff] }
 0x209   :  { %5931 = vmatpush3.msra.mxu1 %v865_v41  ;;  %1183 = vmatprep.mubr.f32.mxu1 %v8008_v18  ;;  %v863_v18 = vld [vmem:[%s11460_s5 + $0x38] sm:$0xff]  ;;  %v860_v6 = vld [vmem:[%s11460_s5 + $0x20] sm:$0xff] }
 0x20a   :  { %5972 = vmatpush3.msra.mxu0 %v897_v46  ;;  %1263 = vmatprep.mubr.f32.mxu0 %v8011_v19  ;;  %v878_v19 = vld [vmem:[%s11460_s5 + $0xb0] sm:$0xff]  ;;  %v892_v41 = vld [vmem:[%s11460_s5 + $0x120] sm:$0xff]  ;;  %v875_v46 = vld [vmem:[%s11460_s5 + $0x98] sm:$0xff] }
 0x20b   :  { %5932 = vmatprep.subr.mxu1 %v880_v47  ;;  %5973 = vmatprep.subr.mxu0 %v912_v54  ;;  %v907_v47 = vld [vmem:[%s11460_s5 + $0x198] sm:$0xff] }
 0x20c   :  { %5933 = vmatpush3.msra.mxu1 %v864_v55  ;;  %5974 = vmatpush3.msra.mxu0 %v896_v58  ;;  %v859_v54 = vld [vmem:[%s11460_s5 + $0x18] sm:$0xff]  ;;  %v874_v58 = vld [vmem:[%s11460_s5 + $0x90] sm:$0xff] }
 0x20d   :  { %5934 = vmatprep.subr.mxu1 %v879_v59  ;;  %5975 = vmatprep.subr.mxu0 %v911_v60  ;;  %v891_v55 = vld [vmem:[%s11460_s5 + $0x118] sm:$0xff]  ;;  %v906_v59 = vld [vmem:[%s11460_s5 + $0x190] sm:$0xff] }
 0x20e   :  { %5935 = vmatpush3.msra.mxu1 %v863_v18  ;;  %5976 = vmatpush3.msra.mxu0 %v895_v61  ;;  %v858_v60 = vld [vmem:[%s11460_s5 + $0x10] sm:$0xff]  ;;  %v873_v61 = vld [vmem:[%s11460_s5 + $0x88] sm:$0xff] }
 0x20f   :  { %5936 = vmatprep.subr.mxu1 %v878_v19  ;;  %5977 = vmatprep.subr.mxu0 %v910_v0  ;;  %v890_v18 = vld [vmem:[%s11460_s5 + $0x110] sm:$0xff]  ;;  %v905_v19 = vld [vmem:[%s11460_s5 + $0x188] sm:$0xff] }
 0x210   :  { %5937 = vmatpush3.msra.mxu1 %v862_v4  ;;  %5978 = vmatpush3.msra.mxu0 %v894_v13  ;;  %v857_v0 = vld [vmem:[%s11460_s5 + $0x8] sm:$0xff]  ;;  %v872_v13 = vld [vmem:[%s11460_s5 + $0x80] sm:$0xff] }
 0x211   :  { %5938 = vmatprep.subr.mxu1 %v877_v21  ;;  %5979 = vmatprep.subr.mxu0 %v909_v22  ;;  %v889_v4 = vld [vmem:[%s11460_s5 + $0x108] sm:$0xff]  ;;  %v904_v21 = vld [vmem:[%s11460_s5 + $0x180] sm:$0xff] }
 0x212   :  { %5939 = vmatpush3.msra.mxu1 %v861_v25  ;;  %5980 = vmatpush3.msra.mxu0 %v893_v26  ;;  %v856_v22 = vld [vmem:[%s11460_s5] sm:$0xff]  ;;  %v951_v26 = vld [vmem:[%s11460_s5 + $0x2f8] sm:$0xff] }
 0x213   :  { %5940 = vmatprep.subr.mxu1 %v876_v15  ;;  %5981 = vmatprep.subr.mxu0 %v908_v37  ;;  %v888_v25 = vld [vmem:[%s11460_s5 + $0x100] sm:$0xff]  ;;  %v983_v15 = vld [vmem:[%s11460_s5 + $0x3f8] sm:$0xff] }
 0x214   :  { %5941 = vmatpush3.msra.mxu1 %v860_v6  ;;  %5982 = vmatpush3.msra.mxu0 %v892_v41  ;;  %v935_v37 = vld [vmem:[%s11460_s5 + $0x278] sm:$0xff]  ;;  %v950_v41 = vld [vmem:[%s11460_s5 + $0x2f0] sm:$0xff] }
 0x215   :  { %5942 = vmatprep.subr.mxu1 %v875_v46  ;;  %5983 = vmatprep.subr.mxu0 %v907_v47  ;;  %v967_v6 = vld [vmem:[%s11460_s5 + $0x378] sm:$0xff]  ;;  %v966_v46 = vld [vmem:[%s11460_s5 + $0x370] sm:$0xff]  ;;  %v949_v47 = vld [vmem:[%s11460_s5 + $0x2e8] sm:$0xff] }
 0x216   :  { %5943 = vmatpush3.msra.mxu1 %v859_v54  ;;  %5984 = vmatpush3.msra.mxu0 %v891_v55  ;;  %v981_v54 = vld [vmem:[%s11460_s5 + $0x3e8] sm:$0xff] }
 0x217   :  { %5944 = vmatprep.subr.mxu1 %v874_v58  ;;  %5985 = vmatprep.subr.mxu0 %v906_v59  ;;  %v933_v55 = vld [vmem:[%s11460_s5 + $0x268] sm:$0xff]  ;;  %v948_v59 = vld [vmem:[%s11460_s5 + $0x2e0] sm:$0xff] }
 0x218   :  { %5945 = vmatpush3.msra.mxu1 %v858_v60  ;;  %5986 = vmatpush3.msra.mxu0 %v890_v18  ;;  %v965_v58 = vld [vmem:[%s11460_s5 + $0x368] sm:$0xff]  ;;  %v980_v60 = vld [vmem:[%s11460_s5 + $0x3e0] sm:$0xff] }
 0x219   :  { %5946 = vmatprep.subr.mxu1 %v873_v61  ;;  %5987 = vmatprep.subr.mxu0 %v905_v19  ;;  %v932_v18 = vld [vmem:[%s11460_s5 + $0x260] sm:$0xff]  ;;  %v947_v19 = vld [vmem:[%s11460_s5 + $0x2d8] sm:$0xff] }
 0x21a   :  { %5947 = vmatpush3.msra.mxu1 %v857_v0  ;;  %5988 = vmatpush3.msra.mxu0 %v889_v4  ;;  %v964_v61 = vld [vmem:[%s11460_s5 + $0x360] sm:$0xff]  ;;  %v963_v0 = vld [vmem:[%s11460_s5 + $0x358] sm:$0xff]  ;;  %v946_v4 = vld [vmem:[%s11460_s5 + $0x2d0] sm:$0xff] }
 0x21b   :  { %5948 = vmatprep.subr.mxu1 %v872_v13  ;;  %5989 = vmatprep.subr.mxu0 %v904_v21  ;;  %v978_v13 = vld [vmem:[%s11460_s5 + $0x3d0] sm:$0xff] }
 0x21c   :  { %5949 = vmatpush3.msra.mxu1 %v856_v22  ;;  %5990 = vmatpush3.msra.mxu0 %v888_v25  ;;  %v962_v21 = vld [vmem:[%s11460_s5 + $0x350] sm:$0xff]  ;;  %v945_v22 = vld [vmem:[%s11460_s5 + $0x2c8] sm:$0xff] }
 0x21d   :  { %1184 = vmatmul.mubr.f32.vlgmr.msra.gmra.mxu1 %v7997_v5  ;;  %1264 = vmatmul.mubr.f32.vlgmr.msra.gmra.mxu0 %v8014_v20  ;;  %v982_v5 = vld [vmem:[%s11460_s5 + $0x3f0] sm:$0xff]  ;;  %v977_v25 = vld [vmem:[%s11460_s5 + $0x3c8] sm:$0xff] }
 0x21e   :  { %6000 = vmatprep.subr.mxu1 %v951_v26  ;;  %6041 = vmatprep.subr.mxu0 %v983_v15  ;;  %v934_v20 = vld [vmem:[%s11460_s5 + $0x270] sm:$0xff]  ;;  %v961_v26 = vld [vmem:[%s11460_s5 + $0x348] sm:$0xff]  ;;  %v976_v15 = vld [vmem:[%s11460_s5 + $0x3c0] sm:$0xff] }
 0x21f   :  { %1188 = vmatprep.mubr.f32.mxu1 %v8051_v33  ;;  %1268 = vmatprep.mubr.f32.mxu0 %v8055_v12 }
 0x220   :  { %6001 = vmatpush3.msra.mxu1 %v935_v37  ;;  %6042 = vmatpush3.msra.mxu0 %v967_v6  ;;  %v928_v37 = vld [vmem:[%s11460_s5 + $0x240] sm:$0xff] }
 0x221   :  { %6002 = vmatprep.subr.mxu1 %v950_v41  ;;  %6043 = vmatprep.subr.mxu0 %v982_v5  ;;  %v960_v6 = vld [vmem:[%s11460_s5 + $0x340] sm:$0xff]  ;;  %v943_v41 = vld [vmem:[%s11460_s5 + $0x2b8] sm:$0xff] }
 0x222   :  { %6003 = vmatpush3.msra.mxu1 %v934_v20  ;;  %6044 = vmatpush3.msra.mxu0 %v966_v46  ;;  %v975_v5 = vld [vmem:[%s11460_s5 + $0x3b8] sm:$0xff] }
 0x223   :  { %1189 = vmatmul.mubr.f32.gmra.mxu1 %v7995_v3  ;;  %1269 = vmatmul.mubr.f32.gmra.mxu0 %v8065_v36  ;;  %v927_v20 = vld [vmem:[%s11460_s5 + $0x238] sm:$0xff] }
 0x224   :  { %6004 = vmatprep.subr.mxu1 %v949_v47  ;;  %6045 = vmatprep.subr.mxu0 %v981_v54  ;;  %v959_v46 = vld [vmem:[%s11460_s5 + $0x338] sm:$0xff]  ;;  %v942_v47 = vld [vmem:[%s11460_s5 + $0x2b0] sm:$0xff] }
 0x225   :  { %1193 = vmatprep.mubr.f32.mxu1 %v8039_v29  ;;  %1273 = vmatprep.mubr.f32.mxu0 %v8042_v30  ;;  %v979_v29 = vld [vmem:[%s11460_s5 + $0x3d8] sm:$0xff]  ;;  %v974_v54 = vld [vmem:[%s11460_s5 + $0x3b0] sm:$0xff] }
 0x226   :  { %6005 = vmatpush3.msra.mxu1 %v933_v55  ;;  %6046 = vmatpush3.msra.mxu0 %v965_v58  ;;  %v931_v30 = vld [vmem:[%s11460_s5 + $0x258] sm:$0xff]  ;;  %v926_v55 = vld [vmem:[%s11460_s5 + $0x230] sm:$0xff] }
 0x227   :  { %6006 = vmatprep.subr.mxu1 %v948_v59  ;;  %6047 = vmatprep.subr.mxu0 %v980_v60  ;;  %v958_v58 = vld [vmem:[%s11460_s5 + $0x330] sm:$0xff]  ;;  %v941_v59 = vld [vmem:[%s11460_s5 + $0x2a8] sm:$0xff] }
 0x228   :  { %6007 = vmatpush3.msra.mxu1 %v932_v18  ;;  %6048 = vmatpush3.msra.mxu0 %v964_v61  ;;  %v973_v60 = vld [vmem:[%s11460_s5 + $0x3a8] sm:$0xff] }
 0x229   :  { %1194 = vmatmul.mubr.f32.gmra.mxu1 %v8005_v17  ;;  %1274 = vmatmul.mubr.f32.gmra.mxu0 %v8045_v31  ;;  %v930_v31 = vld [vmem:[%s11460_s5 + $0x250] sm:$0xff]  ;;  %v925_v18 = vld [vmem:[%s11460_s5 + $0x228] sm:$0xff] }
 0x22a   :  { %6008 = vmatprep.subr.mxu1 %v947_v19  ;;  %6049 = vmatprep.subr.mxu0 %v979_v29  ;;  %v957_v61 = vld [vmem:[%s11460_s5 + $0x328] sm:$0xff]  ;;  %v940_v19 = vld [vmem:[%s11460_s5 + $0x2a0] sm:$0xff] }
 0x22b   :  { %6009 = vmatpush3.msra.mxu1 %v931_v30  ;;  %1343 = vmatprep.mubr.f32.mxu1 %v8170_v7  ;;  %v929_v7 = vld [vmem:[%s11460_s5 + $0x248] sm:$0xff]  ;;  %v972_v29 = vld [vmem:[%s11460_s5 + $0x3a0] sm:$0xff] }
 0x22c   :  { %6050 = vmatpush3.msra.mxu0 %v963_v0  ;;  %1423 = vmatprep.mubr.f32.mxu0 %v8182_v10  ;;  %v944_v10 = vld [vmem:[%s11460_s5 + $0x2c0] sm:$0xff] }
 0x22d   :  { %6010 = vmatprep.subr.mxu1 %v946_v4  ;;  %6051 = vmatprep.subr.mxu0 %v978_v13  ;;  %v924_v30 = vld [vmem:[%s11460_s5 + $0x220] sm:$0xff]  ;;  %v939_v4 = vld [vmem:[%s11460_s5 + $0x298] sm:$0xff] }
 0x22e   :  { %6011 = vmatpush3.msra.mxu1 %v930_v31  ;;  %6052 = vmatpush3.msra.mxu0 %v962_v21  ;;  %v956_v0 = vld [vmem:[%s11460_s5 + $0x320] sm:$0xff]  ;;  %v971_v13 = vld [vmem:[%s11460_s5 + $0x398] sm:$0xff] }
 0x22f   :  { %6012 = vmatprep.subr.mxu1 %v945_v22  ;;  %6053 = vmatprep.subr.mxu0 %v977_v25  ;;  %v923_v31 = vld [vmem:[%s11460_s5 + $0x218] sm:$0xff]  ;;  %v938_v22 = vld [vmem:[%s11460_s5 + $0x290] sm:$0xff] }
 0x230   :  { %6013 = vmatpush3.msra.mxu1 %v929_v7  ;;  %6054 = vmatpush3.msra.mxu0 %v961_v26  ;;  %v955_v21 = vld [vmem:[%s11460_s5 + $0x318] sm:$0xff]  ;;  %v970_v25 = vld [vmem:[%s11460_s5 + $0x390] sm:$0xff] }
 0x231   :  { %6014 = vmatprep.subr.mxu1 %v944_v10  ;;  %6055 = vmatprep.subr.mxu0 %v976_v15  ;;  %v922_v7 = vld [vmem:[%s11460_s5 + $0x210] sm:$0xff]  ;;  %v937_v10 = vld [vmem:[%s11460_s5 + $0x288] sm:$0xff] }
 0x232   :  { %6015 = vmatpush3.msra.mxu1 %v928_v37  ;;  %6056 = vmatpush3.msra.mxu0 %v960_v6  ;;  %v954_v26 = vld [vmem:[%s11460_s5 + $0x310] sm:$0xff]  ;;  %v969_v15 = vld [vmem:[%s11460_s5 + $0x388] sm:$0xff] }
 0x233   :  { %6016 = vmatprep.subr.mxu1 %v943_v41  ;;  %6057 = vmatprep.subr.mxu0 %v975_v5  ;;  %v921_v37 = vld [vmem:[%s11460_s5 + $0x208] sm:$0xff]  ;;  %v936_v41 = vld [vmem:[%s11460_s5 + $0x280] sm:$0xff] }
 0x234   :  { %6017 = vmatpush3.msra.mxu1 %v927_v20  ;;  %6058 = vmatpush3.msra.mxu0 %v959_v46  ;;  %v953_v6 = vld [vmem:[%s11460_s5 + $0x308] sm:$0xff]  ;;  %v968_v5 = vld [vmem:[%s11460_s5 + $0x380] sm:$0xff] }
 0x235   :  { %6018 = vmatprep.subr.mxu1 %v942_v47  ;;  %6059 = vmatprep.subr.mxu0 %v974_v54  ;;  %v920_v20 = vld [vmem:[%s11460_s5 + $0x200] sm:$0xff]  ;;  %v1015_v47 = vld [vmem:[%s11460_s5 + $0x4f8] sm:$0xff] }
 0x236   :  { %6019 = vmatpush3.msra.mxu1 %v926_v55  ;;  %6060 = vmatpush3.msra.mxu0 %v958_v58  ;;  %v952_v46 = vld [vmem:[%s11460_s5 + $0x300] sm:$0xff]  ;;  %v1047_v54 = vld [vmem:[%s11460_s5 + $0x5f8] sm:$0xff] }
 0x237   :  { %6020 = vmatprep.subr.mxu1 %v941_v59  ;;  %6061 = vmatprep.subr.mxu0 %v973_v60  ;;  %v999_v55 = vld [vmem:[%s11460_s5 + $0x478] sm:$0xff]  ;;  %v1014_v59 = vld [vmem:[%s11460_s5 + $0x4f0] sm:$0xff] }
 0x238   :  { %6021 = vmatpush3.msra.mxu1 %v925_v18  ;;  %6062 = vmatpush3.msra.mxu0 %v957_v61  ;;  %v1031_v58 = vld [vmem:[%s11460_s5 + $0x578] sm:$0xff]  ;;  %v1030_v60 = vld [vmem:[%s11460_s5 + $0x570] sm:$0xff]  ;;  %v1013_v18 = vld [vmem:[%s11460_s5 + $0x4e8] sm:$0xff] }
 0x239   :  { %6022 = vmatprep.subr.mxu1 %v940_v19  ;;  %6063 = vmatprep.subr.mxu0 %v972_v29  ;;  %v1045_v61 = vld [vmem:[%s11460_s5 + $0x5e8] sm:$0xff] }
 0x23a   :  { %6023 = vmatpush3.msra.mxu1 %v924_v30  ;;  %6064 = vmatpush3.msra.mxu0 %v956_v0  ;;  %v997_v19 = vld [vmem:[%s11460_s5 + $0x468] sm:$0xff]  ;;  %v1012_v30 = vld [vmem:[%s11460_s5 + $0x4e0] sm:$0xff] }
 0x23b   :  { %6024 = vmatprep.subr.mxu1 %v939_v4  ;;  %6065 = vmatprep.subr.mxu0 %v971_v13  ;;  %v1029_v29 = vld [vmem:[%s11460_s5 + $0x568] sm:$0xff]  ;;  %v1044_v0 = vld [vmem:[%s11460_s5 + $0x5e0] sm:$0xff] }
 0x23c   :  { %6025 = vmatpush3.msra.mxu1 %v923_v31  ;;  %6066 = vmatpush3.msra.mxu0 %v955_v21  ;;  %v996_v4 = vld [vmem:[%s11460_s5 + $0x460] sm:$0xff]  ;;  %v1011_v31 = vld [vmem:[%s11460_s5 + $0x4d8] sm:$0xff] }
 0x23d   :  { %6026 = vmatprep.subr.mxu1 %v938_v22  ;;  %6067 = vmatprep.subr.mxu0 %v970_v25  ;;  %v1028_v13 = vld [vmem:[%s11460_s5 + $0x560] sm:$0xff]  ;;  %v1027_v21 = vld [vmem:[%s11460_s5 + $0x558] sm:$0xff]  ;;  %v1010_v22 = vld [vmem:[%s11460_s5 + $0x4d0] sm:$0xff] }
 0x23e   :  { %6027 = vmatpush3.msra.mxu1 %v922_v7  ;;  %6068 = vmatpush3.msra.mxu0 %v954_v26  ;;  %v1042_v25 = vld [vmem:[%s11460_s5 + $0x5d0] sm:$0xff]  ;;  %v1009_v7 = vld [vmem:[%s11460_s5 + $0x4c8] sm:$0xff] }
 0x23f   :  { %6028 = vmatprep.subr.mxu1 %v937_v10  ;;  %6069 = vmatprep.subr.mxu0 %v969_v15  ;;  %v1041_v26 = vld [vmem:[%s11460_s5 + $0x5c8] sm:$0xff]  ;;  %v1040_v15 = vld [vmem:[%s11460_s5 + $0x5c0] sm:$0xff] }
 0x240   :  { %6029 = vmatpush3.msra.mxu1 %v921_v37  ;;  %6070 = vmatpush3.msra.mxu0 %v953_v6  ;;  %v1025_v10 = vld [vmem:[%s11460_s5 + $0x548] sm:$0xff]  ;;  %v992_v37 = vld [vmem:[%s11460_s5 + $0x440] sm:$0xff] }
 0x241   :  { %6030 = vmatprep.subr.mxu1 %v936_v41  ;;  %6071 = vmatprep.subr.mxu0 %v968_v5  ;;  %v1024_v6 = vld [vmem:[%s11460_s5 + $0x540] sm:$0xff]  ;;  %v1007_v41 = vld [vmem:[%s11460_s5 + $0x4b8] sm:$0xff] }
 0x242   :  { %6031 = vmatpush3.msra.mxu1 %v920_v20  ;;  %6072 = vmatpush3.msra.mxu0 %v952_v46  ;;  %v1039_v5 = vld [vmem:[%s11460_s5 + $0x5b8] sm:$0xff] }
 0x243   :  { %1344 = vmatmul.mubr.f32.vlgmr.msra.gmra.mxu1 %v8298_v23  ;;  %1424 = vmatmul.mubr.f32.vlgmr.msra.gmra.mxu0 %v8301_v24  ;;  %v1046_v23 = vld [vmem:[%s11460_s5 + $0x5f0] sm:$0xff]  ;;  %v991_v20 = vld [vmem:[%s11460_s5 + $0x438] sm:$0xff] }
 0x244   :  { %6082 = vmatprep.subr.mxu1 %v1015_v47  ;;  %6123 = vmatprep.subr.mxu0 %v1047_v54  ;;  %v998_v24 = vld [vmem:[%s11460_s5 + $0x470] sm:$0xff]  ;;  %v1023_v46 = vld [vmem:[%s11460_s5 + $0x538] sm:$0xff] }
 0x245   :  { %1348 = vmatprep.mubr.f32.mxu1 %v8315_v34  ;;  %1428 = vmatprep.mubr.f32.mxu0 %v8321_v35  ;;  %v1006_v47 = vld [vmem:[%s11460_s5 + $0x4b0] sm:$0xff] }
 0x246   :  { %6083 = vmatpush3.msra.mxu1 %v999_v55  ;;  %6124 = vmatpush3.msra.mxu0 %v1031_v58  ;;  %v1038_v54 = vld [vmem:[%s11460_s5 + $0x5b0] sm:$0xff] }
 0x247   :  { %6084 = vmatprep.subr.mxu1 %v1014_v59  ;;  %6125 = vmatprep.subr.mxu0 %v1046_v23  ;;  %v990_v55 = vld [vmem:[%s11460_s5 + $0x430] sm:$0xff]  ;;  %v1005_v59 = vld [vmem:[%s11460_s5 + $0x4a8] sm:$0xff] }
 0x248   :  { %6085 = vmatpush3.msra.mxu1 %v998_v24  ;;  %6126 = vmatpush3.msra.mxu0 %v1030_v60  ;;  %v1022_v58 = vld [vmem:[%s11460_s5 + $0x530] sm:$0xff]  ;;  %v1037_v23 = vld [vmem:[%s11460_s5 + $0x5a8] sm:$0xff] }
 0x249   :  { %1349 = vmatmul.mubr.f32.gmra.mxu1 %v8351_v48  ;;  %1429 = vmatmul.mubr.f32.gmra.mxu0 %v8355_v49  ;;  %v989_v24 = vld [vmem:[%s11460_s5 + $0x428] sm:$0xff] }
 0x24a   :  { %6086 = vmatprep.subr.mxu1 %v1013_v18  ;;  %6127 = vmatprep.subr.mxu0 %v1045_v61  ;;  %v1021_v60 = vld [vmem:[%s11460_s5 + $0x528] sm:$0xff]  ;;  %v1004_v18 = vld [vmem:[%s11460_s5 + $0x4a0] sm:$0xff] }
 0x24b   :  { %1353 = vmatprep.mubr.f32.mxu1 %v8286_v14  ;;  %1433 = vmatprep.mubr.f32.mxu0 %v8289_v16  ;;  %v1043_v14 = vld [vmem:[%s11460_s5 + $0x5d8] sm:$0xff]  ;;  %v1036_v61 = vld [vmem:[%s11460_s5 + $0x5a0] sm:$0xff] }
 0x24c   :  { %6087 = vmatpush3.msra.mxu1 %v997_v19  ;;  %6128 = vmatpush3.msra.mxu0 %v1029_v29  ;;  %v995_v16 = vld [vmem:[%s11460_s5 + $0x458] sm:$0xff]  ;;  %v988_v19 = vld [vmem:[%s11460_s5 + $0x420] sm:$0xff] }
 0x24d   :  { %6088 = vmatprep.subr.mxu1 %v1012_v30  ;;  %6129 = vmatprep.subr.mxu0 %v1044_v0  ;;  %v1020_v29 = vld [vmem:[%s11460_s5 + $0x520] sm:$0xff]  ;;  %v1003_v30 = vld [vmem:[%s11460_s5 + $0x498] sm:$0xff] }
 0x24e   :  { %6089 = vmatpush3.msra.mxu1 %v996_v4  ;;  %6130 = vmatpush3.msra.mxu0 %v1028_v13  ;;  %v1035_v0 = vld [vmem:[%s11460_s5 + $0x598] sm:$0xff] }
 0x24f   :  { %1354 = vmatmul.mubr.f32.gmra.mxu1 %v8330_v40  ;;  %1434 = vmatmul.mubr.f32.gmra.mxu0 %v8333_v1  ;;  %v994_v40 = vld [vmem:[%s11460_s5 + $0x450] sm:$0xff]  ;;  %v987_v4 = vld [vmem:[%s11460_s5 + $0x418] sm:$0xff] }
 0x250   :  { %6090 = vmatprep.subr.mxu1 %v1011_v31  ;;  %6131 = vmatprep.subr.mxu0 %v1043_v14  ;;  %v1026_v1 = vld [vmem:[%s11460_s5 + $0x550] sm:$0xff]  ;;  %v1019_v13 = vld [vmem:[%s11460_s5 + $0x518] sm:$0xff] }
 0x251   :  { %6091 = vmatpush3.msra.mxu1 %v995_v16  ;;  %1503 = vmatprep.mubr.f32.mxu1 %v8051_v33  ;;  %v993_v33 = vld [vmem:[%s11460_s5 + $0x448] sm:$0xff]  ;;  %v1002_v31 = vld [vmem:[%s11460_s5 + $0x490] sm:$0xff] }
 0x252   :  { %6132 = vmatpush3.msra.mxu0 %v1027_v21  ;;  %1583 = vmatprep.mubr.f32.mxu0 %v8055_v12  ;;  %v1008_v12 = vld [vmem:[%s11460_s5 + $0x4c0] sm:$0xff]  ;;  %v1034_v14 = vld [vmem:[%s11460_s5 + $0x590] sm:$0xff] }
 0x253   :  { %6092 = vmatprep.subr.mxu1 %v1010_v22  ;;  %6133 = vmatprep.subr.mxu0 %v1042_v25  ;;  %v986_v16 = vld [vmem:[%s11460_s5 + $0x410] sm:$0xff]  ;;  %v1001_v22 = vld [vmem:[%s11460_s5 + $0x488] sm:$0xff] }
 0x254   :  { %6093 = vmatpush3.msra.mxu1 %v994_v40  ;;  %6134 = vmatpush3.msra.mxu0 %v1026_v1  ;;  %v1018_v21 = vld [vmem:[%s11460_s5 + $0x510] sm:$0xff]  ;;  %v1033_v25 = vld [vmem:[%s11460_s5 + $0x588] sm:$0xff] }
 0x255   :  { %6094 = vmatprep.subr.mxu1 %v1009_v7  ;;  %6135 = vmatprep.subr.mxu0 %v1041_v26  ;;  %v985_v40 = vld [vmem:[%s11460_s5 + $0x408] sm:$0xff]  ;;  %v1000_v7 = vld [vmem:[%s11460_s5 + $0x480] sm:$0xff] }
 0x256   :  { %6095 = vmatpush3.msra.mxu1 %v993_v33  ;;  %6136 = vmatpush3.msra.mxu0 %v1025_v10  ;;  %v1017_v1 = vld [vmem:[%s11460_s5 + $0x508] sm:$0xff]  ;;  %v1032_v26 = vld [vmem:[%s11460_s5 + $0x580] sm:$0xff] }
 0x257   :  { %6096 = vmatprep.subr.mxu1 %v1008_v12  ;;  %6137 = vmatprep.subr.mxu0 %v1040_v15  ;;  %v984_v33 = vld [vmem:[%s11460_s5 + $0x400] sm:$0xff]  ;;  %v1079_v12 = vld [vmem:[%s11460_s5 + $0x6f8] sm:$0xff] }
 0x258   :  { %6097 = vmatpush3.msra.mxu1 %v992_v37  ;;  %6138 = vmatpush3.msra.mxu0 %v1024_v6  ;;  %v1016_v10 = vld [vmem:[%s11460_s5 + $0x500] sm:$0xff]  ;;  %v1111_v15 = vld [vmem:[%s11460_s5 + $0x7f8] sm:$0xff] }
 0x259   :  { %6098 = vmatprep.subr.mxu1 %v1007_v41  ;;  %6139 = vmatprep.subr.mxu0 %v1039_v5  ;;  %v1063_v37 = vld [vmem:[%s11460_s5 + $0x678] sm:$0xff]  ;;  %v1078_v41 = vld [vmem:[%s11460_s5 + $0x6f0] sm:$0xff] }
 0x25a   :  { %6099 = vmatpush3.msra.mxu1 %v991_v20  ;;  %6140 = vmatpush3.msra.mxu0 %v1023_v46  ;;  %v1095_v6 = vld [vmem:[%s11460_s5 + $0x778] sm:$0xff]  ;;  %v1094_v5 = vld [vmem:[%s11460_s5 + $0x770] sm:$0xff]  ;;  %v1077_v20 = vld [vmem:[%s11460_s5 + $0x6e8] sm:$0xff] }
 0x25b   :  { %6100 = vmatprep.subr.mxu1 %v1006_v47  ;;  %6141 = vmatprep.subr.mxu0 %v1038_v54  ;;  %v1093_v46 = vld [vmem:[%s11460_s5 + $0x768] sm:$0xff]  ;;  %v1076_v47 = vld [vmem:[%s11460_s5 + $0x6e0] sm:$0xff] }
 0x25c   :  { %6101 = vmatpush3.msra.mxu1 %v990_v55  ;;  %6142 = vmatpush3.msra.mxu0 %v1022_v58  ;;  %v1092_v54 = vld [vmem:[%s11460_s5 + $0x760] sm:$0xff]  ;;  %v1075_v55 = vld [vmem:[%s11460_s5 + $0x6d8] sm:$0xff] }
 0x25d   :  { %6102 = vmatprep.subr.mxu1 %v1005_v59  ;;  %6143 = vmatprep.subr.mxu0 %v1037_v23  ;;  %v1091_v58 = vld [vmem:[%s11460_s5 + $0x758] sm:$0xff]  ;;  %v1074_v59 = vld [vmem:[%s11460_s5 + $0x6d0] sm:$0xff] }
 0x25e   :  { %6103 = vmatpush3.msra.mxu1 %v989_v24  ;;  %6144 = vmatpush3.msra.mxu0 %v1021_v60  ;;  %v1106_v23 = vld [vmem:[%s11460_s5 + $0x7d0] sm:$0xff]  ;;  %v1073_v24 = vld [vmem:[%s11460_s5 + $0x6c8] sm:$0xff] }
 0x25f   :  { %6104 = vmatprep.subr.mxu1 %v1004_v18  ;;  %6145 = vmatprep.subr.mxu0 %v1036_v61  ;;  %v1105_v60 = vld [vmem:[%s11460_s5 + $0x7c8] sm:$0xff]  ;;  %v1104_v61 = vld [vmem:[%s11460_s5 + $0x7c0] sm:$0xff] }
 0x260   :  { %6105 = vmatpush3.msra.mxu1 %v988_v19  ;;  %6146 = vmatpush3.msra.mxu0 %v1020_v29  ;;  %v1089_v18 = vld [vmem:[%s11460_s5 + $0x748] sm:$0xff]  ;;  %v1056_v19 = vld [vmem:[%s11460_s5 + $0x640] sm:$0xff] }
 0x261   :  { %6106 = vmatprep.subr.mxu1 %v1003_v30  ;;  %6147 = vmatprep.subr.mxu0 %v1035_v0  ;;  %v1088_v29 = vld [vmem:[%s11460_s5 + $0x740] sm:$0xff]  ;;  %v1071_v30 = vld [vmem:[%s11460_s5 + $0x6b8] sm:$0xff] }
 0x262   :  { %6107 = vmatpush3.msra.mxu1 %v987_v4  ;;  %6148 = vmatpush3.msra.mxu0 %v1019_v13  ;;  %v1103_v0 = vld [vmem:[%s11460_s5 + $0x7b8] sm:$0xff] }
 0x263   :  { %6108 = vmatprep.subr.mxu1 %v1002_v31  ;;  %6149 = vmatprep.subr.mxu0 %v1034_v14  ;;  %v1055_v4 = vld [vmem:[%s11460_s5 + $0x638] sm:$0xff]  ;;  %v1070_v31 = vld [vmem:[%s11460_s5 + $0x6b0] sm:$0xff] }
 0x264   :  { %6109 = vmatpush3.msra.mxu1 %v986_v16  ;;  %6150 = vmatpush3.msra.mxu0 %v1018_v21  ;;  %v1087_v13 = vld [vmem:[%s11460_s5 + $0x738] sm:$0xff]  ;;  %v1102_v14 = vld [vmem:[%s11460_s5 + $0x7b0] sm:$0xff] }
 0x265   :  { %6110 = vmatprep.subr.mxu1 %v1001_v22  ;;  %6151 = vmatprep.subr.mxu0 %v1033_v25  ;;  %v1054_v16 = vld [vmem:[%s11460_s5 + $0x630] sm:$0xff]  ;;  %v1069_v22 = vld [vmem:[%s11460_s5 + $0x6a8] sm:$0xff] }
 0x266   :  { %6111 = vmatpush3.msra.mxu1 %v985_v40  ;;  %6152 = vmatpush3.msra.mxu0 %v1017_v1  ;;  %v1086_v21 = vld [vmem:[%s11460_s5 + $0x730] sm:$0xff]  ;;  %v1101_v25 = vld [vmem:[%s11460_s5 + $0x7a8] sm:$0xff] }
 0x267   :  { %6112 = vmatprep.subr.mxu1 %v1000_v7  ;;  %6153 = vmatprep.subr.mxu0 %v1032_v26  ;;  %v1053_v40 = vld [vmem:[%s11460_s5 + $0x628] sm:$0xff]  ;;  %v1068_v7 = vld [vmem:[%s11460_s5 + $0x6a0] sm:$0xff] }
 0x268   :  { %6113 = vmatpush3.msra.mxu1 %v984_v33  ;;  %6154 = vmatpush3.msra.mxu0 %v1016_v10  ;;  %v1085_v1 = vld [vmem:[%s11460_s5 + $0x728] sm:$0xff]  ;;  %v1100_v26 = vld [vmem:[%s11460_s5 + $0x7a0] sm:$0xff] }
 0x269   :  { %1504 = vmatmul.mubr.f32.vlgmr.msra.gmra.mxu1 %v7995_v3  ;;  %1584 = vmatmul.mubr.f32.vlgmr.msra.gmra.mxu0 %v8065_v36  ;;  %v1110_v3 = vld [vmem:[%s11460_s5 + $0x7f0] sm:$0xff]  ;;  %v1052_v33 = vld [vmem:[%s11460_s5 + $0x620] sm:$0xff] }
 0x26a   :  { %6164 = vmatprep.subr.mxu1 %v1079_v12  ;;  %6205 = vmatprep.subr.mxu0 %v1111_v15  ;;  %v1062_v36 = vld [vmem:[%s11460_s5 + $0x670] sm:$0xff]  ;;  %v1084_v10 = vld [vmem:[%s11460_s5 + $0x720] sm:$0xff]  ;;  %v1067_v12 = vld [vmem:[%s11460_s5 + $0x698] sm:$0xff] }
 0x26b   :  { %1508 = vmatprep.mubr.f32.mxu1 %v8092_v44  ;;  %1588 = vmatprep.mubr.f32.mxu0 %v8097_v45  ;;  %v1109_v44 = vld [vmem:[%s11460_s5 + $0x7e8] sm:$0xff]  ;;  %v1099_v15 = vld [vmem:[%s11460_s5 + $0x798] sm:$0xff] }
 0x26c   :  { %6165 = vmatpush3.msra.mxu1 %v1063_v37  ;;  %6206 = vmatpush3.msra.mxu0 %v1095_v6  ;;  %v1061_v45 = vld [vmem:[%s11460_s5 + $0x668] sm:$0xff]  ;;  %v1051_v37 = vld [vmem:[%s11460_s5 + $0x618] sm:$0xff] }
 0x26d   :  { %6166 = vmatprep.subr.mxu1 %v1078_v41  ;;  %6207 = vmatprep.subr.mxu0 %v1110_v3  ;;  %v1083_v6 = vld [vmem:[%s11460_s5 + $0x718] sm:$0xff]  ;;  %v1066_v41 = vld [vmem:[%s11460_s5 + $0x690] sm:$0xff] }
 0x26e   :  { %6167 = vmatpush3.msra.mxu1 %v1062_v36  ;;  %6208 = vmatpush3.msra.mxu0 %v1094_v5  ;;  %v1098_v3 = vld [vmem:[%s11460_s5 + $0x790] sm:$0xff] }
 0x26f   :  { %1509 = vmatmul.mubr.f32.gmra.mxu1 %v8005_v17  ;;  %1589 = vmatmul.mubr.f32.gmra.mxu0 %v8125_v53  ;;  %v1108_v17 = vld [vmem:[%s11460_s5 + $0x7e0] sm:$0xff]  ;;  %v1050_v36 = vld [vmem:[%s11460_s5 + $0x610] sm:$0xff] }
 0x270   :  { %6168 = vmatprep.subr.mxu1 %v1077_v20  ;;  %6209 = vmatprep.subr.mxu0 %v1109_v44  ;;  %v1060_v53 = vld [vmem:[%s11460_s5 + $0x660] sm:$0xff]  ;;  %v1082_v5 = vld [vmem:[%s11460_s5 + $0x710] sm:$0xff]  ;;  %v1065_v20 = vld [vmem:[%s11460_s5 + $0x688] sm:$0xff] }
 0x271   :  { %1513 = vmatprep.mubr.f32.mxu1 %v8076_v38  ;;  %1593 = vmatprep.mubr.f32.mxu0 %v8079_v39  ;;  %v1107_v38 = vld [vmem:[%s11460_s5 + $0x7d8] sm:$0xff]  ;;  %v1097_v44 = vld [vmem:[%s11460_s5 + $0x788] sm:$0xff] }
 0x272   :  { %6169 = vmatpush3.msra.mxu1 %v1061_v45  ;;  %6210 = vmatpush3.msra.mxu0 %v1093_v46  ;;  %v1059_v39 = vld [vmem:[%s11460_s5 + $0x658] sm:$0xff]  ;;  %v1049_v45 = vld [vmem:[%s11460_s5 + $0x608] sm:$0xff] }
 0x273   :  { %6170 = vmatprep.subr.mxu1 %v1076_v47  ;;  %6211 = vmatprep.subr.mxu0 %v1108_v17  ;;  %v1081_v46 = vld [vmem:[%s11460_s5 + $0x708] sm:$0xff]  ;;  %v1064_v47 = vld [vmem:[%s11460_s5 + $0x680] sm:$0xff] }
 0x274   :  { %6171 = vmatpush3.msra.mxu1 %v1060_v53  ;;  %6212 = vmatpush3.msra.mxu0 %v1092_v54  ;;  %v1096_v17 = vld [vmem:[%s11460_s5 + $0x780] sm:$0xff] }
 0x275   :  { %1514 = vmatmul.mubr.f32.gmra.mxu1 %v8047_v32  ;;  %1594 = vmatmul.mubr.f32.gmra.mxu0 %v8114_v50  ;;  %v1058_v32 = vld [vmem:[%s11460_s5 + $0x650] sm:$0xff]  ;;  %v1048_v53 = vld [vmem:[%s11460_s5 + $0x600] sm:$0xff] }
 0x276   :  { %6172 = vmatprep.subr.mxu1 %v1075_v55  ;;  %6213 = vmatprep.subr.mxu0 %v1107_v38  ;;  %v1090_v50 = vld [vmem:[%s11460_s5 + $0x750] sm:$0xff]  ;;  %v1080_v54 = vld [vmem:[%s11460_s5 + $0x700] sm:$0xff] }
 0x277   :  { %6173 = vmatpush3.msra.mxu1 %v1059_v39  ;;  %1663 = vmatprep.mubr.f32.mxu1 %v8315_v34  ;;  %v1057_v34 = vld [vmem:[%s11460_s5 + $0x648] sm:$0xff]  ;;  %v9175_v39 = vpop.permute.xlu0 %7011 }
 0x278   :  { %6214 = vmatpush3.msra.mxu0 %v1091_v58  ;;  %1743 = vmatprep.mubr.f32.mxu0 %v8321_v35  ;;  %v1072_v35 = vld [vmem:[%s11460_s5 + $0x6c0] sm:$0xff]  ;;  %v7158_v58 = vld [vmem:[%s11456_s1 + $0x38] sm:$0xf] }
 0x279   :  { %6174 = vmatprep.subr.mxu1 %v1074_v59  ;;  %6215 = vmatprep.subr.mxu0 %v1106_v23  ;;  %v9187_v59 = vld [vmem:[%s11459_s4] ss:$0 sm:$0xff] }
 0x27a   :  { %6175 = vmatpush3.msra.mxu1 %v1058_v32  ;;  %6216 = vmatpush3.msra.mxu0 %v1090_v50  ;;  %v9191_v50 = vpop.permute.xlu1 %7016 }
 0x27b   :  { %6176 = vmatprep.subr.mxu1 %v1073_v24  ;;  %6217 = vmatprep.subr.mxu0 %v1105_v60  ;;  %v7013_v24 = vunpack.i.l.bf16 %v9175_v39  ;;  %v7160_v60 = vld [vmem:[%s11458_s3 + $0xf8] sm:$0xff] }
 0x27c   :  { %6177 = vmatpush3.msra.mxu1 %v1057_v34  ;;  %6218 = vmatpush3.msra.mxu0 %v1089_v18  ;;  %v7161_v34 = vld [vmem:[%s11456_s1 + $0x28] sm:$0xff] }
 0x27d   :  { %6178 = vmatprep.subr.mxu1 %v1072_v35  ;;  %6219 = vmatprep.subr.mxu0 %v1104_v61  ;;  %v7018_v61 = vunpack.i.l.bf16 %v9191_v50 }
 0x27e   :  { %6179 = vmatpush3.msra.mxu1 %v1056_v19  ;;  %6220 = vmatpush3.msra.mxu0 %v1088_v29 }
 0x27f   :  { %6180 = vmatprep.subr.mxu1 %v1071_v30  ;;  %6221 = vmatprep.subr.mxu0 %v1103_v0  ;;  %v7162_v30 = vld [vmem:[%s11458_s3 + $0x78] sm:$0xff]  ;;  %v7022_v0 = vpop.permute.xlu0 %7021 }
 0x280   :  { %6181 = vmatpush3.msra.mxu1 %v1055_v4  ;;  %6222 = vmatpush3.msra.mxu0 %v1087_v13  ;;  %v7014_v13 = vunpack.i.h.bf16 %v9175_v39  ;;  %v7175_v39 = vld [vmem:[%s11458_s3 + $0x1f8] sm:$0xff] }
 0x281   :  { %6182 = vmatprep.subr.mxu1 %v1070_v31  ;;  %6223 = vmatprep.subr.mxu0 %v1102_v14  ;;  %v9224_v31 = vpop.permute.xlu1 %7026  ;;  %v7165_v14 = vld [vmem:[%s11456_s1 + $0x18] sm:$0xff] }
 0x282   :  { %6183 = vmatpush3.msra.mxu1 %v1054_v16  ;;  %6224 = vmatpush3.msra.mxu0 %v1086_v21  ;;  %v7023_v21 = vunpack.i.l.bf16 %v7022_v0 }
 0x283   :  { %6184 = vmatprep.subr.mxu1 %v1069_v22  ;;  %6225 = vmatprep.subr.mxu0 %v1101_v25 }
 0x284   :  { %6185 = vmatpush3.msra.mxu1 %v1053_v40  ;;  %6226 = vmatpush3.msra.mxu0 %v1085_v1  ;;  %v7166_v40 = vld [vmem:[%s11456_s1 + $0x10] sm:$0xff] }
 0x285   :  { %6186 = vmatprep.subr.mxu1 %v1068_v7  ;;  %6227 = vmatprep.subr.mxu0 %v1100_v26  ;;  %v7167_v1 = vld [vmem:[%s11458_s3 + $0x70] sm:$0xff]  ;;  %v7019_v7 = vunpack.i.h.bf16 %v9191_v50  ;;  %v1868_v26 = vsel %vm147_vm8, %v7760_v27, %v7014_v13  ;;  %v7170_v27 = vld [vmem:[%s11458_s3 + $0x68] sm:$0xff]  ;;  %v7178_v50 = vld [vmem:[%s11458_s3 + $0x58] sm:$0xff] }
 0x286   :  { %6187 = vmatpush3.msra.mxu1 %v1052_v33  ;;  %6228 = vmatpush3.msra.mxu0 %v1084_v10  ;;  %v7193_v13 = vld [vmem:[%s11458_s3 + $0xb8] sm:$0xff] }
 0x287   :  { %6188 = vmatprep.subr.mxu1 %v1067_v12  ;;  %6229 = vmatprep.subr.mxu0 %v1099_v15  ;;  %v7168_v12 = vld [vmem:[%s11458_s3 + $0xe8] sm:$0xff]  ;;  %v7028_v15 = vunpack.i.l.bf16 %v9224_v31 }
 0x288   :  { %6189 = vmatpush3.msra.mxu1 %v1051_v37  ;;  %6230 = vmatpush3.msra.mxu0 %v1083_v6  ;;  %v7024_v37 = vunpack.i.h.bf16 %v7022_v0  ;;  %v7169_v6 = vld [vmem:[%s11456_s1 + $0x8] sm:$0xff]  ;;  %v7189_v0 = vld [vmem:[%s11458_s3 + $0xc0] sm:$0xff] }
 0x289   :  { %6190 = vmatprep.subr.mxu1 %v1066_v41  ;;  %6231 = vmatprep.subr.mxu0 %v1098_v3 }
 0x28a   :  { %6191 = vmatpush3.msra.mxu1 %v1050_v36  ;;  %6232 = vmatpush3.msra.mxu0 %v1082_v5  ;;  %v1869_v36 = vsel %vm147_vm8, %v7791_v42, %v7023_v21  ;;  %v7171_v5 = vld [vmem:[%s11458_s3 + $0xe0] sm:$0xff]  ;;  %v1872_v42 = vsel %vm152_vm9, %v1868_v26, %v7019_v7  ;;  %v7199_v21 = vld [vmem:[%s11458_s3 + $0x30] sm:$0xff]  ;;  %v7204_v7 = vld [vmem:[%s11458_s3 + $0x1b8] sm:$0xff] }
 0x28b   :  { %6192 = vmatprep.subr.mxu1 %v1065_v20  ;;  %6233 = vmatprep.subr.mxu0 %v1097_v44  ;;  %v7172_v20 = vld [vmem:[%s11456_s1] sm:$0xff] }
 0x28c   :  { %6193 = vmatpush3.msra.mxu1 %v1049_v45  ;;  %6234 = vmatpush3.msra.mxu0 %v1081_v46  ;;  %v7173_v45 = vld [vmem:[%s11458_s3 + $0x60] sm:$0xff]  ;;  %v7029_v46 = vunpack.i.h.bf16 %v9224_v31  ;;  %v7195_v31 = vld [vmem:[%s11458_s3 + $0x38] sm:$0xff] }
 0x28d   :  { %6194 = vmatprep.subr.mxu1 %v1064_v47  ;;  %6235 = vmatprep.subr.mxu0 %v1096_v17  ;;  %v7205_v26 = vld [vmem:[%s11458_s3 + $0xa0] sm:$0xff] }
 0x28e   :  { %6195 = vmatpush3.msra.mxu1 %v1048_v53  ;;  %6236 = vmatpush3.msra.mxu0 %v1080_v54  ;;  %v5774_v55 = vpop.f32.mrf.mxu1  ;;  %v5818_v38 = vpop.f32.mrf.mxu0  ;;  %v7174_v53 = vld [vmem:[%s11458_s3 + $0xd8] sm:$0xff]  ;;  %v1873_v54 = vsel %vm152_vm9, %v1869_v36, %v7028_v15  ;;  %v7213_v36 = vld [vmem:[%s11458_s3 + $0x90] sm:$0xff] }
 0x28f   :  { %1664 = vmatmul.mubr.f32.vlgmr.msra.gmra.mxu1 %v8351_v48  ;;  %1744 = vmatmul.mubr.f32.vlgmr.msra.gmra.mxu0 %v8355_v49  ;;  %v7209_v15 = vld [vmem:[%s11458_s3 + $0x98] sm:$0xff] }
 0x290   :  { %6960 = vmatprep.subr.msk.mxu1 %vm185_vm0, %v7158_v58  ;;  %1668 = vmatprep.mubr.f32.mxu1 %v8374_v56  ;;  %v5775_v23 = vpop.f32.mrf.mxu1  ;;  %v5819_v32 = vpop.f32.mrf.mxu0  ;;  %v7159_v56 = vld [vmem:[%s11456_s1 + $0x30] sm:$0xff] }
 0x291   :  { %1748 = vmatprep.mubr.f32.mxu0 %v8379_v57  ;;  %6961 = vmatpush3.msk.msra.mxu1 %vm185_vm0, %v7158_v58  ;;  %v5776_v48 = vadd.f32 %v5775_v23, %v5774_v55  ;;  %v5820_v49 = vadd.f32 %v5819_v32, %v5818_v38  ;;  %v1870_v55 = vsel %vm147_vm8, %v7794_v43, %v7024_v37  ;;  %v7176_v32 = vld [vmem:[%s11458_s3 + $0x178] sm:$0xff]  ;;  %v7177_v43 = vld [vmem:[%s11458_s3 + $0x1f0] sm:$0xff] }
 0x292   :  { %6962 = vmatprep.subr.mxu1 %v7159_v56  ;;  %6258 = vmatprep.subr.mxu0 %v7160_v60  ;;  %v7180_v60 = vld [vmem:[%s11458_s3 + $0xd0] sm:$0xff] }
 0x293   :  { %6963 = vmatpush3.msra.mxu1 %v7159_v56  ;;  %1749 = vmatmul.mubr.f32.gmra.mxu0 %v8415_v9  ;;  %v560_v57 = vadd.f32 %v5776_v48, %v9187_v59  ;;  %v1867_v9 = vsel %vm147_vm8, %v7763_v28, %v7013_v24  ;;  %v7164_v28 = vld [vmem:[%s11458_s3 + $0xf0] sm:$0xff]  ;;  %v1874_v24 = vsel %vm152_vm9, %v1870_v55, %v7029_v46  ;;  %v7216_v46 = vld [vmem:[%s11458_s3 + $0x1a0] sm:$0xff]  ;;  %v7220_v55 = vld [vmem:[%s11458_s3 + $0x198] sm:$0xff] }
 0x294   :  { %1669 = vmatmul.mubr.f32.gmra.mxu1 %v8410_v8  ;;  %6964 = vmatprep.subr.mxu1 %v7161_v34  ;;  %v5777_v18 = vpop.f32.mrf.mxu1  ;;  %v5821_v35 = vpop.f32.mrf.mxu0  ;;  %v7179_v56 = vld [vmem:[%s11458_s3 + $0x170] sm:$0xff] }
 0x295   :  { %1673 = vmatprep.mubr.f32.mxu1 %v8358_v51  ;;  %1753 = vmatprep.mubr.f32.mxu0 %v8361_v52  ;;  %v9209_v19 = vadd.f32 %v5820_v49, %v560_v57  ;;  %v7163_v51 = vld [vmem:[%s11456_s1 + $0x20] sm:$0xff]  ;;  %v7210_v37 = vld [vmem:[%s11458_s3 + $0x130] sm:$0xff]  ;;  %s5467_s1 = sshll.u32 %s7580_s19, 4  ;;  %s5468_s1 = int_to_ptr.vmem [resolvable:$true] %s5467_s1 }
 0x296   :  { %6965 = vmatpush3.msra.mxu1 %v7161_v34  ;;  %v5778_v8 = vpop.f32.mrf.mxu1  ;;  %v5822_v29 = vpop.f32.mrf.mxu0  ;;  %6259 = vmatpush3.msra.mxu0 %v7162_v30  ;;  %v7181_v34 = vld [vmem:[%s11458_s3 + $0x1e8] sm:$0xff]  ;;  %v7188_v30 = vld [vmem:[%s11458_s3 + $0x1d8] sm:$0xff]  ;;  %p7558_p1 = scmp.lt.s32.totalorder %s5468_s1, %s5468_s1 }
 0x297   :  { %6966 = vmatprep.subr.mxu1 %v7163_v51  ;;  %1754 = vmatmul.mubr.f32.gmra.mxu0 %v8399_v63  ;;  %v5779_v52 = vadd.f32 %v5778_v8, %v5777_v18  ;;  %v5823_v4 = vadd.f32 %v5822_v29, %v5821_v35  ;;  %v1871_v63 = vsel %vm152_vm9, %v1867_v9, %v7018_v61  ;;  %v7182_v18 = vld [vmem:[%s11458_s3 + $0x168] sm:$0xff]  ;;  %v7183_v35 = vld [vmem:[%s11458_s3 + $0x50] sm:$0xff]  ;;  %v7186_v8 = vld [vmem:[%s11458_s3 + $0x160] sm:$0xff] }
 0x298   :  { %6967 = vmatpush3.msra.mxu1 %v7163_v51  ;;  %6260 = vmatprep.subr.mxu0 %v7164_v28  ;;  %v7185_v9 = vld [vmem:[%s11458_s3 + $0xc8] sm:$0xff]  ;;  %v7190_v51 = vld [vmem:[%s11458_s3 + $0x158] sm:$0xff]  ;;  %v7194_v28 = vld [vmem:[%s11458_s3 + $0x150] sm:$0xff] }
 0x299   :  { %1674 = vmatmul.mubr.f32.gmra.mxu1 %v8396_v62  ;;  %6968 = vmatprep.subr.mxu1 %v7165_v14  ;;  %v565_v16 = vadd.f32 %v5779_v52, %v9187_v59  ;;  %v7187_v29 = vld [vmem:[%s11458_s3 + $0x48] sm:$0xff]  ;;  %v7191_v52 = vld [vmem:[%s11458_s3 + $0x40] sm:$0xff] }
 0x29a   :  { %6969 = vmatpush3.msra.mxu1 %v7165_v14  ;;  %6976 = vmatprep.mubr.msk.f32.mxu1 %vm172_vm10, %v1871_v63  ;;  %v5780_v22 = vpop.f32.mrf.mxu1  ;;  %v5824_v25 = vpop.f32.mrf.mxu0  ;;  %v7196_v14 = vld [vmem:[%s11458_s3 + $0x1c8] sm:$0xff]  ;;  %v7197_v63 = vld [vmem:[%s11458_s3 + $0xb0] sm:$0xff] }
 0x29b   :  { %6970 = vmatprep.subr.mxu1 %v7166_v40  ;;  %v9236_v62 = vadd.f32 %v5823_v4, %v565_v16  ;;  %6261 = vmatpush3.msra.mxu0 %v7167_v1  ;;  %v7192_v4 = vld [vmem:[%s11458_s3 + $0x1d0] sm:$0xff]  ;;  %v7198_v16 = vld [vmem:[%s11458_s3 + $0x148] sm:$0xff] }
 0x29c   :  { %6971 = vmatpush3.msra.mxu1 %v7166_v40  ;;  %v5781_v33 = vpop.f32.mrf.mxu1  ;;  %v5825_v10 = vpop.f32.mrf.mxu0  ;;  %6262 = vmatprep.subr.mxu0 %v7168_v12  ;;  %v7202_v40 = vld [vmem:[%s11458_s3 + $0x140] sm:$0xff]  ;;  %v7203_v1 = vld [vmem:[%s11458_s3 + $0x28] sm:$0xff]  ;;  %v7208_v12 = vld [vmem:[%s11458_s3 + $0x1b0] sm:$0xff] }
 0x29d   :  { %6972 = vmatprep.subr.mxu1 %v7169_v6  ;;  %v5782_v41 = vadd.f32 %v5781_v33, %v5780_v22  ;;  %v5826_v3 = vadd.f32 %v5825_v10, %v5824_v25  ;;  %6263 = vmatpush3.msra.mxu0 %v7170_v27  ;;  %v7200_v22 = vld [vmem:[%s11458_s3 + $0x1c0] sm:$0xff]  ;;  %v7201_v25 = vld [vmem:[%s11458_s3 + $0xa8] sm:$0xff]  ;;  %v7206_v33 = vld [vmem:[%s11458_s3 + $0x138] sm:$0xff] }
 0x29e   :  { %6973 = vmatpush3.msra.mxu1 %v7169_v6  ;;  %6264 = vmatprep.subr.mxu0 %v7171_v5  ;;  %v7207_v10 = vld [vmem:[%s11458_s3 + $0x20] sm:$0xff]  ;;  %v7211_v6 = vld [vmem:[%s11458_s3 + $0x18] sm:$0xff]  ;;  %v7212_v27 = vld [vmem:[%s11458_s3 + $0x1a8] sm:$0xff] }
 0x29f   :  { %6974 = vmatprep.subr.mxu1 %v7172_v20  ;;  %v570_v44 = vadd.f32 %v5782_v41, %v9187_v59  ;;  %6265 = vmatpush3.msra.mxu0 %v7173_v45  ;;  %v7214_v5 = vld [vmem:[%s11458_s3 + $0x128] sm:$0xff] }
 0x2a0   :  { %6975 = vmatpush3.msra.mxu1 %v7172_v20  ;;  %v5783_v47 = vpop.f32.mrf.mxu1  ;;  %v5827_v17 = vpop.f32.mrf.mxu0  ;;  %6266 = vmatprep.subr.mxu0 %v7174_v53  ;;  %v7215_v20 = vld [vmem:[%s11458_s3 + $0x10] sm:$0xff]  ;;  %v7218_v53 = vld [vmem:[%s11458_s3 + $0x120] sm:$0xff] }
 0x2a1   :  { %6977 = vmatmul.mubr.msk.f32.vlgmr.msra.gmra.mxu1 %vm172_vm10, %v1872_v42  ;;  %v9275_v38 = vadd.f32 %v5826_v3, %v570_v44  ;;  %6302 = vmatprep.subr.mxu1 %v7175_v39  ;;  %v7217_v42 = vld [vmem:[%s11458_s3 + $0x88] sm:$0xff]  ;;  %v7221_v39 = vld [vmem:[%s11458_s3 + $0x80] sm:$0xff] }
 0x2a2   :  { %6979 = vmatprep.mubr.msk.f32.mxu1 %vm172_vm10, %v1873_v54  ;;  %v5784_v58 = vpop.f32.mrf.mxu1  ;;  %v5828_v23 = vpop.f32.mrf.mxu0  ;;  %6303 = vmatpush3.msra.mxu1 %v7176_v32  ;;  %v7219_v54 = vld [vmem:[%s11458_s3 + $0x8] sm:$0xff]  ;;  %v7223_v32 = vld [vmem:[%s11458_s3] sm:$0xff] }
 0x2a3   :  { %v5785_v48 = vadd.f32 %v5784_v58, %v5783_v47  ;;  %v5829_v49 = vadd.f32 %v5828_v23, %v5827_v17  ;;  %6304 = vmatprep.subr.mxu1 %v7177_v43  ;;  %6267 = vmatpush3.msra.mxu0 %v7178_v50  ;;  %v7222_v23 = vld [vmem:[%s11458_s3 + $0x118] sm:$0xff]  ;;  %v7224_v43 = vld [vmem:[%s11458_s3 + $0x190] sm:$0xff] }
 0x2a4   :  { %6305 = vmatpush3.msra.mxu1 %v7179_v56  ;;  %6268 = vmatprep.subr.mxu0 %v7180_v60 }
 0x2a5   :  { %6980 = vmatmul.mubr.msk.f32.gmra.mxu1 %vm172_vm10, %v1874_v24  ;;  %v575_v57 = vadd.f32 %v5785_v48, %v9187_v59  ;;  %6306 = vmatprep.subr.mxu1 %v7181_v34  ;;  %v7184_v59 = vld [vmem:[%s11458_s3 + $0x1e0] sm:$0xff]  ;;  %v7226_v24 = vld [vmem:[%s11458_s3 + $0x110] sm:$0xff] }
 0x2a6   :  { %6307 = vmatpush3.msra.mxu1 %v7182_v18  ;;  %6269 = vmatpush3.msra.mxu0 %v7183_v35  ;;  %v7228_v35 = vld [vmem:[%s11458_s3 + $0x108] sm:$0xff] }
 0x2a7   :  { %v9308_v61 = vadd.f32 %v5829_v49, %v575_v57  ;;  %6308 = vmatprep.subr.mxu1 %v7184_v59  ;;  %6270 = vmatprep.subr.mxu0 %v7185_v9  ;;  %v7227_v57 = vld [vmem:[%s11458_s3 + $0x188] sm:$0xff]  ;;  %v7229_v59 = vld [vmem:[%s11458_s3 + $0x180] sm:$0xff] }
 0x2a8   :  { %6309 = vmatpush3.msra.mxu1 %v7186_v8  ;;  %6271 = vmatpush3.msra.mxu0 %v7187_v29  ;;  %v7230_v8 = vld [vmem:[%s11458_s3 + $0x100] sm:$0xff] }
 0x2a9   :  { %6310 = vmatprep.subr.mxu1 %v7188_v30  ;;  %6272 = vmatprep.subr.mxu0 %v7189_v0  ;;  %v7231_v0 = vld [vmem:[%s11458_s3 + $0x3f8] sm:$0xff] }
 0x2aa   :  { %6311 = vmatpush3.msra.mxu1 %v7190_v51  ;;  %6273 = vmatpush3.msra.mxu0 %v7191_v52 }
 0x2ab   :  { %6312 = vmatprep.subr.mxu1 %v7192_v4  ;;  %6274 = vmatprep.subr.mxu0 %v7193_v13 }
 0x2ac   :  { %6313 = vmatpush3.msra.mxu1 %v7194_v28  ;;  %6275 = vmatpush3.msra.mxu0 %v7195_v31 }
 0x2ad   :  { %6314 = vmatprep.subr.mxu1 %v7196_v14  ;;  %6276 = vmatprep.subr.mxu0 %v7197_v63 }
 0x2ae   :  { %6315 = vmatpush3.msra.mxu1 %v7198_v16  ;;  %6277 = vmatpush3.msra.mxu0 %v7199_v21 }
 0x2af   :  { %6316 = vmatprep.subr.mxu1 %v7200_v22  ;;  %6278 = vmatprep.subr.mxu0 %v7201_v25 }
 0x2b0   :  { %6317 = vmatpush3.msra.mxu1 %v7202_v40  ;;  %6279 = vmatpush3.msra.mxu0 %v7203_v1 }
 0x2b1   :  { %6318 = vmatprep.subr.mxu1 %v7204_v7  ;;  %6280 = vmatprep.subr.mxu0 %v7205_v26 }
 0x2b2   :  { %6319 = vmatpush3.msra.mxu1 %v7206_v33  ;;  %6281 = vmatpush3.msra.mxu0 %v7207_v10 }
 0x2b3   :  { %6320 = vmatprep.subr.mxu1 %v7208_v12  ;;  %6282 = vmatprep.subr.mxu0 %v7209_v15 }
 0x2b4   :  { %6321 = vmatpush3.msra.mxu1 %v7210_v37  ;;  %6283 = vmatpush3.msra.mxu0 %v7211_v6 }
 0x2b5   :  { %v5862_v41 = vpop.f32.mrf.mxu1  ;;  %v5906_v3 = vpop.f32.mrf.mxu0  ;;  %6322 = vmatprep.subr.mxu1 %v7212_v27  ;;  %6284 = vmatprep.subr.mxu0 %v7213_v36 }
 0x2b6   :  { %6323 = vmatpush3.msra.mxu1 %v7214_v5  ;;  %6285 = vmatpush3.msra.mxu0 %v7215_v20 }
 0x2b7   :  { %v5863_v44 = vpop.f32.mrf.mxu1  ;;  %v5907_v45 = vpop.f32.mrf.mxu0  ;;  %6324 = vmatprep.subr.mxu1 %v7216_v46  ;;  %6286 = vmatprep.subr.mxu0 %v7217_v42 }
 0x2b8   :  { %v5864_v47 = vadd.f32 %v5863_v44, %v5862_v41  ;;  %v5908_v17 = vadd.f32 %v5907_v45, %v5906_v3  ;;  %6325 = vmatpush3.msra.mxu1 %v7218_v53  ;;  %6287 = vmatpush3.msra.mxu0 %v7219_v54 }
 0x2b9   :  { %6326 = vmatprep.subr.mxu1 %v7220_v55  ;;  %6288 = vmatprep.subr.mxu0 %v7221_v39 }
 0x2ba   :  { %v730_v58 = vadd.f32 %v5864_v47, %v9209_v19  ;;  %6327 = vmatpush3.msra.mxu1 %v7222_v23  ;;  %6289 = vmatpush3.msra.mxu0 %v7223_v32  ;;  %v7225_v19 = vld [vmem:[%s11458_s3 + $0x2f8] sm:$0xff] }
 0x2bb   :  { %v5865_v48 = vpop.f32.mrf.mxu1  ;;  %v5909_v49 = vpop.f32.mrf.mxu0  ;;  %6328 = vmatprep.subr.mxu1 %v7224_v43  ;;  %6346 = vmatprep.subr.mxu0 %v7225_v19 }
 0x2bc   :  { %v815_v50 = vadd.f32 %v5908_v17, %v730_v58  ;;  %6329 = vmatpush3.msra.mxu1 %v7226_v24 }
 0x2bd   :  { %v5866_v56 = vpop.f32.mrf.mxu1  ;;  %v5910_v60 = vpop.f32.mrf.mxu0  ;;  %6330 = vmatprep.subr.mxu1 %v7227_v57 }
 0x2be   :  { %v5867_v34 = vadd.f32 %v5866_v56, %v5865_v48  ;;  %v5911_v18 = vadd.f32 %v5910_v60, %v5909_v49  ;;  %6331 = vmatpush3.msra.mxu1 %v7228_v35  ;;  %v834_v13 = vsel %vm833_vm4, %v815_v50, -inf }
 0x2bf   :  { %6332 = vmatprep.subr.mxu1 %v7229_v59 }
 0x2c0   :  { %v735_v9 = vadd.f32 %v5867_v34, %v9236_v62  ;;  %6333 = vmatpush3.msra.mxu1 %v7230_v8  ;;  %v5486_v34 = vld [vmem:[%s11461_s6] ss:$0 sm:$0xff] }
 0x2c1   :  { %v5868_v29 = vpop.f32.mrf.mxu1  ;;  %v5912_v30 = vpop.f32.mrf.mxu0  ;;  %6390 = vmatprep.subr.mxu1 %v7231_v0 }
 0x2c2   :  { %v820_v51 = vadd.f32 %v5911_v18, %v735_v9 }
 0x2c3   :  { %v5869_v52 = vpop.f32.mrf.mxu1  ;;  %v5913_v4 = vpop.f32.mrf.mxu0 }
 0x2c4   :  { %v835_v62 = vsel %vm833_vm4, %v820_v51, -inf  ;;  %v5870_v28 = vadd.f32 %v5869_v52, %v5868_v29  ;;  %v5914_v31 = vadd.f32 %v5913_v4, %v5912_v30 }
 0x2c5   :  { %v839_v14 = vmax.f32 %v834_v13, %v835_v62 }
 0x2c6   :  { %v740_v63 = vadd.f32 %v5870_v28, %v9275_v38 }
 0x2c7   :  { %v5871_v16 = vpop.f32.mrf.mxu1  ;;  %v5915_v21 = vpop.f32.mrf.mxu0 }
 0x2c8   :  { %v825_v22 = vadd.f32 %v5914_v31, %v740_v63 }
 0x2c9   :  { %v5872_v25 = vpop.f32.mrf.mxu1  ;;  %v5916_v40 = vpop.f32.mrf.mxu0 }
 0x2ca   :  { %v5873_v1 = vadd.f32 %v5872_v25, %v5871_v16  ;;  %v5917_v7 = vadd.f32 %v5916_v40, %v5915_v21  ;;  %v836_v10 = vsel %vm833_vm4, %v825_v22, -inf }
 0x2cc   :  { %v745_v26 = vadd.f32 %v5873_v1, %v9308_v61 }
 0x2ce   :  { %v830_v33 = vadd.f32 %v5917_v7, %v745_v26 }
 0x2d0   :  { %v838_v12 = vsel %vm837_vm5, %v830_v33, -inf }
 0x2d1   :  { %v840_v15 = vmax.f32 %v836_v10, %v838_v12 }
 0x2d3   :  { %v9462_v37 = vmax.f32 %v839_v14, %v840_v15 }
 0x2dd   :  { %v5950_v6 = vpop.f32.mrf.mxu1  ;;  %v5991_v38 = vpop.f32.mrf.mxu0 }
 0x2df   :  { %v5951_v41 = vpop.f32.mrf.mxu1  ;;  %v5992_v3 = vpop.f32.mrf.mxu0 }
 0x2e0   :  { %v5952_v57 = vadd.f32 %v5951_v41, %v5950_v6  ;;  %v5993_v29 = vadd.f32 %v5992_v3, %v5991_v38 }
 0x2e2   :  { %v1186_v9 = vadd.f32 %v5952_v57, %v5486_v34 }
 0x2e3   :  { %v5953_v27 = vpop.f32.mrf.mxu1  ;;  %v5994_v36 = vpop.f32.mrf.mxu0 }
 0x2e4   :  { %v1266_v62 = vadd.f32 %v5993_v29, %v1186_v9 }
 0x2e5   :  { %v5954_v5 = vpop.f32.mrf.mxu1  ;;  %v5995_v20 = vpop.f32.mrf.mxu0 }
 0x2e6   :  { %v5955_v18 = vadd.f32 %v5954_v5, %v5953_v27  ;;  %v5996_v51 = vadd.f32 %v5995_v20, %v5994_v36 }
 0x2e8   :  { %v1191_v8 = vadd.f32 %v5955_v18, %v5486_v34 }
 0x2e9   :  { %v5956_v44 = vpop.f32.mrf.mxu1  ;;  %v5997_v45 = vpop.f32.mrf.mxu0 }
 0x2ea   :  { %v1271_v28 = vadd.f32 %v5996_v51, %v1191_v8 }
 0x2eb   :  { %v5957_v61 = vpop.f32.mrf.mxu1  ;;  %v5998_v46 = vpop.f32.mrf.mxu0 }
 0x2ec   :  { %v5958_v30 = vadd.f32 %v5957_v61, %v5956_v44  ;;  %v5999_v22 = vadd.f32 %v5998_v46, %v5997_v45 }
 0x2ee   :  { %v1196_v31 = vadd.f32 %v5958_v30, %v5486_v34 }
 0x2f0   :  { %v1276_v12 = vadd.f32 %v5999_v22, %v1196_v31 }
 0x303   :  { %v6032_v42 = vpop.f32.mrf.mxu1  ;;  %v6073_v47 = vpop.f32.mrf.mxu0 }
 0x305   :  { %v6033_v17 = vpop.f32.mrf.mxu1  ;;  %v6074_v53 = vpop.f32.mrf.mxu0 }
 0x306   :  { %v6034_v0 = vadd.f32 %v6033_v17, %v6032_v42  ;;  %v6075_v25 = vadd.f32 %v6074_v53, %v6073_v47 }
 0x308   :  { %v1346_v14 = vadd.f32 %v6034_v0, %v1266_v62 }
 0x309   :  { %v6035_v54 = vpop.f32.mrf.mxu1  ;;  %v6076_v55 = vpop.f32.mrf.mxu0 }
 0x30a   :  { %v1426_v15 = vadd.f32 %v6075_v25, %v1346_v14 }
 0x30b   :  { %v6036_v39 = vpop.f32.mrf.mxu1  ;;  %v6077_v58 = vpop.f32.mrf.mxu0 }
 0x30c   :  { %v6037_v52 = vadd.f32 %v6036_v39, %v6035_v54  ;;  %v6078_v7 = vadd.f32 %v6077_v58, %v6076_v55 }
 0x30e   :  { %v1351_v63 = vadd.f32 %v6037_v52, %v1271_v28  ;;  %v7232_v52 = vld [vmem:[%s11457_s2] ss:$0 sm:$0xff] }
 0x30f   :  { %v6038_v23 = vpop.f32.mrf.mxu1  ;;  %v6079_v32 = vpop.f32.mrf.mxu0 }
 0x310   :  { %v1431_v6 = vadd.f32 %v6078_v7, %v1351_v63 }
 0x311   :  { %v6039_v48 = vpop.f32.mrf.mxu1  ;;  %v6080_v49 = vpop.f32.mrf.mxu0 }
 0x312   :  { %v6040_v40 = vadd.f32 %v6039_v48, %v6038_v23  ;;  %v6081_v20 = vadd.f32 %v6080_v49, %v6079_v32 }
 0x314   :  { %v1356_v3 = vadd.f32 %v6040_v40, %v1276_v12 }
 0x316   :  { %v1436_v17 = vadd.f32 %v6081_v20, %v1356_v3  ;;  %v7235_v20 = vld [vmem:[%s11458_s3 + $0x2f0] sm:$0xff] }
 0x329   :  { %v6114_v43 = vpop.f32.mrf.mxu1  ;;  %v6155_v19 = vpop.f32.mrf.mxu0 }
 0x32b   :  { %v6115_v50 = vpop.f32.mrf.mxu1  ;;  %v6156_v24 = vpop.f32.mrf.mxu0 }
 0x32c   :  { %v6116_v1 = vadd.f32 %v6115_v50, %v6114_v43  ;;  %v6157_v44 = vadd.f32 %v6156_v24, %v6155_v19 }
 0x32e   :  { %v1506_v27 = vadd.f32 %v6116_v1, %v1426_v15 }
 0x32f   :  { %v6117_v56 = vpop.f32.mrf.mxu1  ;;  %v6158_v60 = vpop.f32.mrf.mxu0 }
 0x330   :  { %v1586_v53 = vadd.f32 %v6157_v44, %v1506_v27  ;;  %v7233_v27 = vld [vmem:[%s11458_s3 + $0x278] sm:$0xff]  ;;  %v7236_v44 = vld [vmem:[%s11458_s3 + $0x3f0] sm:$0xff] }
 0x331   :  { %v6118_v35 = vpop.f32.mrf.mxu1  ;;  %v6159_v59 = vpop.f32.mrf.mxu0 }
 0x332   :  { %v6119_v26 = vadd.f32 %v6118_v35, %v6117_v56  ;;  %v6160_v42 = vadd.f32 %v6159_v59, %v6158_v60 }
 0x334   :  { %v1511_v36 = vadd.f32 %v6119_v26, %v1431_v6 }
 0x335   :  { %v6120_v4 = vpop.f32.mrf.mxu1  ;;  %v6161_v13 = vpop.f32.mrf.mxu0 }
 0x336   :  { %v1591_v55 = vadd.f32 %v6160_v42, %v1511_v36  ;;  %v7234_v36 = vld [vmem:[%s11458_s3 + $0x378] sm:$0xff]  ;;  %v7238_v42 = vld [vmem:[%s11458_s3 + $0x370] sm:$0xff] }
 0x337   :  { %v6121_v16 = vpop.f32.mrf.mxu1  ;;  %v6162_v21 = vpop.f32.mrf.mxu0 }
 0x338   :  { %v6122_v61 = vadd.f32 %v6121_v16, %v6120_v4  ;;  %v6163_v57 = vadd.f32 %v6162_v21, %v6161_v13 }
 0x33a   :  { %v1516_v23 = vadd.f32 %v6122_v61, %v1436_v17 }
 0x33c   :  { %v1596_v24 = vadd.f32 %v6163_v57, %v1516_v23  ;;  %v7242_v23 = vld [vmem:[%s11458_s3 + $0x368] sm:$0xff]  ;;  %v7244_v57 = vld [vmem:[%s11458_s3 + $0x3e0] sm:$0xff] }
 0x34f   :  { %v6196_v33 = vpop.f32.mrf.mxu1  ;;  %v6237_v10 = vpop.f32.mrf.mxu0 }
 0x351   :  { %v6197_v38 = vpop.f32.mrf.mxu1  ;;  %v6238_v41 = vpop.f32.mrf.mxu0 }
 0x352   :  { %v6198_v45 = vadd.f32 %v6197_v38, %v6196_v33  ;;  %v6239_v34 = vadd.f32 %v6238_v41, %v6237_v10 }
 0x353   :  { %v6240_v5 = vpop.f32.mrf.mxu0 }
 0x354   :  { %v6199_v46 = vpop.f32.mrf.mxu1  ;;  %v1666_v48 = vadd.f32 %v6198_v45, %v1586_v53  ;;  %v7239_v53 = vld [vmem:[%s11458_s3 + $0x2e8] sm:$0xff] }
 0x355   :  { %v6241_v47 = vpop.f32.mrf.mxu0 }
 0x356   :  { %v6200_v54 = vpop.f32.mrf.mxu1  ;;  %v6242_v50 = vadd.f32 %v6241_v47, %v6240_v5  ;;  %v1746_v18 = vadd.f32 %v6239_v34, %v1666_v48 }
 0x357   :  { %v6201_v39 = vadd.f32 %v6200_v54, %v6199_v46  ;;  %v6243_v58 = vpop.f32.mrf.mxu0  ;;  %v7237_v46 = vld [vmem:[%s11458_s3 + $0x270] sm:$0xff]  ;;  %v7240_v54 = vld [vmem:[%s11458_s3 + $0x3e8] sm:$0xff] }
 0x358   :  { %v1759_v8 = vsel %vm833_vm4, %v1746_v18, -inf }
 0x359   :  { %v1671_v43 = vadd.f32 %v6201_v39, %v1591_v55  ;;  %v6202_v56 = vpop.f32.mrf.mxu1  ;;  %v6244_v19 = vpop.f32.mrf.mxu0 }
 0x35a   :  { %v6245_v9 = vadd.f32 %v6244_v19, %v6243_v58  ;;  %v7241_v58 = vld [vmem:[%s11458_s3 + $0x268] sm:$0xff]  ;;  %v7247_v19 = vld [vmem:[%s11458_s3 + $0x2d8] sm:$0xff] }
 0x35b   :  { %v1751_v32 = vadd.f32 %v6242_v50, %v1671_v43  ;;  %v6203_v49 = vpop.f32.mrf.mxu1 }
 0x35c   :  { %v6204_v60 = vadd.f32 %v6203_v49, %v6202_v56  ;;  %v7243_v56 = vld [vmem:[%s11458_s3 + $0x2e0] sm:$0xff] }
 0x35d   :  { %v1760_v35 = vsel %vm833_vm4, %v1751_v32, -inf  ;;  %v7245_v32 = vld [vmem:[%s11458_s3 + $0x260] sm:$0xff] }
 0x35e   :  { %v1676_v59 = vadd.f32 %v6204_v60, %v1596_v24  ;;  %v1762_v30 = vmax.f32 %v1759_v8, %v1760_v35  ;;  %v7246_v49 = vld [vmem:[%s11458_s3 + $0x360] sm:$0xff]  ;;  %v7248_v24 = vld [vmem:[%s11458_s3 + $0x3d8] sm:$0xff]  ;;  %v7252_v8 = vld [vmem:[%s11458_s3 + $0x3d0] sm:$0xff] }
 0x35f   :  { %v7249_v35 = vld [vmem:[%s11458_s3 + $0x258] sm:$0xff] }
 0x360   :  { %v1756_v29 = vadd.f32 %v6245_v9, %v1676_v59  ;;  %v7250_v59 = vld [vmem:[%s11458_s3 + $0x358] sm:$0xff]  ;;  %v7251_v9 = vld [vmem:[%s11458_s3 + $0x2d0] sm:$0xff] }
 0x361   :  { %v6978_v0 = vpop.f32.mrf.mxu1 }
 0x362   :  { %v1761_v51 = vsel %vm837_vm5, %v1756_v29, -inf  ;;  %v9473_v4 = vadd.f32 %v7232_v52, %v6978_v0  ;;  %v7253_v29 = vld [vmem:[%s11458_s3 + $0x250] sm:$0xff] }
 0x363   :  { %v1763_v13 = vmax.f32 %v1762_v30, %v1761_v51  ;;  %v1953_v62 = vpop.f32.mrf.mxu1  ;;  %v7254_v0 = vld [vmem:[%s11458_s3 + $0x350] sm:$0xff]  ;;  %v7255_v51 = vld [vmem:[%s11458_s3 + $0x2c8] sm:$0xff] }
 0x364   :  { %v9475_v28 = vadd.f32 %v7232_v52, %v1953_v62  ;;  %v1977_v63 = vrot.slane %v9473_v4, 1  ;;  %v1999_v16 = vrot.slane %v9473_v4, 3  ;;  %v1988_v40 = vrot.slane %v9473_v4, 2 }
 0x365   :  { %v1764_v31 = vrot.slane %v1763_v13, 4  ;;  %v6981_v14 = vpop.f32.mrf.mxu1  ;;  %v2021_v62 = vrot.slane %v9473_v4, 5 }
 0x366   :  { %v1976_v21 = vrot.slane %v9475_v28, 1  ;;  %v1998_v22 = vrot.slane %v9475_v28, 3  ;;  %v1987_v25 = vrot.slane %v9475_v28, 2  ;;  %v9507_v3 = vadd.f32 %v7232_v52, %v6981_v14 }
 0x367   :  { %v1765_v1 = vmax.f32 %v1763_v13, %v1764_v31  ;;  %v1963_v7 = vpop.f32.mrf.mxu1  ;;  %v2020_v30 = vrot.slane %v9475_v28, 5  ;;  %v7256_v13 = vld [vmem:[%s11458_s3 + $0x3c8] sm:$0xff]  ;;  %v2043_v14 = vrot.slane %v9473_v4, 7 }
 0x368   :  { %v9483_v26 = vadd.f32 %v7232_v52, %v1963_v7  ;;  %v9486_v33 = vsel %vm103_vm7, %v1976_v21, %v1977_v63  ;;  %v9489_v10 = vsel %vm300_vm15, %v1998_v22, %v1999_v16  ;;  %v9492_v12 = vsel %vm125_vm6, %v1987_v25, %v1988_v40  ;;  %v7257_v31 = vld [vmem:[%s11458_s3 + $0x248] sm:$0xff]  ;;  %v7260_v22 = vld [vmem:[%s11458_s3 + $0x3c0] sm:$0xff]  ;;  %v7263_v7 = vld [vmem:[%s11458_s3 + $0x2b8] sm:$0xff] }
 0x369   :  { %2117 = vmatprep.mubr.f32.mxu0 %v9486_v33  ;;  %2202 = vmatprep.mubr.f32.mxu1 %v9489_v10  ;;  %v1766_v15 = vrot.slane %v1765_v1, 2  ;;  %v9548_v55 = vrot.slane %v9507_v3, 1  ;;  %v9551_v39 = vrot.slane %v9507_v3, 3  ;;  %v9580_v34 = vrot.slane %v9507_v3, 2 }
 0x36a   :  { %2118 = vmatmul.mubr.f32.vlgmr.msra.gmra.mxu0 %v9475_v28  ;;  %2203 = vmatmul.mubr.f32.vlgmr.msra.gmra.mxu1 %v9492_v12  ;;  %v9499_v6 = vrot.slane %v9483_v26, 1  ;;  %v9502_v38 = vrot.slane %v9483_v26, 3  ;;  %v9505_v41 = vrot.slane %v9483_v26, 2  ;;  %v2042_v52 = vrot.slane %v9475_v28, 7 }
 0x36b   :  { %6347 = vmatpush3.msra.mxu0 %v7233_v27  ;;  %6391 = vmatpush3.msra.mxu1 %v7234_v36  ;;  %v1767_v5 = vmax.f32 %v1765_v1, %v1766_v15  ;;  %v9646_v21 = vsel %vm323_vm1, %v2020_v30, %v2021_v62  ;;  %v7262_v1 = vld [vmem:[%s11458_s3 + $0x340] sm:$0xff]  ;;  %v7264_v15 = vld [vmem:[%s11458_s3 + $0x3b8] sm:$0xff]  ;;  %v7288_v30 = vld [vmem:[%s11458_s3 + $0x388] sm:$0xff] }
 0x36c   :  { %6348 = vmatprep.subr.mxu0 %v7235_v20  ;;  %6392 = vmatprep.subr.mxu1 %v7236_v44  ;;  %v9523_v61 = vsel %vm103_vm7, %v1977_v63, %v9499_v6  ;;  %v9527_v45 = vsel %vm300_vm15, %v1999_v16, %v9502_v38  ;;  %v9537_v47 = vsel %vm125_vm6, %v1988_v40, %v9505_v41  ;;  %v7258_v63 = vld [vmem:[%s11458_s3 + $0x348] sm:$0xff]  ;;  %v7259_v16 = vld [vmem:[%s11458_s3 + $0x2c0] sm:$0xff]  ;;  %v7265_v27 = vld [vmem:[%s11458_s3 + $0x238] sm:$0xff] }
 0x36d   :  { %6349 = vmatpush3.msra.mxu0 %v7237_v46  ;;  %6393 = vmatpush3.msra.mxu1 %v7238_v42  ;;  %v1768_v17 = vrot.slane %v1767_v5, 1  ;;  %v9564_v48 = vsel %vm103_vm7, %v9499_v6, %v9548_v55  ;;  %v9569_v43 = vsel %vm300_vm15, %v9502_v38, %v9551_v39  ;;  %v9597_v18 = vsel %vm125_vm6, %v9505_v41, %v9580_v34  ;;  %v7261_v40 = vld [vmem:[%s11458_s3 + $0x240] sm:$0xff]  ;;  %v7266_v36 = vld [vmem:[%s11458_s3 + $0x338] sm:$0xff]  ;;  %v7268_v20 = vld [vmem:[%s11458_s3 + $0x3b0] sm:$0xff] }
 0x36e   :  { %2122 = vmatprep.mubr.f32.mxu0 %v9523_v61  ;;  %2207 = vmatprep.mubr.f32.mxu1 %v9527_v45  ;;  %v9655_v25 = vsel %vm86_vm3, %v2042_v52, %v2043_v14  ;;  %v7269_v44 = vld [vmem:[%s11458_s3 + $0x230] sm:$0xff]  ;;  %v7271_v42 = vld [vmem:[%s11458_s3 + $0x2a8] sm:$0xff]  ;;  %v9749_v52 = vrot.slane %v9483_v26, 5 }
 0x36f   :  { %6350 = vmatprep.subr.mxu0 %v7239_v53  ;;  %6394 = vmatprep.subr.mxu1 %v7240_v54  ;;  %v1769_v50 = vmax.f32 %v1767_v5, %v1768_v17  ;;  %v7267_v5 = vld [vmem:[%s11458_s3 + $0x2b0] sm:$0xff]  ;;  %v7272_v17 = vld [vmem:[%s11458_s3 + $0x3a8] sm:$0xff] }
 0x370   :  { %2123 = vmatmul.mubr.f32.gmra.mxu0 %v9473_v4  ;;  %2208 = vmatmul.mubr.f32.gmra.mxu1 %v9537_v47  ;;  %v7270_v46 = vld [vmem:[%s11458_s3 + $0x330] sm:$0xff]  ;;  %v7273_v53 = vld [vmem:[%s11458_s3 + $0x228] sm:$0xff] }
 0x371   :  { %6351 = vmatpush3.msra.mxu0 %v7241_v58  ;;  %6395 = vmatpush3.msra.mxu1 %v7242_v23  ;;  %v1770_v60 = vmax.f32 %v1769_v50, 0.0  ;;  %v7274_v54 = vld [vmem:[%s11458_s3 + $0x328] sm:$0xff]  ;;  %v7275_v58 = vld [vmem:[%s11458_s3 + $0x2a0] sm:$0xff] }
 0x372   :  { %2127 = vmatprep.mubr.f32.mxu0 %v9564_v48  ;;  %2212 = vmatprep.mubr.f32.mxu1 %v9569_v43  ;;  %v7276_v23 = vld [vmem:[%s11458_s3 + $0x3a0] sm:$0xff] }
 0x373   :  { %6352 = vmatprep.subr.mxu0 %v7243_v56  ;;  %6396 = vmatprep.subr.mxu1 %v7244_v57  ;;  %v7277_v50 = vld [vmem:[%s11458_s3 + $0x220] sm:$0xff]  ;;  %v7279_v57 = vld [vmem:[%s11458_s3 + $0x298] sm:$0xff] }
 0x374   :  { %6353 = vmatpush3.msra.mxu0 %v7245_v32  ;;  %6397 = vmatpush3.msra.mxu1 %v7246_v49  ;;  %v7278_v56 = vld [vmem:[%s11458_s3 + $0x320] sm:$0xff]  ;;  %v7280_v32 = vld [vmem:[%s11458_s3 + $0x398] sm:$0xff] }
 0x375   :  { %6354 = vmatprep.subr.mxu0 %v7247_v19  ;;  %6398 = vmatprep.subr.mxu1 %v7248_v24  ;;  %v7281_v49 = vld [vmem:[%s11458_s3 + $0x218] sm:$0xff]  ;;  %v7283_v24 = vld [vmem:[%s11458_s3 + $0x290] sm:$0xff] }
 0x376   :  { %2128 = vmatmul.mubr.f32.gmra.mxu0 %v9483_v26  ;;  %2213 = vmatmul.mubr.f32.gmra.mxu1 %v9597_v18  ;;  %v7282_v19 = vld [vmem:[%s11458_s3 + $0x318] sm:$0xff] }
 0x377   :  { %6355 = vmatpush3.msra.mxu0 %v7249_v35  ;;  %6399 = vmatpush3.msra.mxu1 %v7250_v59  ;;  %v7285_v35 = vld [vmem:[%s11458_s3 + $0x210] sm:$0xff]  ;;  %v2009_v59 = vrot.slane %v9475_v28, 4 }
 0x378   :  { %2132 = vmatprep.mubr.f32.mxu0 %v9548_v55  ;;  %2217 = vmatprep.mubr.f32.mxu1 %v9551_v39 }
 0x379   :  { %6356 = vmatprep.subr.mxu0 %v7251_v9  ;;  %6400 = vmatprep.subr.mxu1 %v7252_v8  ;;  %v7286_v9 = vld [vmem:[%s11458_s3 + $0x310] sm:$0xff]  ;;  %v7287_v8 = vld [vmem:[%s11458_s3 + $0x288] sm:$0xff] }
 0x37a   :  { %1772 = vrot.lane.b32.xlu1 %v1770_v60, %s7579_s20  ;;  %6357 = vmatpush3.msra.mxu0 %v7253_v29  ;;  %v7284_v60 = vld [vmem:[%s11458_s3 + $0x390] sm:$0xff]  ;;  %v2031_v29 = vrot.slane %v9475_v28, 6 }
 0x37b   :  { %6401 = vmatpush3.msra.mxu1 %v7254_v0  ;;  %6358 = vmatprep.subr.mxu0 %v7255_v51  ;;  %v7289_v0 = vld [vmem:[%s11458_s3 + $0x208] sm:$0xff]  ;;  %v2010_v51 = vrot.slane %v9473_v4, 4 }
 0x37c   :  { %6402 = vmatprep.subr.mxu1 %v7256_v13  ;;  %2133 = vmatmul.mubr.f32.gmra.mxu0 %v9507_v3  ;;  %v7290_v13 = vld [vmem:[%s11458_s3 + $0x308] sm:$0xff] }
 0x37d   :  { %2218 = vmatmul.mubr.f32.gmra.mxu1 %v9580_v34  ;;  %6359 = vmatpush3.msra.mxu0 %v7257_v31  ;;  %v7291_v31 = vld [vmem:[%s11458_s3 + $0x280] sm:$0xff] }
 0x37e   :  { %6403 = vmatpush3.msra.mxu1 %v7258_v63  ;;  %6360 = vmatprep.subr.mxu0 %v7259_v16  ;;  %v2032_v63 = vrot.slane %v9473_v4, 6  ;;  %v9759_v16 = vrot.slane %v9483_v26, 7 }
 0x37f   :  { %2287 = vmatprep.mubr.f32.mxu0 %v9646_v21  ;;  %6404 = vmatprep.subr.mxu1 %v7260_v22  ;;  %v7292_v22 = vld [vmem:[%s11458_s3 + $0x380] sm:$0xff] }
 0x380   :  { %2372 = vmatprep.mubr.f32.mxu1 %v9655_v25  ;;  %6361 = vmatpush3.msra.mxu0 %v7261_v40  ;;  %v7293_v40 = vld [vmem:[%s11458_s3 + $0x200] sm:$0xff] }
 0x381   :  { %6405 = vmatpush3.msra.mxu1 %v7262_v1  ;;  %6362 = vmatprep.subr.mxu0 %v7263_v7  ;;  %v9768_v1 = vsel %vm185_vm0, %v2009_v59, %v2010_v51  ;;  %v7294_v7 = vld [vmem:[%s11458_s3 + $0x300] sm:$0xff] }
 0x382   :  { %6406 = vmatprep.subr.mxu1 %v7264_v15  ;;  %6363 = vmatpush3.msra.mxu0 %v7265_v27  ;;  %v9775_v15 = vsel %vm335_vm2, %v2031_v29, %v2032_v63  ;;  %v7295_v27 = vld [vmem:[%s11460_s5 + $0xf8] sm:$0xff]  ;;  %v7307_v59 = vld [vmem:[%s11460_s5 + $0xe0] sm:$0xff] }
 0x383   :  { %6407 = vmatpush3.msra.mxu1 %v7266_v36  ;;  %6364 = vmatprep.subr.mxu0 %v7267_v5  ;;  %v9785_v36 = vsel %vm323_vm1, %v2021_v62, %v9749_v52  ;;  %v9788_v5 = vrot.slane %v9483_v26, 4  ;;  %v7297_v62 = vld [vmem:[%s11460_s5 + $0x78] sm:$0xff]  ;;  %v7309_v29 = vld [vmem:[%s11460_s5 + $0x60] sm:$0xff] }
 0x384   :  { %6408 = vmatprep.subr.mxu1 %v7268_v20  ;;  %6365 = vmatpush3.msra.mxu0 %v7269_v44  ;;  %v7296_v20 = vld [vmem:[%s11460_s5 + $0x1f8] sm:$0xff]  ;;  %v9798_v44 = vsel %vm86_vm3, %v2043_v14, %v9759_v16  ;;  %v7299_v14 = vld [vmem:[%s11460_s5 + $0xf0] sm:$0xff] }
 0x385   :  { %6409 = vmatpush3.msra.mxu1 %v7270_v46  ;;  %6366 = vmatprep.subr.mxu0 %v7271_v42  ;;  %v9801_v46 = vrot.slane %v9483_v26, 6  ;;  %v7298_v42 = vld [vmem:[%s11460_s5 + $0x178] sm:$0xff] }
 0x386   :  { %6410 = vmatprep.subr.mxu1 %v7272_v17  ;;  %6367 = vmatpush3.msra.mxu0 %v7273_v53  ;;  %v7300_v17 = vld [vmem:[%s11460_s5 + $0x1f0] sm:$0xff] }
 0x387   :  { %6411 = vmatpush3.msra.mxu1 %v7274_v54  ;;  %6368 = vmatprep.subr.mxu0 %v7275_v58  ;;  %v7301_v53 = vld [vmem:[%s11460_s5 + $0x70] sm:$0xff]  ;;  %v9821_v54 = vsel %vm185_vm0, %v2010_v51, %v9788_v5  ;;  %v9824_v58 = vrot.slane %v9507_v3, 5 }
 0x388   :  { %6412 = vmatprep.subr.mxu1 %v7276_v23  ;;  %6369 = vmatpush3.msra.mxu0 %v7277_v50  ;;  %v7302_v23 = vld [vmem:[%s11460_s5 + $0x170] sm:$0xff]  ;;  %v9832_v50 = vsel %vm335_vm2, %v2032_v63, %v9801_v46  ;;  %v7313_v63 = vld [vmem:[%s11460_s5 + $0x58] sm:$0xff] }
 0x389   :  { %6413 = vmatpush3.msra.mxu1 %v7278_v56  ;;  %6370 = vmatprep.subr.mxu0 %v7279_v57  ;;  %v9835_v56 = vrot.slane %v9507_v3, 7  ;;  %v7303_v57 = vld [vmem:[%s11460_s5 + $0xe8] sm:$0xff] }
 0x38a   :  { %6414 = vmatprep.subr.mxu1 %v7280_v32  ;;  %6371 = vmatpush3.msra.mxu0 %v7281_v49  ;;  %v9844_v32 = vsel %vm323_vm1, %v9749_v52, %v9824_v58  ;;  %v7304_v49 = vld [vmem:[%s11460_s5 + $0x1e8] sm:$0xff] }
 0x38b   :  { %6415 = vmatpush3.msra.mxu1 %v7282_v19  ;;  %6372 = vmatprep.subr.mxu0 %v7283_v24  ;;  %v9853_v19 = vsel %vm86_vm3, %v9759_v16, %v9835_v56  ;;  %v7305_v24 = vld [vmem:[%s11460_s5 + $0x68] sm:$0xff] }
 0x38c   :  { %6416 = vmatprep.subr.mxu1 %v7284_v60  ;;  %6373 = vmatpush3.msra.mxu0 %v7285_v35  ;;  %v9860_v60 = vrot.slane %v9507_v3, 4  ;;  %v7306_v35 = vld [vmem:[%s11460_s5 + $0x168] sm:$0xff] }
 0x38d   :  { %6417 = vmatpush3.msra.mxu1 %v7286_v9  ;;  %6374 = vmatprep.subr.mxu0 %v7287_v8  ;;  %v9869_v9 = vrot.slane %v9507_v3, 6  ;;  %v7308_v8 = vld [vmem:[%s11460_s5 + $0x1e0] sm:$0xff] }
 0x38e   :  { %6418 = vmatprep.subr.mxu1 %v7288_v30  ;;  %6375 = vmatpush3.msra.mxu0 %v7289_v0  ;;  %v9880_v30 = vsel %vm185_vm0, %v9788_v5, %v9860_v60  ;;  %v7310_v0 = vld [vmem:[%s11460_s5 + $0x160] sm:$0xff]  ;;  %vm3310_vm0 = vcmask 523264  }
 0x38f   :  { %6419 = vmatpush3.msra.mxu1 %v7290_v13  ;;  %6376 = vmatprep.subr.mxu0 %v7291_v31  ;;  %v9889_v51 = vsel %vm335_vm2, %v9801_v46, %v9869_v9  ;;  %v7311_v13 = vld [vmem:[%s11460_s5 + $0xd8] sm:$0xff] }
 0x390   :  { %6420 = vmatprep.subr.mxu1 %v7292_v22  ;;  %6377 = vmatpush3.msra.mxu0 %v7293_v40  ;;  %v7312_v31 = vld [vmem:[%s11460_s5 + $0x1d8] sm:$0xff]  ;;  %v7315_v40 = vld [vmem:[%s11460_s5 + $0xd0] sm:$0xff] }
 0x391   :  { %6421 = vmatpush3.msra.mxu1 %v7294_v7  ;;  %2288 = vmatmul.mubr.f32.vlgmr.msra.gmra.mxu0 %v9768_v1  ;;  %v7314_v22 = vld [vmem:[%s11460_s5 + $0x158] sm:$0xff]  ;;  %v7316_v7 = vld [vmem:[%s11460_s5 + $0x1d0] sm:$0xff] }
 0x392   :  { %2373 = vmatmul.mubr.f32.vlgmr.msra.gmra.mxu1 %v9775_v15  ;;  %6434 = vmatprep.subr.mxu0 %v7295_v27  ;;  %v7317_v27 = vld [vmem:[%s11460_s5 + $0x50] sm:$0xff] }
 0x393   :  { %6475 = vmatprep.subr.mxu1 %v7296_v20  ;;  %2292 = vmatprep.mubr.f32.mxu0 %v9785_v36  ;;  %v7318_v20 = vld [vmem:[%s11460_s5 + $0x150] sm:$0xff] }
 0x394   :  { %2377 = vmatprep.mubr.f32.mxu1 %v9798_v44  ;;  %6435 = vmatpush3.msra.mxu0 %v7297_v62  ;;  %v7319_v62 = vld [vmem:[%s11460_s5 + $0xc8] sm:$0xff] }
 0x395   :  { %6476 = vmatpush3.msra.mxu1 %v7298_v42  ;;  %6436 = vmatprep.subr.mxu0 %v7299_v14  ;;  %v7320_v42 = vld [vmem:[%s11460_s5 + $0x1c8] sm:$0xff] }
 0x396   :  { %6477 = vmatprep.subr.mxu1 %v7300_v17  ;;  %6437 = vmatpush3.msra.mxu0 %v7301_v53  ;;  %v7321_v14 = vld [vmem:[%s11460_s5 + $0x48] sm:$0xff]  ;;  %v7323_v53 = vld [vmem:[%s11460_s5 + $0xc0] sm:$0xff] }
 0x397   :  { %6478 = vmatpush3.msra.mxu1 %v7302_v23  ;;  %2293 = vmatmul.mubr.f32.gmra.mxu0 %v9821_v54  ;;  %v7322_v17 = vld [vmem:[%s11460_s5 + $0x148] sm:$0xff]  ;;  %v7324_v23 = vld [vmem:[%s11460_s5 + $0x1c0] sm:$0xff] }
 0x398   :  { %2378 = vmatmul.mubr.f32.gmra.mxu1 %v9832_v50  ;;  %6438 = vmatprep.subr.mxu0 %v7303_v57  ;;  %v7326_v57 = vld [vmem:[%s11460_s5 + $0x140] sm:$0xff] }
 0x399   :  { %6479 = vmatprep.subr.mxu1 %v7304_v49  ;;  %2297 = vmatprep.mubr.f32.mxu0 %v9844_v32  ;;  %v7328_v49 = vld [vmem:[%s11460_s5 + $0x1b8] sm:$0xff] }
 0x39a   :  { %2382 = vmatprep.mubr.f32.mxu1 %v9853_v19  ;;  %6439 = vmatpush3.msra.mxu0 %v7305_v24  ;;  %v7329_v24 = vld [vmem:[%s11460_s5 + $0x38] sm:$0xff] }
 0x39b   :  { %6480 = vmatpush3.msra.mxu1 %v7306_v35  ;;  %6440 = vmatprep.subr.mxu0 %v7307_v59  ;;  %v7330_v35 = vld [vmem:[%s11460_s5 + $0x138] sm:$0xff]  ;;  %v7331_v59 = vld [vmem:[%s11460_s5 + $0xb0] sm:$0xff] }
 0x39c   :  { %6481 = vmatprep.subr.mxu1 %v7308_v8  ;;  %6441 = vmatpush3.msra.mxu0 %v7309_v29  ;;  %v7332_v8 = vld [vmem:[%s11460_s5 + $0x1b0] sm:$0xff] }
 0x39d   :  { %6482 = vmatpush3.msra.mxu1 %v7310_v0  ;;  %2298 = vmatmul.mubr.f32.gmra.mxu0 %v9880_v30  ;;  %v7333_v29 = vld [vmem:[%s11460_s5 + $0x30] sm:$0xff] }
 0x39e   :  { %2383 = vmatmul.mubr.f32.gmra.mxu1 %v9889_v51  ;;  %6442 = vmatprep.subr.mxu0 %v7311_v13  ;;  %v7334_v0 = vld [vmem:[%s11460_s5 + $0x130] sm:$0xff]  ;;  %v7335_v13 = vld [vmem:[%s11460_s5 + $0xa8] sm:$0xff] }
 0x39f   :  { %6483 = vmatprep.subr.mxu1 %v7312_v31  ;;  %2302 = vmatprep.mubr.f32.mxu0 %v9824_v58  ;;  %v7336_v31 = vld [vmem:[%s11460_s5 + $0x1a8] sm:$0xff] }
 0x3a0   :  { %2387 = vmatprep.mubr.f32.mxu1 %v9835_v56  ;;  %6443 = vmatpush3.msra.mxu0 %v7313_v63  ;;  %v7337_v63 = vld [vmem:[%s11460_s5 + $0x28] sm:$0xff] }
 0x3a1   :  { %6484 = vmatpush3.msra.mxu1 %v7314_v22  ;;  %6444 = vmatprep.subr.mxu0 %v7315_v40  ;;  %v7338_v22 = vld [vmem:[%s11460_s5 + $0x128] sm:$0xff]  ;;  %v7339_v40 = vld [vmem:[%s11460_s5 + $0xa0] sm:$0xff] }
 0x3a2   :  { %6485 = vmatprep.subr.mxu1 %v7316_v7  ;;  %6445 = vmatpush3.msra.mxu0 %v7317_v27  ;;  %v7340_v7 = vld [vmem:[%s11460_s5 + $0x1a0] sm:$0xff] }
 0x3a3   :  { %6486 = vmatpush3.msra.mxu1 %v7318_v20  ;;  %2303 = vmatmul.mubr.f32.gmra.mxu0 %v9860_v60  ;;  %v7341_v27 = vld [vmem:[%s11460_s5 + $0x20] sm:$0xff] }
 0x3a4   :  { %2388 = vmatmul.mubr.f32.gmra.mxu1 %v9869_v9  ;;  %6446 = vmatprep.subr.mxu0 %v7319_v62  ;;  %v7342_v20 = vld [vmem:[%s11460_s5 + $0x120] sm:$0xff]  ;;  %v7343_v62 = vld [vmem:[%s11460_s5 + $0x98] sm:$0xff] }
 0x3a5   :  { %6487 = vmatprep.subr.mxu1 %v7320_v42  ;;  %6447 = vmatpush3.msra.mxu0 %v7321_v14  ;;  %v7344_v42 = vld [vmem:[%s11460_s5 + $0x198] sm:$0xff] }
 0x3a6   :  { %2478 = vmatprep.mubr.f32.mxu0 %v9486_v33  ;;  %6488 = vmatpush3.msra.mxu1 %v7322_v17  ;;  %v7325_v33 = vld [vmem:[%s11460_s5 + $0x40] sm:$0xff]  ;;  %v7345_v14 = vld [vmem:[%s11460_s5 + $0x18] sm:$0xff] }
 0x3a7   :  { %2558 = vmatprep.mubr.f32.mxu1 %v9489_v10  ;;  %6448 = vmatprep.subr.mxu0 %v7323_v53  ;;  %v7327_v10 = vld [vmem:[%s11460_s5 + $0xb8] sm:$0xff]  ;;  %v7347_v53 = vld [vmem:[%s11460_s5 + $0x90] sm:$0xff] }
 0x3a8   :  { %6489 = vmatprep.subr.mxu1 %v7324_v23  ;;  %6449 = vmatpush3.msra.mxu0 %v7325_v33  ;;  %v7346_v17 = vld [vmem:[%s11460_s5 + $0x118] sm:$0xff]  ;;  %v7348_v23 = vld [vmem:[%s11460_s5 + $0x190] sm:$0xff] }
 0x3a9   :  { %6490 = vmatpush3.msra.mxu1 %v7326_v57  ;;  %6450 = vmatprep.subr.mxu0 %v7327_v10  ;;  %v7349_v33 = vld [vmem:[%s11460_s5 + $0x10] sm:$0xff]  ;;  %v7351_v10 = vld [vmem:[%s11460_s5 + $0x88] sm:$0xff] }
 0x3aa   :  { %6491 = vmatprep.subr.mxu1 %v7328_v49  ;;  %6451 = vmatpush3.msra.mxu0 %v7329_v24  ;;  %v7350_v57 = vld [vmem:[%s11460_s5 + $0x110] sm:$0xff]  ;;  %v7352_v49 = vld [vmem:[%s11460_s5 + $0x188] sm:$0xff] }
 0x3ab   :  { %6492 = vmatpush3.msra.mxu1 %v7330_v35  ;;  %6452 = vmatprep.subr.mxu0 %v7331_v59  ;;  %v7353_v24 = vld [vmem:[%s11460_s5 + $0x8] sm:$0xff]  ;;  %v7355_v59 = vld [vmem:[%s11460_s5 + $0x80] sm:$0xff] }
 0x3ac   :  { %6493 = vmatprep.subr.mxu1 %v7332_v8  ;;  %6453 = vmatpush3.msra.mxu0 %v7333_v29  ;;  %v7354_v35 = vld [vmem:[%s11460_s5 + $0x108] sm:$0xff]  ;;  %v7356_v8 = vld [vmem:[%s11460_s5 + $0x180] sm:$0xff] }
 0x3ad   :  { %6494 = vmatpush3.msra.mxu1 %v7334_v0  ;;  %6454 = vmatprep.subr.mxu0 %v7335_v13  ;;  %v7357_v29 = vld [vmem:[%s11460_s5] sm:$0xff]  ;;  %v7359_v13 = vld [vmem:[%s11460_s5 + $0x2f8] sm:$0xff] }
 0x3ae   :  { %6495 = vmatprep.subr.mxu1 %v7336_v31  ;;  %6455 = vmatpush3.msra.mxu0 %v7337_v63  ;;  %v7358_v0 = vld [vmem:[%s11460_s5 + $0x100] sm:$0xff]  ;;  %v7360_v31 = vld [vmem:[%s11460_s5 + $0x3f8] sm:$0xff]  ;;  %v7363_v63 = vld [vmem:[%s11460_s5 + $0x2f0] sm:$0xff] }
 0x3af   :  { %6496 = vmatpush3.msra.mxu1 %v7338_v22  ;;  %6456 = vmatprep.subr.mxu0 %v7339_v40  ;;  %v7364_v22 = vld [vmem:[%s11460_s5 + $0x3f0] sm:$0xff] }
 0x3b0   :  { %6497 = vmatprep.subr.mxu1 %v7340_v7  ;;  %6457 = vmatpush3.msra.mxu0 %v7341_v27  ;;  %v7365_v40 = vld [vmem:[%s11460_s5 + $0x270] sm:$0xff]  ;;  %v7367_v27 = vld [vmem:[%s11460_s5 + $0x2e8] sm:$0xff] }
 0x3b1   :  { %6498 = vmatpush3.msra.mxu1 %v7342_v20  ;;  %6458 = vmatprep.subr.mxu0 %v7343_v62  ;;  %v7366_v7 = vld [vmem:[%s11460_s5 + $0x370] sm:$0xff]  ;;  %v7368_v20 = vld [vmem:[%s11460_s5 + $0x3e8] sm:$0xff] }
 0x3b2   :  { %6499 = vmatprep.subr.mxu1 %v7344_v42  ;;  %6459 = vmatpush3.msra.mxu0 %v7345_v14  ;;  %v7369_v62 = vld [vmem:[%s11460_s5 + $0x268] sm:$0xff]  ;;  %v7371_v14 = vld [vmem:[%s11460_s5 + $0x2e0] sm:$0xff] }
 0x3b3   :  { %6500 = vmatpush3.msra.mxu1 %v7346_v17  ;;  %6460 = vmatprep.subr.mxu0 %v7347_v53  ;;  %v7370_v42 = vld [vmem:[%s11460_s5 + $0x368] sm:$0xff]  ;;  %v7374_v17 = vld [vmem:[%s11460_s5 + $0x360] sm:$0xff]  ;;  %v7375_v53 = vld [vmem:[%s11460_s5 + $0x2d8] sm:$0xff] }
 0x3b4   :  { %6501 = vmatprep.subr.mxu1 %v7348_v23  ;;  %6461 = vmatpush3.msra.mxu0 %v7349_v33  ;;  %v7376_v23 = vld [vmem:[%s11460_s5 + $0x3d8] sm:$0xff] }
 0x3b5   :  { %6502 = vmatpush3.msra.mxu1 %v7350_v57  ;;  %6462 = vmatprep.subr.mxu0 %v7351_v10  ;;  %v7377_v33 = vld [vmem:[%s11460_s5 + $0x258] sm:$0xff]  ;;  %v7379_v57 = vld [vmem:[%s11460_s5 + $0x2d0] sm:$0xff] }
 0x3b6   :  { %6503 = vmatprep.subr.mxu1 %v7352_v49  ;;  %6463 = vmatpush3.msra.mxu0 %v7353_v24  ;;  %v7380_v10 = vld [vmem:[%s11460_s5 + $0x3d0] sm:$0xff]  ;;  %v7384_v24 = vld [vmem:[%s11460_s5 + $0x3c8] sm:$0xff] }
 0x3b7   :  { %6504 = vmatpush3.msra.mxu1 %v7354_v35  ;;  %6464 = vmatprep.subr.mxu0 %v7355_v59  ;;  %v7382_v49 = vld [vmem:[%s11460_s5 + $0x350] sm:$0xff]  ;;  %v7385_v35 = vld [vmem:[%s11460_s5 + $0x248] sm:$0xff] }
 0x3b8   :  { %6505 = vmatprep.subr.mxu1 %v7356_v8  ;;  %6465 = vmatpush3.msra.mxu0 %v7357_v29  ;;  %v7386_v59 = vld [vmem:[%s11460_s5 + $0x348] sm:$0xff]  ;;  %v7387_v8 = vld [vmem:[%s11460_s5 + $0x2c0] sm:$0xff] }
 0x3b9   :  { %6506 = vmatpush3.msra.mxu1 %v7358_v0  ;;  %2479 = vmatmul.mubr.f32.vlgmr.msra.gmra.mxu0 %v9475_v28  ;;  %v7361_v28 = vld [vmem:[%s11460_s5 + $0x278] sm:$0xff]  ;;  %v7388_v29 = vld [vmem:[%s11460_s5 + $0x3c0] sm:$0xff] }
 0x3ba   :  { %2559 = vmatmul.mubr.f32.vlgmr.msra.gmra.mxu1 %v9492_v12  ;;  %6516 = vmatprep.subr.mxu0 %v7359_v13  ;;  %v7362_v12 = vld [vmem:[%s11460_s5 + $0x378] sm:$0xff]  ;;  %v7389_v0 = vld [vmem:[%s11460_s5 + $0x240] sm:$0xff] }
 0x3bb   :  { %6557 = vmatprep.subr.mxu1 %v7360_v31  ;;  %2483 = vmatprep.mubr.f32.mxu0 %v9523_v61  ;;  %v7390_v13 = vld [vmem:[%s11460_s5 + $0x340] sm:$0xff]  ;;  %v7391_v31 = vld [vmem:[%s11460_s5 + $0x2b8] sm:$0xff] }
 0x3bc   :  { %2563 = vmatprep.mubr.f32.mxu1 %v9527_v45  ;;  %6517 = vmatpush3.msra.mxu0 %v7361_v28  ;;  %v7392_v28 = vld [vmem:[%s11460_s5 + $0x3b8] sm:$0xff] }
 0x3bd   :  { %6558 = vmatpush3.msra.mxu1 %v7362_v12  ;;  %6518 = vmatprep.subr.mxu0 %v7363_v63  ;;  %v7393_v12 = vld [vmem:[%s11460_s5 + $0x238] sm:$0xff] }
 0x3be   :  { %6559 = vmatprep.subr.mxu1 %v7364_v22  ;;  %6519 = vmatpush3.msra.mxu0 %v7365_v40  ;;  %v7394_v63 = vld [vmem:[%s11460_s5 + $0x338] sm:$0xff]  ;;  %v7395_v22 = vld [vmem:[%s11460_s5 + $0x2b0] sm:$0xff] }
 0x3bf   :  { %6560 = vmatpush3.msra.mxu1 %v7366_v7  ;;  %2484 = vmatmul.mubr.f32.gmra.mxu0 %v9473_v4  ;;  %v7396_v40 = vld [vmem:[%s11460_s5 + $0x3b0] sm:$0xff] }
 0x3c0   :  { %2564 = vmatmul.mubr.f32.gmra.mxu1 %v9537_v47  ;;  %6520 = vmatprep.subr.mxu0 %v7367_v27  ;;  %v7397_v7 = vld [vmem:[%s11460_s5 + $0x230] sm:$0xff] }
 0x3c1   :  { %6561 = vmatprep.subr.mxu1 %v7368_v20  ;;  %2488 = vmatprep.mubr.f32.mxu0 %v9499_v6  ;;  %v7372_v6 = vld [vmem:[%s11460_s5 + $0x3e0] sm:$0xff]  ;;  %v7398_v27 = vld [vmem:[%s11460_s5 + $0x330] sm:$0xff]  ;;  %v7399_v20 = vld [vmem:[%s11460_s5 + $0x2a8] sm:$0xff] }
 0x3c2   :  { %2568 = vmatprep.mubr.f32.mxu1 %v9502_v38  ;;  %6521 = vmatpush3.msra.mxu0 %v7369_v62  ;;  %v7373_v38 = vld [vmem:[%s11460_s5 + $0x260] sm:$0xff]  ;;  %v7400_v62 = vld [vmem:[%s11460_s5 + $0x3a8] sm:$0xff] }
 0x3c3   :  { %6562 = vmatpush3.msra.mxu1 %v7370_v42  ;;  %6522 = vmatprep.subr.mxu0 %v7371_v14  ;;  %v7401_v42 = vld [vmem:[%s11460_s5 + $0x228] sm:$0xff] }
 0x3c4   :  { %6563 = vmatprep.subr.mxu1 %v7372_v6  ;;  %6523 = vmatpush3.msra.mxu0 %v7373_v38  ;;  %v7402_v14 = vld [vmem:[%s11460_s5 + $0x328] sm:$0xff]  ;;  %v7403_v6 = vld [vmem:[%s11460_s5 + $0x2a0] sm:$0xff] }
 0x3c5   :  { %6564 = vmatpush3.msra.mxu1 %v7374_v17  ;;  %2489 = vmatmul.mubr.f32.gmra.mxu0 %v9483_v26  ;;  %v7404_v38 = vld [vmem:[%s11460_s5 + $0x3a0] sm:$0xff] }
 0x3c6   :  { %2569 = vmatmul.mubr.f32.gmra.mxu1 %v9505_v41  ;;  %6524 = vmatprep.subr.mxu0 %v7375_v53  ;;  %v7378_v41 = vld [vmem:[%s11460_s5 + $0x358] sm:$0xff]  ;;  %v7405_v17 = vld [vmem:[%s11460_s5 + $0x220] sm:$0xff] }
 0x3c7   :  { %6565 = vmatprep.subr.mxu1 %v7376_v23  ;;  %6525 = vmatpush3.msra.mxu0 %v7377_v33  ;;  %v7406_v53 = vld [vmem:[%s11460_s5 + $0x320] sm:$0xff]  ;;  %v7407_v23 = vld [vmem:[%s11460_s5 + $0x298] sm:$0xff] }
 0x3c8   :  { %2638 = vmatprep.mubr.f32.mxu0 %v9646_v21  ;;  %6566 = vmatpush3.msra.mxu1 %v7378_v41  ;;  %v7381_v21 = vld [vmem:[%s11460_s5 + $0x250] sm:$0xff]  ;;  %v7408_v33 = vld [vmem:[%s11460_s5 + $0x398] sm:$0xff] }
 0x3c9   :  { %2718 = vmatprep.mubr.f32.mxu1 %v9655_v25  ;;  %6526 = vmatprep.subr.mxu0 %v7379_v57  ;;  %v7383_v25 = vld [vmem:[%s11460_s5 + $0x2c8] sm:$0xff]  ;;  %v7409_v41 = vld [vmem:[%s11460_s5 + $0x218] sm:$0xff] }
 0x3ca   :  { %6567 = vmatprep.subr.mxu1 %v7380_v10  ;;  %6527 = vmatpush3.msra.mxu0 %v7381_v21  ;;  %v7410_v57 = vld [vmem:[%s11460_s5 + $0x318] sm:$0xff]  ;;  %v7411_v10 = vld [vmem:[%s11460_s5 + $0x290] sm:$0xff] }
 0x3cb   :  { %6568 = vmatpush3.msra.mxu1 %v7382_v49  ;;  %6528 = vmatprep.subr.mxu0 %v7383_v25  ;;  %v7412_v21 = vld [vmem:[%s11460_s5 + $0x390] sm:$0xff] }
 0x3cc   :  { %6569 = vmatprep.subr.mxu1 %v7384_v24  ;;  %6529 = vmatpush3.msra.mxu0 %v7385_v35  ;;  %v7413_v49 = vld [vmem:[%s11460_s5 + $0x210] sm:$0xff]  ;;  %v7415_v24 = vld [vmem:[%s11460_s5 + $0x288] sm:$0xff] }
 0x3cd   :  { %6570 = vmatpush3.msra.mxu1 %v7386_v59  ;;  %6530 = vmatprep.subr.mxu0 %v7387_v8  ;;  %v7414_v25 = vld [vmem:[%s11460_s5 + $0x310] sm:$0xff]  ;;  %v7416_v35 = vld [vmem:[%s11460_s5 + $0x388] sm:$0xff] }
 0x3ce   :  { %6571 = vmatprep.subr.mxu1 %v7388_v29  ;;  %6531 = vmatpush3.msra.mxu0 %v7389_v0  ;;  %v7417_v59 = vld [vmem:[%s11460_s5 + $0x208] sm:$0xff]  ;;  %v7419_v29 = vld [vmem:[%s11460_s5 + $0x280] sm:$0xff] }
 0x3cf   :  { %6572 = vmatpush3.msra.mxu1 %v7390_v13  ;;  %6532 = vmatprep.subr.mxu0 %v7391_v31  ;;  %v7418_v8 = vld [vmem:[%s11460_s5 + $0x308] sm:$0xff]  ;;  %v7420_v0 = vld [vmem:[%s11460_s5 + $0x380] sm:$0xff] }
 0x3d0   :  { %6573 = vmatprep.subr.mxu1 %v7392_v28  ;;  %6533 = vmatpush3.msra.mxu0 %v7393_v12  ;;  %v7421_v13 = vld [vmem:[%s11460_s5 + $0x200] sm:$0xff]  ;;  %v7423_v28 = vld [vmem:[%s11460_s5 + $0x4f8] sm:$0xff] }
 0x3d1   :  { %6574 = vmatpush3.msra.mxu1 %v7394_v63  ;;  %6534 = vmatprep.subr.mxu0 %v7395_v22  ;;  %v7422_v31 = vld [vmem:[%s11460_s5 + $0x300] sm:$0xff]  ;;  %v7424_v12 = vld [vmem:[%s11460_s5 + $0x5f8] sm:$0xff]  ;;  %v7427_v63 = vld [vmem:[%s11460_s5 + $0x4f0] sm:$0xff] }
 0x3d2   :  { %6575 = vmatprep.subr.mxu1 %v7396_v40  ;;  %6535 = vmatpush3.msra.mxu0 %v7397_v7  ;;  %v7428_v22 = vld [vmem:[%s11460_s5 + $0x5f0] sm:$0xff] }
 0x3d3   :  { %6576 = vmatpush3.msra.mxu1 %v7398_v27  ;;  %6536 = vmatprep.subr.mxu0 %v7399_v20  ;;  %v7429_v40 = vld [vmem:[%s11460_s5 + $0x470] sm:$0xff]  ;;  %v7431_v27 = vld [vmem:[%s11460_s5 + $0x4e8] sm:$0xff] }
 0x3d4   :  { %6577 = vmatprep.subr.mxu1 %v7400_v62  ;;  %6537 = vmatpush3.msra.mxu0 %v7401_v42  ;;  %v7430_v7 = vld [vmem:[%s11460_s5 + $0x570] sm:$0xff]  ;;  %v7432_v20 = vld [vmem:[%s11460_s5 + $0x5e8] sm:$0xff] }
 0x3d5   :  { %6578 = vmatpush3.msra.mxu1 %v7402_v14  ;;  %6538 = vmatprep.subr.mxu0 %v7403_v6  ;;  %v7433_v62 = vld [vmem:[%s11460_s5 + $0x468] sm:$0xff]  ;;  %v7435_v14 = vld [vmem:[%s11460_s5 + $0x4e0] sm:$0xff] }
 0x3d6   :  { %6579 = vmatprep.subr.mxu1 %v7404_v38  ;;  %6539 = vmatpush3.msra.mxu0 %v7405_v17  ;;  %v7434_v42 = vld [vmem:[%s11460_s5 + $0x568] sm:$0xff]  ;;  %v7438_v6 = vld [vmem:[%s11460_s5 + $0x560] sm:$0xff]  ;;  %v7439_v38 = vld [vmem:[%s11460_s5 + $0x4d8] sm:$0xff] }
 0x3d7   :  { %6580 = vmatpush3.msra.mxu1 %v7406_v53  ;;  %6540 = vmatprep.subr.mxu0 %v7407_v23  ;;  %v7440_v17 = vld [vmem:[%s11460_s5 + $0x5d8] sm:$0xff]  ;;  %v7444_v23 = vld [vmem:[%s11460_s5 + $0x5d0] sm:$0xff] }
 0x3d8   :  { %6581 = vmatprep.subr.mxu1 %v7408_v33  ;;  %6541 = vmatpush3.msra.mxu0 %v7409_v41  ;;  %v7441_v53 = vld [vmem:[%s11460_s5 + $0x458] sm:$0xff]  ;;  %v7446_v33 = vld [vmem:[%s11460_s5 + $0x550] sm:$0xff]  ;;  %v7448_v41 = vld [vmem:[%s11460_s5 + $0x5c8] sm:$0xff] }
 0x3d9   :  { %6582 = vmatpush3.msra.mxu1 %v7410_v57  ;;  %6542 = vmatprep.subr.mxu0 %v7411_v10  ;;  %v7449_v57 = vld [vmem:[%s11460_s5 + $0x448] sm:$0xff] }
 0x3da   :  { %6583 = vmatprep.subr.mxu1 %v7412_v21  ;;  %6543 = vmatpush3.msra.mxu0 %v7413_v49  ;;  %v7450_v10 = vld [vmem:[%s11460_s5 + $0x548] sm:$0xff]  ;;  %v7451_v21 = vld [vmem:[%s11460_s5 + $0x4c0] sm:$0xff] }
 0x3db   :  { %6584 = vmatpush3.msra.mxu1 %v7414_v25  ;;  %6544 = vmatprep.subr.mxu0 %v7415_v24  ;;  %v7452_v49 = vld [vmem:[%s11460_s5 + $0x5c0] sm:$0xff] }
 0x3dc   :  { %6585 = vmatprep.subr.mxu1 %v7416_v35  ;;  %6545 = vmatpush3.msra.mxu0 %v7417_v59  ;;  %v7453_v25 = vld [vmem:[%s11460_s5 + $0x440] sm:$0xff]  ;;  %v7455_v35 = vld [vmem:[%s11460_s5 + $0x4b8] sm:$0xff] }
 0x3dd   :  { %6586 = vmatpush3.msra.mxu1 %v7418_v8  ;;  %6546 = vmatprep.subr.mxu0 %v7419_v29  ;;  %v7454_v24 = vld [vmem:[%s11460_s5 + $0x540] sm:$0xff]  ;;  %v7456_v59 = vld [vmem:[%s11460_s5 + $0x5b8] sm:$0xff] }
 0x3de   :  { %6587 = vmatprep.subr.mxu1 %v7420_v0  ;;  %6547 = vmatpush3.msra.mxu0 %v7421_v13  ;;  %v7457_v8 = vld [vmem:[%s11460_s5 + $0x438] sm:$0xff]  ;;  %v7459_v0 = vld [vmem:[%s11460_s5 + $0x4b0] sm:$0xff] }
 0x3df   :  { %6588 = vmatpush3.msra.mxu1 %v7422_v31  ;;  %2639 = vmatmul.mubr.f32.vlgmr.msra.gmra.mxu0 %v9768_v1  ;;  %v7425_v1 = vld [vmem:[%s11460_s5 + $0x478] sm:$0xff]  ;;  %v7460_v13 = vld [vmem:[%s11460_s5 + $0x5b0] sm:$0xff] }
 0x3e0   :  { %2719 = vmatmul.mubr.f32.vlgmr.msra.gmra.mxu1 %v9775_v15  ;;  %6598 = vmatprep.subr.mxu0 %v7423_v28  ;;  %v7426_v15 = vld [vmem:[%s11460_s5 + $0x578] sm:$0xff]  ;;  %v7461_v31 = vld [vmem:[%s11460_s5 + $0x430] sm:$0xff] }
 0x3e1   :  { %6639 = vmatprep.subr.mxu1 %v7424_v12  ;;  %2643 = vmatprep.mubr.f32.mxu0 %v9785_v36  ;;  %v7458_v29 = vld [vmem:[%s11460_s5 + $0x538] sm:$0xff]  ;;  %v7462_v28 = vld [vmem:[%s11460_s5 + $0x530] sm:$0xff]  ;;  %v7463_v12 = vld [vmem:[%s11460_s5 + $0x4a8] sm:$0xff] }
 0x3e2   :  { %2723 = vmatprep.mubr.f32.mxu1 %v9798_v44  ;;  %6599 = vmatpush3.msra.mxu0 %v7425_v1  ;;  %v7464_v1 = vld [vmem:[%s11460_s5 + $0x5a8] sm:$0xff] }
 0x3e3   :  { %6640 = vmatpush3.msra.mxu1 %v7426_v15  ;;  %6600 = vmatprep.subr.mxu0 %v7427_v63  ;;  %v7465_v15 = vld [vmem:[%s11460_s5 + $0x428] sm:$0xff] }
 0x3e4   :  { %6641 = vmatprep.subr.mxu1 %v7428_v22  ;;  %6601 = vmatpush3.msra.mxu0 %v7429_v40  ;;  %v7466_v63 = vld [vmem:[%s11460_s5 + $0x528] sm:$0xff]  ;;  %v7467_v22 = vld [vmem:[%s11460_s5 + $0x4a0] sm:$0xff] }
 0x3e5   :  { %6642 = vmatpush3.msra.mxu1 %v7430_v7  ;;  %2644 = vmatmul.mubr.f32.gmra.mxu0 %v9821_v54  ;;  %v7468_v40 = vld [vmem:[%s11460_s5 + $0x5a0] sm:$0xff] }
 0x3e6   :  { %2724 = vmatmul.mubr.f32.gmra.mxu1 %v9832_v50  ;;  %6602 = vmatprep.subr.mxu0 %v7431_v27  ;;  %v7469_v7 = vld [vmem:[%s11460_s5 + $0x420] sm:$0xff] }
 0x3e7   :  { %6643 = vmatprep.subr.mxu1 %v7432_v20  ;;  %2648 = vmatprep.mubr.f32.mxu0 %v9749_v52  ;;  %v7436_v52 = vld [vmem:[%s11460_s5 + $0x5e0] sm:$0xff]  ;;  %v7471_v20 = vld [vmem:[%s11460_s5 + $0x498] sm:$0xff] }
 0x3e8   :  { %2728 = vmatprep.mubr.f32.mxu1 %v9759_v16  ;;  %6603 = vmatpush3.msra.mxu0 %v7433_v62  ;;  %v7437_v16 = vld [vmem:[%s11460_s5 + $0x460] sm:$0xff]  ;;  %v7472_v62 = vld [vmem:[%s11460_s5 + $0x598] sm:$0xff] }
 0x3e9   :  { %6644 = vmatpush3.msra.mxu1 %v7434_v42  ;;  %6604 = vmatprep.subr.mxu0 %v7435_v14  ;;  %v7470_v27 = vld [vmem:[%s11460_s5 + $0x520] sm:$0xff]  ;;  %v7473_v42 = vld [vmem:[%s11460_s5 + $0x418] sm:$0xff] }
 0x3ea   :  { %6645 = vmatprep.subr.mxu1 %v7436_v52  ;;  %6605 = vmatpush3.msra.mxu0 %v7437_v16  ;;  %v7474_v14 = vld [vmem:[%s11460_s5 + $0x518] sm:$0xff]  ;;  %v7475_v52 = vld [vmem:[%s11460_s5 + $0x490] sm:$0xff] }
 0x3eb   :  { %6646 = vmatpush3.msra.mxu1 %v7438_v6  ;;  %2649 = vmatmul.mubr.f32.gmra.mxu0 %v9788_v5  ;;  %v7442_v5 = vld [vmem:[%s11460_s5 + $0x558] sm:$0xff]  ;;  %v7476_v16 = vld [vmem:[%s11460_s5 + $0x590] sm:$0xff] }
 0x3ec   :  { %2729 = vmatmul.mubr.f32.gmra.mxu1 %v9801_v46  ;;  %6606 = vmatprep.subr.mxu0 %v7439_v38  ;;  %v7443_v46 = vld [vmem:[%s11460_s5 + $0x4d0] sm:$0xff] }
 0x3ed   :  { %6647 = vmatprep.subr.mxu1 %v7440_v17  ;;  %6607 = vmatpush3.msra.mxu0 %v7441_v53  ;;  %v7477_v6 = vld [vmem:[%s11460_s5 + $0x410] sm:$0xff]  ;;  %v7479_v17 = vld [vmem:[%s11460_s5 + $0x488] sm:$0xff] }
 0x3ee   :  { %2798 = vmatprep.mubr.f32.mxu0 %v9523_v61  ;;  %6648 = vmatpush3.msra.mxu1 %v7442_v5  ;;  %v7445_v61 = vld [vmem:[%s11460_s5 + $0x450] sm:$0xff]  ;;  %v7480_v53 = vld [vmem:[%s11460_s5 + $0x588] sm:$0xff] }
 0x3ef   :  { %2878 = vmatprep.mubr.f32.mxu1 %v9527_v45  ;;  %6608 = vmatprep.subr.mxu0 %v7443_v46  ;;  %v7447_v45 = vld [vmem:[%s11460_s5 + $0x4c8] sm:$0xff]  ;;  %v7478_v38 = vld [vmem:[%s11460_s5 + $0x510] sm:$0xff] }
 0x3f0   :  { %6649 = vmatprep.subr.mxu1 %v7444_v23  ;;  %6609 = vmatpush3.msra.mxu0 %v7445_v61  ;;  %v7481_v5 = vld [vmem:[%s11460_s5 + $0x408] sm:$0xff]  ;;  %v7483_v23 = vld [vmem:[%s11460_s5 + $0x480] sm:$0xff] }
 0x3f1   :  { %6650 = vmatpush3.msra.mxu1 %v7446_v33  ;;  %6610 = vmatprep.subr.mxu0 %v7447_v45  ;;  %v7482_v46 = vld [vmem:[%s11460_s5 + $0x508] sm:$0xff]  ;;  %v7484_v61 = vld [vmem:[%s11460_s5 + $0x580] sm:$0xff] }
 0x3f2   :  { %6651 = vmatprep.subr.mxu1 %v7448_v41  ;;  %6611 = vmatpush3.msra.mxu0 %v7449_v57  ;;  %v7485_v33 = vld [vmem:[%s11460_s5 + $0x400] sm:$0xff]  ;;  %v7487_v41 = vld [vmem:[%s11460_s5 + $0x6f8] sm:$0xff] }
 0x3f3   :  { %6652 = vmatpush3.msra.mxu1 %v7450_v10  ;;  %6612 = vmatprep.subr.mxu0 %v7451_v21  ;;  %v7486_v45 = vld [vmem:[%s11460_s5 + $0x500] sm:$0xff]  ;;  %v7488_v57 = vld [vmem:[%s11460_s5 + $0x7f8] sm:$0xff]  ;;  %v7491_v10 = vld [vmem:[%s11460_s5 + $0x6f0] sm:$0xff] }
 0x3f4   :  { %6653 = vmatprep.subr.mxu1 %v7452_v49  ;;  %6613 = vmatpush3.msra.mxu0 %v7453_v25  ;;  %v7494_v21 = vld [vmem:[%s11460_s5 + $0x770] sm:$0xff]  ;;  %v7495_v49 = vld [vmem:[%s11460_s5 + $0x6e8] sm:$0xff] }
 0x3f5   :  { %6654 = vmatpush3.msra.mxu1 %v7454_v24  ;;  %6614 = vmatprep.subr.mxu0 %v7455_v35  ;;  %v7496_v25 = vld [vmem:[%s11460_s5 + $0x7e8] sm:$0xff]  ;;  %v7499_v24 = vld [vmem:[%s11460_s5 + $0x6e0] sm:$0xff] }
 0x3f6   :  { %6655 = vmatprep.subr.mxu1 %v7456_v59  ;;  %6615 = vmatpush3.msra.mxu0 %v7457_v8  ;;  %v7502_v35 = vld [vmem:[%s11460_s5 + $0x760] sm:$0xff]  ;;  %v7503_v59 = vld [vmem:[%s11460_s5 + $0x6d8] sm:$0xff] }
 0x3f7   :  { %6656 = vmatpush3.msra.mxu1 %v7458_v29  ;;  %6616 = vmatprep.subr.mxu0 %v7459_v0  ;;  %v7504_v8 = vld [vmem:[%s11460_s5 + $0x7d8] sm:$0xff]  ;;  %v7508_v0 = vld [vmem:[%s11460_s5 + $0x7d0] sm:$0xff] }
 0x3f8   :  { %6657 = vmatprep.subr.mxu1 %v7460_v13  ;;  %6617 = vmatpush3.msra.mxu0 %v7461_v31  ;;  %v7505_v29 = vld [vmem:[%s11460_s5 + $0x658] sm:$0xff]  ;;  %v7510_v13 = vld [vmem:[%s11460_s5 + $0x750] sm:$0xff]  ;;  %v7512_v31 = vld [vmem:[%s11460_s5 + $0x7c8] sm:$0xff] }
 0x3f9   :  { %6658 = vmatpush3.msra.mxu1 %v7462_v28  ;;  %6618 = vmatprep.subr.mxu0 %v7463_v12  ;;  %v7513_v28 = vld [vmem:[%s11460_s5 + $0x648] sm:$0xff] }
 0x3fa   :  { %6659 = vmatprep.subr.mxu1 %v7464_v1  ;;  %6619 = vmatpush3.msra.mxu0 %v7465_v15  ;;  %v7514_v12 = vld [vmem:[%s11460_s5 + $0x748] sm:$0xff]  ;;  %v7515_v1 = vld [vmem:[%s11460_s5 + $0x6c0] sm:$0xff] }
 0x3fb   :  { %6660 = vmatpush3.msra.mxu1 %v7466_v63  ;;  %6620 = vmatprep.subr.mxu0 %v7467_v22  ;;  %v7516_v15 = vld [vmem:[%s11460_s5 + $0x7c0] sm:$0xff] }
 0x3fc   :  { %6661 = vmatprep.subr.mxu1 %v7468_v40  ;;  %6621 = vmatpush3.msra.mxu0 %v7469_v7  ;;  %v7517_v63 = vld [vmem:[%s11460_s5 + $0x640] sm:$0xff]  ;;  %v7519_v40 = vld [vmem:[%s11460_s5 + $0x6b8] sm:$0xff] }
 0x3fd   :  { %6662 = vmatpush3.msra.mxu1 %v7470_v27  ;;  %6622 = vmatprep.subr.mxu0 %v7471_v20  ;;  %v7518_v22 = vld [vmem:[%s11460_s5 + $0x740] sm:$0xff]  ;;  %v7520_v7 = vld [vmem:[%s11460_s5 + $0x7b8] sm:$0xff] }
 0x3fe   :  { %6663 = vmatprep.subr.mxu1 %v7472_v62  ;;  %6623 = vmatpush3.msra.mxu0 %v7473_v42  ;;  %v7521_v27 = vld [vmem:[%s11460_s5 + $0x638] sm:$0xff]  ;;  %v7523_v62 = vld [vmem:[%s11460_s5 + $0x6b0] sm:$0xff] }
 0x3ff   :  { %6664 = vmatpush3.msra.mxu1 %v7474_v14  ;;  %6624 = vmatprep.subr.mxu0 %v7475_v52  ;;  %v7522_v20 = vld [vmem:[%s11460_s5 + $0x738] sm:$0xff]  ;;  %v7524_v42 = vld [vmem:[%s11460_s5 + $0x7b0] sm:$0xff] }
 0x400   :  { %6665 = vmatprep.subr.mxu1 %v7476_v16  ;;  %6625 = vmatpush3.msra.mxu0 %v7477_v6  ;;  %v7525_v14 = vld [vmem:[%s11460_s5 + $0x630] sm:$0xff]  ;;  %v7527_v16 = vld [vmem:[%s11460_s5 + $0x6a8] sm:$0xff] }
 0x401   :  { %6666 = vmatpush3.msra.mxu1 %v7478_v38  ;;  %6626 = vmatprep.subr.mxu0 %v7479_v17  ;;  %v7526_v52 = vld [vmem:[%s11460_s5 + $0x730] sm:$0xff]  ;;  %v7528_v6 = vld [vmem:[%s11460_s5 + $0x7a8] sm:$0xff] }
 0x402   :  { %6667 = vmatprep.subr.mxu1 %v7480_v53  ;;  %6627 = vmatpush3.msra.mxu0 %v7481_v5  ;;  %v7529_v38 = vld [vmem:[%s11460_s5 + $0x628] sm:$0xff]  ;;  %v7531_v53 = vld [vmem:[%s11460_s5 + $0x6a0] sm:$0xff] }
 0x403   :  { %6668 = vmatpush3.msra.mxu1 %v7482_v46  ;;  %6628 = vmatprep.subr.mxu0 %v7483_v23  ;;  %v7530_v17 = vld [vmem:[%s11460_s5 + $0x728] sm:$0xff]  ;;  %v7532_v5 = vld [vmem:[%s11460_s5 + $0x7a0] sm:$0xff] }
 0x404   :  { %6669 = vmatprep.subr.mxu1 %v7484_v61  ;;  %6629 = vmatpush3.msra.mxu0 %v7485_v33  ;;  %v7533_v46 = vld [vmem:[%s11460_s5 + $0x620] sm:$0xff]  ;;  %v7535_v61 = vld [vmem:[%s11460_s5 + $0x698] sm:$0xff] }
 0x405   :  { %6670 = vmatpush3.msra.mxu1 %v7486_v45  ;;  %2799 = vmatmul.mubr.f32.vlgmr.msra.gmra.mxu0 %v9473_v4  ;;  %v7489_v4 = vld [vmem:[%s11460_s5 + $0x678] sm:$0xff]  ;;  %v7534_v23 = vld [vmem:[%s11460_s5 + $0x720] sm:$0xff] }
 0x406   :  { %2879 = vmatmul.mubr.f32.vlgmr.msra.gmra.mxu1 %v9537_v47  ;;  %6680 = vmatprep.subr.mxu0 %v7487_v41  ;;  %v7490_v47 = vld [vmem:[%s11460_s5 + $0x778] sm:$0xff] }
 0x407   :  { %6721 = vmatprep.subr.mxu1 %v7488_v57  ;;  %2803 = vmatprep.mubr.f32.mxu0 %v9564_v48  ;;  %v7492_v48 = vld [vmem:[%s11460_s5 + $0x7f0] sm:$0xff]  ;;  %v7536_v33 = vld [vmem:[%s11460_s5 + $0x798] sm:$0xff] }
 0x408   :  { %2883 = vmatprep.mubr.f32.mxu1 %v9569_v43  ;;  %6681 = vmatpush3.msra.mxu0 %v7489_v4  ;;  %v7493_v43 = vld [vmem:[%s11460_s5 + $0x670] sm:$0xff]  ;;  %v7537_v45 = vld [vmem:[%s11460_s5 + $0x618] sm:$0xff] }
 0x409   :  { %6722 = vmatpush3.msra.mxu1 %v7490_v47  ;;  %6682 = vmatprep.subr.mxu0 %v7491_v10  ;;  %v7538_v41 = vld [vmem:[%s11460_s5 + $0x718] sm:$0xff]  ;;  %v7539_v57 = vld [vmem:[%s11460_s5 + $0x690] sm:$0xff] }
 0x40a   :  { %6723 = vmatprep.subr.mxu1 %v7492_v48  ;;  %6683 = vmatpush3.msra.mxu0 %v7493_v43  ;;  %v7540_v4 = vld [vmem:[%s11460_s5 + $0x790] sm:$0xff]  ;;  %v7543_v48 = vld [vmem:[%s11460_s5 + $0x688] sm:$0xff] }
 0x40b   :  { %6724 = vmatpush3.msra.mxu1 %v7494_v21  ;;  %2804 = vmatmul.mubr.f32.gmra.mxu0 %v9483_v26  ;;  %v7497_v26 = vld [vmem:[%s11460_s5 + $0x668] sm:$0xff]  ;;  %v7541_v47 = vld [vmem:[%s11460_s5 + $0x610] sm:$0xff] }
 0x40c   :  { %2884 = vmatmul.mubr.f32.gmra.mxu1 %v9597_v18  ;;  %6684 = vmatprep.subr.mxu0 %v7495_v49  ;;  %v7498_v18 = vld [vmem:[%s11460_s5 + $0x768] sm:$0xff]  ;;  %v7542_v10 = vld [vmem:[%s11460_s5 + $0x710] sm:$0xff] }
 0x40d   :  { %6725 = vmatprep.subr.mxu1 %v7496_v25  ;;  %2808 = vmatprep.mubr.f32.mxu0 %v9548_v55  ;;  %v7500_v55 = vld [vmem:[%s11460_s5 + $0x7e0] sm:$0xff]  ;;  %v7544_v43 = vld [vmem:[%s11460_s5 + $0x788] sm:$0xff] }
 0x40e   :  { %2888 = vmatprep.mubr.f32.mxu1 %v9551_v39  ;;  %6685 = vmatpush3.msra.mxu0 %v7497_v26  ;;  %v7501_v39 = vld [vmem:[%s11460_s5 + $0x660] sm:$0xff]  ;;  %v7545_v21 = vld [vmem:[%s11460_s5 + $0x608] sm:$0xff] }
 0x40f   :  { %6726 = vmatpush3.msra.mxu1 %v7498_v18  ;;  %6686 = vmatprep.subr.mxu0 %v7499_v24  ;;  %v7546_v49 = vld [vmem:[%s11460_s5 + $0x708] sm:$0xff]  ;;  %v7547_v25 = vld [vmem:[%s11460_s5 + $0x680] sm:$0xff] }
 0x410   :  { %6727 = vmatprep.subr.mxu1 %v7500_v55  ;;  %6687 = vmatpush3.msra.mxu0 %v7501_v39  ;;  %v7548_v26 = vld [vmem:[%s11460_s5 + $0x780] sm:$0xff] }
 0x411   :  { %6728 = vmatpush3.msra.mxu1 %v7502_v35  ;;  %2809 = vmatmul.mubr.f32.gmra.mxu0 %v9507_v3  ;;  %v7506_v3 = vld [vmem:[%s11460_s5 + $0x758] sm:$0xff]  ;;  %v7549_v18 = vld [vmem:[%s11460_s5 + $0x600] sm:$0xff] }
 0x412   :  { %2889 = vmatmul.mubr.f32.gmra.mxu1 %v9580_v34  ;;  %6688 = vmatprep.subr.mxu0 %v7503_v59  ;;  %v7507_v34 = vld [vmem:[%s11460_s5 + $0x6d0] sm:$0xff]  ;;  %v7550_v39 = vld [vmem:[%s11460_s5 + $0x700] sm:$0xff] }
 0x413   :  { %6729 = vmatprep.subr.mxu1 %v7504_v8  ;;  %6689 = vmatpush3.msra.mxu0 %v7505_v29 }
 0x414   :  { %2958 = vmatprep.mubr.f32.mxu0 %v9785_v36  ;;  %6730 = vmatpush3.msra.mxu1 %v7506_v3  ;;  %v7509_v36 = vld [vmem:[%s11460_s5 + $0x650] sm:$0xff]  ;;  %v7551_v3 = vld [vmem:[%s11459_s4] ss:$0 sm:$0xff] }
 0x415   :  { %3038 = vmatprep.mubr.f32.mxu1 %v9798_v44  ;;  %6690 = vmatprep.subr.mxu0 %v7507_v34  ;;  %v7511_v44 = vld [vmem:[%s11460_s5 + $0x6c8] sm:$0xff] }
 0x416   :  { %6731 = vmatprep.subr.mxu1 %v7508_v0  ;;  %6691 = vmatpush3.msra.mxu0 %v7509_v36 }
 0x417   :  { %6732 = vmatpush3.msra.mxu1 %v7510_v13  ;;  %6692 = vmatprep.subr.mxu0 %v7511_v44 }
 0x418   :  { %6733 = vmatprep.subr.mxu1 %v7512_v31  ;;  %6693 = vmatpush3.msra.mxu0 %v7513_v28 }
 0x419   :  { %6734 = vmatpush3.msra.mxu1 %v7514_v12  ;;  %6694 = vmatprep.subr.mxu0 %v7515_v1 }
 0x41a   :  { %6735 = vmatprep.subr.mxu1 %v7516_v15  ;;  %6695 = vmatpush3.msra.mxu0 %v7517_v63 }
 0x41b   :  { %6736 = vmatpush3.msra.mxu1 %v7518_v22  ;;  %6696 = vmatprep.subr.mxu0 %v7519_v40 }
 0x41c   :  { %6737 = vmatprep.subr.mxu1 %v7520_v7  ;;  %6697 = vmatpush3.msra.mxu0 %v7521_v27 }
 0x41d   :  { %6738 = vmatpush3.msra.mxu1 %v7522_v20  ;;  %6698 = vmatprep.subr.mxu0 %v7523_v62 }
 0x41e   :  { %6739 = vmatprep.subr.mxu1 %v7524_v42  ;;  %6699 = vmatpush3.msra.mxu0 %v7525_v14 }
 0x41f   :  { %6740 = vmatpush3.msra.mxu1 %v7526_v52  ;;  %6700 = vmatprep.subr.mxu0 %v7527_v16 }
 0x420   :  { %6741 = vmatprep.subr.mxu1 %v7528_v6  ;;  %6701 = vmatpush3.msra.mxu0 %v7529_v38 }
 0x421   :  { %6742 = vmatpush3.msra.mxu1 %v7530_v17  ;;  %6702 = vmatprep.subr.mxu0 %v7531_v53 }
 0x422   :  { %6743 = vmatprep.subr.mxu1 %v7532_v5  ;;  %6703 = vmatpush3.msra.mxu0 %v7533_v46 }
 0x423   :  { %6744 = vmatpush3.msra.mxu1 %v7534_v23  ;;  %6704 = vmatprep.subr.mxu0 %v7535_v61 }
 0x424   :  { %6745 = vmatprep.subr.mxu1 %v7536_v33  ;;  %6705 = vmatpush3.msra.mxu0 %v7537_v45 }
 0x425   :  { %6746 = vmatpush3.msra.mxu1 %v7538_v41  ;;  %6706 = vmatprep.subr.mxu0 %v7539_v57 }
 0x426   :  { %6747 = vmatprep.subr.mxu1 %v7540_v4  ;;  %6707 = vmatpush3.msra.mxu0 %v7541_v47 }
 0x427   :  { %6748 = vmatpush3.msra.mxu1 %v7542_v10  ;;  %6708 = vmatprep.subr.mxu0 %v7543_v48 }
 0x428   :  { %6749 = vmatprep.subr.mxu1 %v7544_v43  ;;  %6709 = vmatpush3.msra.mxu0 %v7545_v21 }
 0x429   :  { %6750 = vmatpush3.msra.mxu1 %v7546_v49  ;;  %6710 = vmatprep.subr.mxu0 %v7547_v25 }
 0x42a   :  { %6751 = vmatprep.subr.mxu1 %v7548_v26  ;;  %6711 = vmatpush3.msra.mxu0 %v7549_v18  ;;  %v6290_v24 = vpop.f32.mrf.mxu0  ;;  %v6334_v55 = vpop.f32.mrf.mxu1 }
 0x42b   :  { %6752 = vmatpush3.msra.mxu1 %v7550_v39  ;;  %2959 = vmatmul.mubr.f32.vlgmr.msra.gmra.mxu0 %v9821_v54 }
 0x42c   :  { %3039 = vmatmul.mubr.f32.vlgmr.msra.gmra.mxu1 %v9832_v50  ;;  %2963 = vmatprep.mubr.f32.mxu0 %v9844_v32  ;;  %v6291_v35 = vpop.f32.mrf.mxu0  ;;  %v6335_v59 = vpop.f32.mrf.mxu1 }
 0x42d   :  { %3043 = vmatprep.mubr.f32.mxu1 %v9853_v19  ;;  %v6292_v8 = vadd.f32 %v6291_v35, %v6290_v24  ;;  %v6336_v29 = vadd.f32 %v6335_v59, %v6334_v55 }
 0x42f   :  { %2964 = vmatmul.mubr.f32.gmra.mxu0 %v9880_v30  ;;  %v2120_v34 = vadd.f32 %v7551_v3, %v6292_v8 }
 0x430   :  { %3044 = vmatmul.mubr.f32.gmra.mxu1 %v9889_v51  ;;  %2968 = vmatprep.mubr.f32.mxu0 %v9824_v58  ;;  %v6293_v54 = vpop.f32.mrf.mxu0  ;;  %v6337_v50 = vpop.f32.mrf.mxu1 }
 0x431   :  { %3048 = vmatprep.mubr.f32.mxu1 %v9835_v56  ;;  %v2205_v32 = vadd.f32 %v6336_v29, %v2120_v34 }
 0x432   :  { %v6294_v0 = vpop.f32.mrf.mxu0  ;;  %v6338_v19 = vpop.f32.mrf.mxu1 }
 0x433   :  { %2969 = vmatmul.mubr.f32.gmra.mxu0 %v9860_v60  ;;  %v6295_v36 = vadd.f32 %v6294_v0, %v6293_v54  ;;  %v6339_v30 = vadd.f32 %v6338_v19, %v6337_v50  ;;  %v3100_v0 = vld [vmem:[%s11462_s7 + $0xc0] sm:$0xff] }
 0x434   :  { %3049 = vmatmul.mubr.f32.gmra.mxu1 %v9869_v9  ;;  %3346 = vmatprep.mubr.bf16.mxu0 %v7575_v2  ;;  %v3104_v19 = vld [vmem:[%s11462_s7 + $0xe0] sm:$0xff] }
 0x435   :  { %v2125_v13 = vadd.f32 %v7551_v3, %v6295_v36  ;;  %3387 = vmatprep.mubr.bf16.mxu1 %v7575_v2  ;;  %v3101_v36 = vld [vmem:[%s11462_s7 + $0xc8] sm:$0xff] }
 0x436   :  { %v6296_v51 = vpop.f32.mrf.mxu0  ;;  %v6340_v58 = vpop.f32.mrf.mxu1 }
 0x437   :  { %v2210_v44 = vadd.f32 %v6339_v30, %v2125_v13  ;;  %v5524_v30 = vcombine.low %v3100_v0, %v3104_v19  ;;  %v5525_v13 = vcombine.high %v3100_v0, %v3104_v19 }
 0x438   :  { %v6297_v31 = vpop.f32.mrf.mxu0  ;;  %v6341_v28 = vpop.f32.mrf.mxu1 }
 0x439   :  { %v6298_v56 = vadd.f32 %v6297_v31, %v6296_v51  ;;  %v6342_v12 = vadd.f32 %v6341_v28, %v6340_v58  ;;  %v3105_v51 = vld [vmem:[%s11462_s7 + $0xe8] sm:$0xff]  ;;  %v3092_v58 = vld [vmem:[%s11462_s7 + $0x80] sm:$0xff]  ;;  %3322 = vmatprep.subr.bf16.mxu0 %v5525_v13 }
 0x43a   :  { %v5526_v31 = vcombine.low %v3101_v36, %v3105_v51  ;;  %v5527_v28 = vcombine.high %v3101_v36, %v3105_v51  ;;  %3323 = vmatpush1.bf16.msra.mxu0 %v5524_v30 }
 0x43b   :  { %v2130_v1 = vadd.f32 %v7551_v3, %v6298_v56 }
 0x43c   :  { %v6299_v15 = vpop.f32.mrf.mxu0  ;;  %3363 = vmatprep.subr.bf16.mxu1 %v5527_v28 }
 0x43d   :  { %v2215_v63 = vadd.f32 %v6342_v12, %v2130_v1  ;;  %v6343_v60 = vpop.f32.mrf.mxu1  ;;  %v3093_v12 = vld [vmem:[%s11462_s7 + $0x88] sm:$0xff]  ;;  %3364 = vmatpush1.bf16.msra.mxu1 %v5526_v31 }
 0x43e   :  { %v6300_v22 = vpop.f32.mrf.mxu0  ;;  %v3097_v1 = vld [vmem:[%s11462_s7 + $0xa8] sm:$0xff] }
 0x43f   :  { %v6301_v40 = vadd.f32 %v6300_v22, %v6299_v15  ;;  %v6344_v7 = vpop.f32.mrf.mxu1  ;;  %v3084_v15 = vld [vmem:[%s11462_s7 + $0x40] sm:$0xff]  ;;  %v3085_v22 = vld [vmem:[%s11462_s7 + $0x48] sm:$0xff] }
 0x440   :  { %v6345_v9 = vadd.f32 %v6344_v7, %v6343_v60  ;;  %v3088_v60 = vld [vmem:[%s11462_s7 + $0x60] sm:$0xff] }
 0x441   :  { %v2135_v27 = vadd.f32 %v7551_v3, %v6301_v40  ;;  %v3089_v40 = vld [vmem:[%s11462_s7 + $0x68] sm:$0xff] }
 0x443   :  { %v2220_v20 = vadd.f32 %v6345_v9, %v2135_v27  ;;  %v5518_v9 = vcombine.low %v3093_v12, %v3097_v1  ;;  %v5509_v27 = vcombine.high %v3084_v15, %v3088_v60 }
 0x451   :  { %v6378_v62 = vpop.f32.mrf.mxu0 }
 0x452   :  { %v6422_v42 = vpop.f32.mrf.mxu1 }
 0x453   :  { %v6379_v14 = vpop.f32.mrf.mxu0 }
 0x454   :  { %v6380_v52 = vadd.f32 %v6379_v14, %v6378_v62  ;;  %v6423_v16 = vpop.f32.mrf.mxu1  ;;  %v5508_v62 = vcombine.low %v3084_v15, %v3088_v60 }
 0x455   :  { %v6424_v6 = vadd.f32 %v6423_v16, %v6422_v42  ;;  %v5510_v42 = vcombine.low %v3085_v22, %v3089_v40 }
 0x456   :  { %v2290_v38 = vadd.f32 %v6380_v52, %v2205_v32 }
 0x457   :  { %v6381_v17 = vpop.f32.mrf.mxu0 }
 0x458   :  { %v2375_v53 = vadd.f32 %v6424_v6, %v2290_v38  ;;  %v6425_v5 = vpop.f32.mrf.mxu1 }
 0x459   :  { %v6382_v46 = vpop.f32.mrf.mxu0 }
 0x45a   :  { %v6383_v23 = vadd.f32 %v6382_v46, %v6381_v17  ;;  %v6426_v61 = vpop.f32.mrf.mxu1  ;;  %v2393_v10 = vsel %vm833_vm4, %v2375_v53, -inf }
 0x45b   :  { %v6427_v33 = vadd.f32 %v6426_v61, %v6425_v5 }
 0x45c   :  { %v2295_v45 = vadd.f32 %v6383_v23, %v2210_v44  ;;  %v3096_v44 = vld [vmem:[%s11462_s7 + $0xa0] sm:$0xff] }
 0x45d   :  { %v6384_v41 = vpop.f32.mrf.mxu0  ;;  %v5517_v56 = vcombine.high %v3092_v58, %v3096_v44  ;;  %v5516_v7 = vcombine.low %v3092_v58, %v3096_v44 }
 0x45e   :  { %v2380_v57 = vadd.f32 %v6427_v33, %v2295_v45  ;;  %v6428_v4 = vpop.f32.mrf.mxu1 }
 0x45f   :  { %v6385_v47 = vpop.f32.mrf.mxu0  ;;  %3324 = vmatprep.subr.bf16.mxu0 %v5517_v56 }
 0x460   :  { %v2394_v48 = vsel %vm833_vm4, %v2380_v57, -inf  ;;  %v6386_v43 = vadd.f32 %v6385_v47, %v6384_v41  ;;  %v6429_v21 = vpop.f32.mrf.mxu1  ;;  %3325 = vmatpush1.bf16.msra.mxu0 %v5516_v7 }
 0x461   :  { %v2397_v49 = vmax.f32 %v2393_v10, %v2394_v48  ;;  %v6430_v25 = vadd.f32 %v6429_v21, %v6428_v4  ;;  %3326 = vmatprep.subr.bf16.mxu0 %v5509_v27 }
 0x462   :  { %v2300_v26 = vadd.f32 %v6386_v43, %v2215_v63  ;;  %v5519_v63 = vcombine.high %v3093_v12, %v3097_v1 }
 0x463   :  { %v6387_v18 = vpop.f32.mrf.mxu0 }
 0x464   :  { %v2385_v24 = vadd.f32 %v6430_v25, %v2300_v26  ;;  %v6431_v55 = vpop.f32.mrf.mxu1  ;;  %3365 = vmatprep.subr.bf16.mxu1 %v5519_v63  ;;  %3327 = vmatpush1.bf16.msra.mxu0 %v5508_v62 }
 0x465   :  { %v6388_v39 = vpop.f32.mrf.mxu0  ;;  %3366 = vmatpush1.bf16.msra.mxu1 %v5518_v9 }
 0x466   :  { %v6389_v35 = vadd.f32 %v6388_v39, %v6387_v18  ;;  %v6432_v59 = vpop.f32.mrf.mxu1  ;;  %v2395_v34 = vsel %vm833_vm4, %v2385_v24, -inf }
 0x467   :  { %v6433_v8 = vadd.f32 %v6432_v59, %v6431_v55 }
 0x468   :  { %v2305_v29 = vadd.f32 %v6389_v35, %v2220_v20  ;;  %v5511_v20 = vcombine.high %v3085_v22, %v3089_v40 }
 0x46a   :  { %v2390_v3 = vadd.f32 %v6433_v8, %v2305_v29  ;;  %3367 = vmatprep.subr.bf16.mxu1 %v5511_v20 }
 0x46b   :  { %3368 = vmatpush1.bf16.msra.mxu1 %v5510_v42 }
 0x46c   :  { %v2396_v54 = vsel %vm837_vm5, %v2390_v3, -inf  ;;  %v7552_v3 = vld [vmem:[%s11461_s6] ss:$0 sm:$0xff] }
 0x46d   :  { %v2398_v50 = vmax.f32 %v2395_v34, %v2396_v54 }
 0x46f   :  { %v10673_v32 = vmax.f32 %v2397_v49, %v2398_v50 }
 0x479   :  { %v6466_v14 = vpop.f32.mrf.mxu0 }
 0x47a   :  { %v6507_v52 = vpop.f32.mrf.mxu1 }
 0x47b   :  { %v6467_v16 = vpop.f32.mrf.mxu0 }
 0x47c   :  { %v6508_v6 = vpop.f32.mrf.mxu1  ;;  %v6468_v35 = vadd.f32 %v6467_v16, %v6466_v14 }
 0x47d   :  { %v6509_v50 = vadd.f32 %v6508_v6, %v6507_v52 }
 0x47e   :  { %v2481_v34 = vadd.f32 %v7552_v3, %v6468_v35 }
 0x47f   :  { %v6469_v38 = vpop.f32.mrf.mxu0 }
 0x480   :  { %v6510_v17 = vpop.f32.mrf.mxu1  ;;  %v2561_v13 = vadd.f32 %v6509_v50, %v2481_v34 }
 0x481   :  { %v6470_v53 = vpop.f32.mrf.mxu0 }
 0x482   :  { %v6511_v5 = vpop.f32.mrf.mxu1  ;;  %v6471_v8 = vadd.f32 %v6470_v53, %v6469_v38 }
 0x483   :  { %v6512_v51 = vadd.f32 %v6511_v5, %v6510_v17 }
 0x484   :  { %v2486_v0 = vadd.f32 %v7552_v3, %v6471_v8 }
 0x485   :  { %v6472_v46 = vpop.f32.mrf.mxu0 }
 0x486   :  { %v6513_v23 = vpop.f32.mrf.mxu1  ;;  %v2566_v31 = vadd.f32 %v6512_v51, %v2486_v0 }
 0x487   :  { %v6473_v61 = vpop.f32.mrf.mxu0 }
 0x488   :  { %v6514_v33 = vpop.f32.mrf.mxu1  ;;  %v6474_v19 = vadd.f32 %v6473_v61, %v6472_v46 }
 0x489   :  { %v6515_v1 = vadd.f32 %v6514_v33, %v6513_v23 }
 0x48a   :  { %v2491_v28 = vadd.f32 %v7552_v3, %v6474_v19 }
 0x48c   :  { %v2571_v7 = vadd.f32 %v6515_v1, %v2491_v28  ;;  %v3077_v28 = vld [vmem:[%s11462_s7 + $0x8] sm:$0xff] }
 0x49f   :  { %v6548_v45 = vpop.f32.mrf.mxu0 }
 0x4a0   :  { %v6589_v41 = vpop.f32.mrf.mxu1 }
 0x4a1   :  { %v6549_v57 = vpop.f32.mrf.mxu0 }
 0x4a2   :  { %v6590_v4 = vpop.f32.mrf.mxu1  ;;  %v6550_v36 = vadd.f32 %v6549_v57, %v6548_v45 }
 0x4a3   :  { %v6591_v15 = vadd.f32 %v6590_v4, %v6589_v41 }
 0x4a4   :  { %v2641_v56 = vadd.f32 %v6550_v36, %v2561_v13 }
 0x4a5   :  { %v6551_v47 = vpop.f32.mrf.mxu0 }
 0x4a6   :  { %v6592_v10 = vpop.f32.mrf.mxu1  ;;  %v2721_v9 = vadd.f32 %v6591_v15, %v2641_v56 }
 0x4a7   :  { %v6552_v48 = vpop.f32.mrf.mxu0 }
 0x4a8   :  { %v6593_v43 = vpop.f32.mrf.mxu1  ;;  %v6553_v58 = vadd.f32 %v6552_v48, %v6551_v47 }
 0x4a9   :  { %v6594_v27 = vadd.f32 %v6593_v43, %v6592_v10 }
 0x4aa   :  { %v2646_v63 = vadd.f32 %v6553_v58, %v2566_v31  ;;  %v3080_v31 = vld [vmem:[%s11462_s7 + $0x20] sm:$0xff] }
 0x4ab   :  { %v6554_v21 = vpop.f32.mrf.mxu0 }
 0x4ac   :  { %v6595_v49 = vpop.f32.mrf.mxu1  ;;  %v2726_v14 = vadd.f32 %v6594_v27, %v2646_v63 }
 0x4ad   :  { %v6555_v25 = vpop.f32.mrf.mxu0 }
 0x4ae   :  { %v6596_v26 = vpop.f32.mrf.mxu1  ;;  %v6556_v60 = vadd.f32 %v6555_v25, %v6554_v21 }
 0x4af   :  { %v6597_v38 = vadd.f32 %v6596_v26, %v6595_v49 }
 0x4b0   :  { %v2651_v52 = vadd.f32 %v6556_v60, %v2571_v7  ;;  %v3106_v7 = vld [vmem:[%s11462_s7 + $0xf0] sm:$0xff] }
 0x4b2   :  { %v2731_v45 = vadd.f32 %v6597_v38, %v2651_v52 }
 0x4c5   :  { %v6630_v18 = vpop.f32.mrf.mxu0 }
 0x4c6   :  { %v6671_v24 = vpop.f32.mrf.mxu1 }
 0x4c7   :  { %v6631_v55 = vpop.f32.mrf.mxu0 }
 0x4c8   :  { %v6672_v39 = vpop.f32.mrf.mxu1  ;;  %v6632_v22 = vadd.f32 %v6631_v55, %v6630_v18 }
 0x4c9   :  { %v6673_v53 = vadd.f32 %v6672_v39, %v6671_v24 }
 0x4ca   :  { %v2801_v16 = vadd.f32 %v6632_v22, %v2721_v9  ;;  %v3103_v9 = vld [vmem:[%s11462_s7 + $0xd8] sm:$0xff] }
 0x4cb   :  { %v6633_v59 = vpop.f32.mrf.mxu0 }
 0x4cc   :  { %v6674_v29 = vpop.f32.mrf.mxu1  ;;  %v2881_v41 = vadd.f32 %v6673_v53, %v2801_v16  ;;  %v842_v53 = vrot.slane %v9462_v37, 4 }
 0x4cd   :  { %v6634_v54 = vpop.f32.mrf.mxu0 }
 0x4ce   :  { %v6675_v30 = vpop.f32.mrf.mxu1  ;;  %v6635_v20 = vadd.f32 %v6634_v54, %v6633_v59 }
 0x4cf   :  { %v6676_v57 = vadd.f32 %v6675_v30, %v6674_v29 }
 0x4d0   :  { %v2806_v5 = vadd.f32 %v6635_v20, %v2726_v14 }
 0x4d1   :  { %v6636_v44 = vpop.f32.mrf.mxu0 }
 0x4d2   :  { %v6677_v12 = vpop.f32.mrf.mxu1  ;;  %v2886_v10 = vadd.f32 %v6676_v57, %v2806_v5 }
 0x4d3   :  { %v6637_v40 = vpop.f32.mrf.mxu0 }
 0x4d4   :  { %v6678_v62 = vpop.f32.mrf.mxu1  ;;  %v6638_v46 = vadd.f32 %v6637_v40, %v6636_v44  ;;  %v3076_v44 = vld [vmem:[%s11462_s7] sm:$0xff]  ;;  %v3102_v40 = vld [vmem:[%s11462_s7 + $0xd0] sm:$0xff] }
 0x4d5   :  { %v6679_v55 = vadd.f32 %v6678_v62, %v6677_v12  ;;  %v5501_v56 = vcombine.high %v3076_v44, %v3080_v31  ;;  %v3081_v12 = vld [vmem:[%s11462_s7 + $0x28] sm:$0xff]  ;;  %v5500_v15 = vcombine.low %v3076_v44, %v3080_v31  ;;  %v5528_v27 = vcombine.low %v3102_v40, %v3106_v7  ;;  %v3107_v62 = vld [vmem:[%s11462_s7 + $0xf8] sm:$0xff] }
 0x4d6   :  { %v2811_v48 = vadd.f32 %v6638_v46, %v2731_v45  ;;  %v5502_v63 = vcombine.low %v3077_v28, %v3081_v12  ;;  %v5503_v60 = vcombine.high %v3077_v28, %v3081_v12  ;;  %v5529_v20 = vcombine.high %v3102_v40, %v3106_v7  ;;  %v7035_v40 = vld [vmem:[%s11464_s9 + $0xf0] sm:$0xff]  }
 0x4d7   :  { %3328 = vmatprep.subr.bf16.mxu0 %v5501_v56  ;;  %v5530_v14 = vcombine.low %v3103_v9, %v3107_v62  ;;  %v5531_v52 = vcombine.high %v3103_v9, %v3107_v62  ;;  %v843_v46 = vmax.f32 %v9462_v37, %v842_v53  ;;  %v3098_v37 = vld [vmem:[%s11462_s7 + $0xb0] sm:$0xff]  ;;  %v7040_v62 = vld [vmem:[%s11464_s9 + $0x28] sm:$0xff]   ;;  %v7048_v53 = vld [vmem:[%s11464_s9 + $0x18] sm:$0xff]  }
 0x4d8   :  { %v2891_v59 = vadd.f32 %v6679_v55, %v2811_v48  ;;  %3369 = vmatprep.subr.bf16.mxu1 %v5503_v60  ;;  %3329 = vmatpush1.bf16.msra.mxu0 %v5500_v15  ;;  %v1773_v48 = vpop.permute.xlu1 %1772  ;;  %v3095_v55 = vld [vmem:[%s11462_s7 + $0x98] sm:$0xff]  ;;  %v7036_v7 = vld [vmem:[%s11464_s9 + $0x30] sm:$0xff]  }
 0x4d9   :  { %3370 = vmatpush1.bf16.msra.mxu1 %v5502_v63  ;;  %3404 = vmatprep.subr.bf16.mxu0 %v5529_v20  ;;  %v7031_v15 = vld [vmem:[%s11464_s9 + $0xf8] sm:$0xff]   ;;  %v7037_v9 = vld [vmem:[%s11464_s9 + $0xb0] sm:$0xff]   ;;  %v7039_v20 = vld [vmem:[%s11464_s9 + $0xe8] sm:$0xff]  }
 0x4da   :  { %3445 = vmatprep.subr.bf16.mxu1 %v5531_v52  ;;  %v7032_v63 = vld [vmem:[%s11464_s9 + $0x38] sm:$0xff]   ;;  %v7043_v52 = vld [vmem:[%s11464_s9 + $0xe0] sm:$0xff]  }
 0x4db   :  { %v7033_v60 = vld [vmem:[%s11464_s9 + $0xb8] sm:$0xff]  }
 0x4eb   :  { %v6712_v42 = vpop.f32.mrf.mxu0 }
 0x4ec   :  { %v6753_v6 = vpop.f32.mrf.mxu1 }
 0x4ed   :  { %v6713_v17 = vpop.f32.mrf.mxu0 }
 0x4ee   :  { %v6714_v23 = vadd.f32 %v6713_v17, %v6712_v42  ;;  %v6754_v61 = vpop.f32.mrf.mxu1  ;;  %v2400_v17 = vrot.slane %v10673_v32, 4 }
 0x4ef   :  { %v6715_v33 = vpop.f32.mrf.mxu0  ;;  %v6755_v49 = vadd.f32 %v6754_v61, %v6753_v6  ;;  %v844_v61 = vrot.slane %v843_v46, 2 }
 0x4f0   :  { %v6756_v4 = vpop.f32.mrf.mxu1  ;;  %v2961_v43 = vadd.f32 %v6714_v23, %v2881_v41  ;;  %v2401_v5 = vmax.f32 %v10673_v32, %v2400_v17  ;;  %v3094_v32 = vld [vmem:[%s11462_s7 + $0x90] sm:$0xff]  ;;  %v7047_v17 = vld [vmem:[%s11464_s9 + $0xd8] sm:$0xff]  }
 0x4f1   :  { %v6716_v47 = vpop.f32.mrf.mxu0  ;;  %v845_v45 = vmax.f32 %v843_v46, %v844_v61  ;;  %v7050_v46 = vld [vmem:[%s11464_s9 + $0x50] sm:$0xff]  }
 0x4f2   :  { %v6717_v21 = vadd.f32 %v6716_v47, %v6715_v33  ;;  %v6757_v25 = vpop.f32.mrf.mxu1  ;;  %v3041_v8 = vadd.f32 %v6755_v49, %v2961_v43  ;;  %v2402_v23 = vrot.slane %v2401_v5, 2  ;;  %v3099_v49 = vld [vmem:[%s11462_s7 + $0xb8] sm:$0xff]  ;;  %v7052_v61 = vld [vmem:[%s11464_s9 + $0x10] sm:$0xff]  }
 0x4f3   :  { %v6718_v18 = vpop.f32.mrf.mxu0  ;;  %v6758_v24 = vadd.f32 %v6757_v25, %v6756_v4  ;;  %v846_v57 = vrot.slane %v845_v45, 1 }
 0x4f4   :  { %v2966_v26 = vadd.f32 %v6717_v21, %v2886_v10  ;;  %v6759_v39 = vpop.f32.mrf.mxu1  ;;  %v3054_v19 = vsel %vm833_vm4, %v3041_v8, -inf  ;;  %v2403_v33 = vmax.f32 %v2401_v5, %v2402_v23  ;;  %v3086_v8 = vld [vmem:[%s11462_s7 + $0x50] sm:$0xff]  ;;  %v7049_v5 = vld [vmem:[%s11464_s9 + $0x98] sm:$0xff]  }
 0x4f5   :  { %v6719_v35 = vpop.f32.mrf.mxu0  ;;  %v847_v47 = vmax.f32 %v845_v45, %v846_v57  ;;  %v7051_v23 = vld [vmem:[%s11464_s9 + $0xd0] sm:$0xff]   ;;  %v7054_v45 = vld [vmem:[%s11464_s9 + $0x48] sm:$0xff]  }
 0x4f6   :  { %v3046_v3 = vadd.f32 %v6758_v24, %v2966_v26  ;;  %v6720_v34 = vadd.f32 %v6719_v35, %v6718_v18  ;;  %v6760_v54 = vpop.f32.mrf.mxu1  ;;  %v2404_v41 = vrot.slane %v2403_v33, 1  ;;  %v5521_v35 = vcombine.high %v3094_v32, %v3098_v37  ;;  %v7056_v57 = vld [vmem:[%s11464_s9 + $0x8] sm:$0xff]  }
 0x4f7   :  { %v6761_v0 = vadd.f32 %v6760_v54, %v6759_v39  ;;  %v848_v21 = vmax.f32 %v847_v47, 0.0  ;;  %v3091_v54 = vld [vmem:[%s11462_s7 + $0x78] sm:$0xff]  ;;  %v7058_v47 = vld [vmem:[%s11464_s9 + $0x40] sm:$0xff]  }
 0x4f8   :  { %v3055_v29 = vsel %vm833_vm4, %v3046_v3, -inf  ;;  %v2971_v50 = vadd.f32 %v6720_v34, %v2891_v59  ;;  %v2405_v4 = vmax.f32 %v2403_v33, %v2404_v41  ;;  %v5523_v59 = vcombine.high %v3095_v55, %v3099_v49  ;;  %v3090_v3 = vld [vmem:[%s11462_s7 + $0x70] sm:$0xff]  ;;  %v3087_v34 = vld [vmem:[%s11462_s7 + $0x58] sm:$0xff]  ;;  %v7055_v41 = vld [vmem:[%s11464_s9 + $0xc8] sm:$0xff]  }
 0x4f9   :  { %v3057_v30 = vmax.f32 %v3054_v19, %v3055_v29  ;;  %v1775_v26 = vsel %vm833_vm4, %v848_v21, %v1773_v48  ;;  %v5520_v29 = vcombine.low %v3094_v32, %v3098_v37  ;;  %v5515_v19 = vcombine.high %v3087_v34, %v3091_v54  ;;  %v7053_v33 = vld [vmem:[%s11464_s9 + $0x90] sm:$0xff]   ;;  %v7060_v48 = vld [vmem:[%s11464_s9] sm:$0xff]   ;;  %v7062_v21 = vld [vmem:[%s11464_s9 + $0x178] sm:$0xff]  }
 0x4fa   :  { %v3051_v36 = vadd.f32 %v6761_v0, %v2971_v50  ;;  %v2406_v10 = vmax.f32 %v2405_v4, 0.0  ;;  %v5522_v50 = vcombine.low %v3095_v55, %v3099_v49  ;;  %v5513_v0 = vcombine.high %v3086_v8, %v3090_v3  ;;  %v7057_v4 = vld [vmem:[%s11464_s9 + $0x88] sm:$0xff]   ;;  %v10901_v55 = vld [vmem:[%s11463_s8] sm:$0xff] }
 0x4fb   :  { %v5514_v44 = vcombine.low %v3087_v34, %v3091_v54  ;;  %v10894_v32 = vshrl.u32 %v56_v11, 7 }
 0x4fc   :  { %v3056_v13 = vsel %vm837_vm5, %v3051_v36, -inf  ;;  %v3078_v36 = vld [vmem:[%s11462_s7 + $0x10] sm:$0xff] }
 0x4fd   :  { %v3058_v51 = vmax.f32 %v3057_v30, %v3056_v13  ;;  %v3082_v30 = vld [vmem:[%s11462_s7 + $0x30] sm:$0xff]  ;;  %v3079_v13 = vld [vmem:[%s11462_s7 + $0x18] sm:$0xff]  ;;  %v3120_v37 = vsub.s32 2, %v10894_v32  ;;  %v3116_v49 = vsub.s32 1, %v10894_v32 }
 0x4fe   :  { %v5505_v31 = vcombine.high %v3078_v36, %v3082_v30  ;;  %v5504_v56 = vcombine.low %v3078_v36, %v3082_v30 }
 0x4ff   :  { %v3059_v58 = vrot.slane %v3058_v51, 4  ;;  %v3121_v11 = vrot.slane %v10901_v55, %v3120_v37 }
 0x501   :  { %v3060_v1 = vmax.f32 %v3058_v51, %v3059_v58  ;;  %v3083_v51 = vld [vmem:[%s11462_s7 + $0x38] sm:$0xff]  ;;  %v5512_v58 = vcombine.low %v3086_v8, %v3090_v3 }
 0x502   :  { %v5507_v28 = vcombine.high %v3079_v13, %v3083_v51  ;;  %v5506_v12 = vcombine.low %v3079_v13, %v3083_v51 }
 0x503   :  { %v3061_v22 = vrot.slane %v3060_v1, 2 }
 0x505   :  { %v3062_v42 = vmax.f32 %v3060_v1, %v3061_v22  ;;  %v7030_v1 = vld [vmem:[%s11464_s9 + $0x78] sm:$0xff]   ;;  %v7034_v22 = vld [vmem:[%s11464_s9 + $0x70] sm:$0xff]  }
 0x507   :  { %v3063_v16 = vrot.slane %v3062_v42, 1 }
 0x509   :  { %v3064_v6 = vmax.f32 %v3062_v42, %v3063_v16  ;;  %v7041_v42 = vld [vmem:[%s11464_s9 + $0xa8] sm:$0xff]   ;;  %v7044_v16 = vld [vmem:[%s11464_s9 + $0x20] sm:$0xff]  }
 0x50b   :  { %v3065_v38 = vmax.f32 %v3064_v6, 0.0  ;;  %v7045_v6 = vld [vmem:[%s11464_s9 + $0xa0] sm:$0xff]  }
 0x50d   :  { %3067 = vrot.lane.b32.xlu0 %v3065_v38, %s7579_s20  ;;  %v7046_v38 = vld [vmem:[%s11464_s9 + $0x58] sm:$0xff]  }
 0x57f   :  { %v3068_v43 = vpop.permute.xlu0 %3067 }
 0x580   :  { %v3070_v25 = vsel %vm833_vm4, %v2406_v10, %v3068_v43  ;;  %v7059_v10 = vld [vmem:[%s11464_s9 + $0xc0] sm:$0xff]  }
 0x581   :  { %v3072_v18 = vrot.slane %v3070_v25, 7  ;;  %v7061_v43 = vld [vmem:[%s11464_s9 + $0x80] sm:$0xff]   ;;  %v7063_v25 = vld [vmem:[%s11464_s9 + $0x1f8] sm:$0xff]  }
 0x583   :  { %v3074_v24 = vsel %vm86_vm3, %v1775_v26, %v3072_v18  ;;  %v3112_v18 = vsub.s32 0, %v10894_v32  ;;  %v3124_v26 = vsub.s32 3, %v10894_v32 }
 0x584   :  { %v3075_v39 = vpack.c.bf16 %v3074_v24, %v3074_v24 }
 0x585   :  { %v3113_v24 = vrot.slane %v10901_v55, %v3112_v18 }
 0x586   :  { %5532 = vmatmul.mubr.msk.bf16.vlgmr.msra.gmra.mxu0 %vm3310_vm0, %v3075_v39  ;;  %5533 = vmatmul.mubr.msk.bf16.vlgmr.msra.gmra.mxu1 %vm3310_vm0, %v3075_v39 }
 0x587   :  { %3405 = vmatpush1.bf16.msra.mxu0 %v5528_v27  ;;  %3446 = vmatpush1.bf16.msra.mxu1 %v5530_v14  ;;  %v7038_v27 = vld [vmem:[%s11464_s9 + $0x68] sm:$0xff]   ;;  %v7042_v14 = vld [vmem:[%s11464_s9 + $0x60] sm:$0xff]  }
 0x588   :  { %3406 = vmatprep.subr.bf16.mxu0 %v5521_v35  ;;  %3447 = vmatprep.subr.bf16.mxu1 %v5523_v59  ;;  %v3125_v35 = vrot.slane %v10901_v55, %v3124_v26 }
 0x589   :  { %3428 = vmatprep.mubr.bf16.mxu0 %v7575_v2  ;;  %3469 = vmatprep.mubr.bf16.mxu1 %v7575_v2 }
 0x58b   :  { %3407 = vmatpush1.bf16.msra.mxu0 %v5520_v29  ;;  %3448 = vmatpush1.bf16.msra.mxu1 %v5522_v50 }
 0x58c   :  { %3408 = vmatprep.subr.bf16.mxu0 %v5513_v0  ;;  %3449 = vmatprep.subr.bf16.mxu1 %v5515_v19 }
 0x58f   :  { %3409 = vmatpush1.bf16.msra.mxu0 %v5512_v58  ;;  %3450 = vmatpush1.bf16.msra.mxu1 %v5514_v44 }
 0x590   :  { %3410 = vmatprep.subr.bf16.mxu0 %v5505_v31  ;;  %3451 = vmatprep.subr.bf16.mxu1 %v5507_v28 }
 0x593   :  { %3411 = vmatpush1.bf16.msra.mxu0 %v5504_v56  ;;  %3452 = vmatpush1.bf16.msra.mxu1 %v5506_v12  ;;  %v7064_v12 = vld [vmem:[%s11464_s9 + $0x138] sm:$0xff]  }
 0x594   :  { %6762 = vmatprep.subr.bf16.mxu0 %v7030_v1  ;;  %6784 = vmatprep.subr.bf16.mxu1 %v7031_v15  ;;  %v7065_v1 = vld [vmem:[%s11464_s9 + $0x1b8] sm:$0xff]  }
 0x596   :  { %5534 = vmatmul.mubr.msk.bf16.vlgmr.msra.gmra.mxu0 %vm3310_vm0, %v3075_v39  ;;  %5535 = vmatmul.mubr.msk.bf16.vlgmr.msra.gmra.mxu1 %vm3310_vm0, %v3075_v39  ;;  %v3117_v39 = vrot.slane %v10901_v55, %v3116_v49 }
 0x597   :  { %6763 = vmatpush3.bf16.msra.mxu0 %v7032_v63  ;;  %6785 = vmatpush3.bf16.msra.mxu1 %v7033_v60  ;;  %v7066_v60 = vld [vmem:[%s11464_s9 + $0x170] sm:$0xff]  }
 0x598   :  { %6764 = vmatprep.subr.bf16.mxu0 %v7034_v22  ;;  %6786 = vmatprep.subr.bf16.mxu1 %v7035_v40  ;;  %v7067_v22 = vld [vmem:[%s11464_s9 + $0x1f0] sm:$0xff]  }
 0x599   :  { %v7068_v40 = vld [vmem:[%s11464_s9 + $0x130] sm:$0xff]  }
 0x59b   :  { %6765 = vmatpush3.bf16.msra.mxu0 %v7036_v7  ;;  %6787 = vmatpush3.bf16.msra.mxu1 %v7037_v9  ;;  %v7069_v7 = vld [vmem:[%s11464_s9 + $0x1b0] sm:$0xff]   ;;  %v3132_v9 = vsub.s32 5, %v10894_v32 }
 0x59c   :  { %6766 = vmatprep.subr.bf16.mxu0 %v7038_v27  ;;  %6788 = vmatprep.subr.bf16.mxu1 %v7039_v20  ;;  %v3140_v27 = vsub.s32 7, %v10894_v32  ;;  %v7070_v20 = vld [vmem:[%s11464_s9 + $0x168] sm:$0xff]  }
 0x59f   :  { %6767 = vmatpush3.bf16.msra.mxu0 %v7040_v62  ;;  %6789 = vmatpush3.bf16.msra.mxu1 %v7041_v42  ;;  %v7071_v62 = vld [vmem:[%s11464_s9 + $0x1e8] sm:$0xff]   ;;  %v3133_v42 = vrot.slane %v10901_v55, %v3132_v9 }
 0x5a0   :  { %6768 = vmatprep.subr.bf16.mxu0 %v7042_v14  ;;  %6790 = vmatprep.subr.bf16.mxu1 %v7043_v52  ;;  %v3141_v14 = vrot.slane %v10901_v55, %v3140_v27  ;;  %v7072_v52 = vld [vmem:[%s11464_s9 + $0x128] sm:$0xff]  }
 0x5a3   :  { %6769 = vmatpush3.bf16.msra.mxu0 %v7044_v16  ;;  %6791 = vmatpush3.bf16.msra.mxu1 %v7045_v6  ;;  %v7073_v16 = vld [vmem:[%s11464_s9 + $0x1a8] sm:$0xff]  }
 0x5a4   :  { %6770 = vmatprep.subr.bf16.mxu0 %v7046_v38  ;;  %6792 = vmatprep.subr.bf16.mxu1 %v7047_v17  ;;  %v7074_v17 = vld [vmem:[%s11464_s9 + $0x160] sm:$0xff]  }
 0x5a7   :  { %6771 = vmatpush3.bf16.msra.mxu0 %v7048_v53  ;;  %6793 = vmatpush3.bf16.msra.mxu1 %v7049_v5  ;;  %v7075_v53 = vld [vmem:[%s11464_s9 + $0x1e0] sm:$0xff]  }
 0x5a8   :  { %6772 = vmatprep.subr.bf16.mxu0 %v7050_v46  ;;  %6794 = vmatprep.subr.bf16.mxu1 %v7051_v23 }
 0x5ab   :  { %6773 = vmatpush3.bf16.msra.mxu0 %v7052_v61  ;;  %6795 = vmatpush3.bf16.msra.mxu1 %v7053_v33  ;;  %v7076_v33 = vld [vmem:[%s11464_s9 + $0x120] sm:$0xff]  }
 0x5ac   :  { %6774 = vmatprep.subr.bf16.mxu0 %v7054_v45  ;;  %6796 = vmatprep.subr.bf16.mxu1 %v7055_v41  ;;  %v7077_v45 = vld [vmem:[%s11464_s9 + $0x1a0] sm:$0xff]  }
 0x5af   :  { %6775 = vmatpush3.bf16.msra.mxu0 %v7056_v57  ;;  %6797 = vmatpush3.bf16.msra.mxu1 %v7057_v4  ;;  %v7078_v4 = vld [vmem:[%s11464_s9 + $0x158] sm:$0xff]  }
 0x5b0   :  { %6776 = vmatprep.subr.bf16.mxu0 %v7058_v47  ;;  %6798 = vmatprep.subr.bf16.mxu1 %v7059_v10  ;;  %v7079_v47 = vld [vmem:[%s11464_s9 + $0x1d8] sm:$0xff]  }
 0x5b3   :  { %6777 = vmatpush3.bf16.msra.mxu0 %v7060_v48  ;;  %6799 = vmatpush3.bf16.msra.mxu1 %v7061_v43 }
 0x5b4   :  { %6806 = vmatprep.subr.bf16.mxu0 %v7062_v21  ;;  %6828 = vmatprep.subr.bf16.mxu1 %v7063_v25 }
 0x646   :  { %v3348_v59 = vpop.f32.mrf.mxu0  ;;  %v3389_v8 = vpop.f32.mrf.mxu1 }
 0x647   :  { %v3349_v3 = vadd.f32 %v3348_v59, %v3113_v24  ;;  %v3390_v34 = vadd.f32 %v3389_v8, %v3121_v11  ;;  %v7080_v11 = vld [vmem:[%s11464_s9 + $0x118] sm:$0xff]   ;;  %v3136_v59 = vsub.s32 6, %v10894_v32  ;;  %v7082_v8 = vld [vmem:[%s11464_s9 + $0x150] sm:$0xff]  }
 0x648   :  { %v3350_v54 = vpop.f32.mrf.mxu0  ;;  %v3391_v29 = vpop.f32.mrf.mxu1 }
 0x649   :  { %v3351_v50 = vadd.f32 %v3350_v54, %v3117_v39  ;;  %v3392_v0 = vadd.f32 %v3391_v29, %v3125_v35  ;;  %v3478_v19 = vmax.f32 %v3349_v3, 0.0  ;;  %v3480_v36 = vmax.f32 %v3390_v34, 0.0  ;;  %v7081_v39 = vld [vmem:[%s11464_s9 + $0x198] sm:$0xff]   ;;  %v7083_v3 = vld [vmem:[%s11464_s9 + $0x1d0] sm:$0xff]  }
 0x64a   :  { %v3352_v30 = vpop.f32.mrf.mxu0  ;;  %v3393_v13 = vpop.f32.mrf.mxu1  ;;  %v3128_v35 = vsub.s32 4, %v10894_v32  ;;  %v7084_v34 = vld [vmem:[%s11464_s9 + $0x110] sm:$0xff]   ;;  %v7155_v32 = vld [vmem:[%s11468_s13 + $0x1c0] sm:$0xff]  }
 0x64b   :  { %v3479_v51 = vmax.f32 %v3351_v50, 0.0  ;;  %v3481_v58 = vmax.f32 %v3392_v0, 0.0  ;;  %v3486_v15 = vpack.c.bf16 %v3478_v19, %v3478_v19  ;;  %v3488_v63 = vpack.c.bf16 %v3480_v36, %v3480_v36  ;;  %v7085_v54 = vld [vmem:[%s11464_s9 + $0x190] sm:$0xff]   ;;  %v7086_v0 = vld [vmem:[%s11464_s9 + $0x148] sm:$0xff]  }
 0x64c   :  { %v3353_v44 = vpop.f32.mrf.mxu0  ;;  %v3394_v31 = vpop.f32.mrf.mxu1  ;;  %v3129_v29 = vrot.slane %v10901_v55, %v3128_v35  ;;  %v3137_v50 = vrot.slane %v10901_v55, %v3136_v59  ;;  %v7087_v19 = vld [vmem:[%s11464_s9 + $0x1c8] sm:$0xff]  }
 0x64d   :  { %v3487_v28 = vpack.c.bf16 %v3479_v51, %v3479_v51  ;;  %v3489_v56 = vpack.c.bf16 %v3481_v58, %v3481_v58  ;;  %v7088_v36 = vld [vmem:[%s11464_s9 + $0x108] sm:$0xff]   ;;  %v7090_v51 = vld [vmem:[%s11464_s9 + $0x140] sm:$0xff]  }
 0x64e   :  { %v7089_v55 = vld [vmem:[%s11464_s9 + $0x188] sm:$0xff]   ;;  %v7091_v58 = vld [vmem:[%s11464_s9 + $0x1c0] sm:$0xff]  }
 0x64f   :  { %4045 = vmatprep.mubr.bf16.mxu0 %v3487_v28  ;;  %4085 = vmatprep.mubr.bf16.mxu1 %v3489_v56  ;;  %v7092_v44 = vld [vmem:[%s11464_s9 + $0x100] sm:$0xff]  }
 0x650   :  { %4046 = vmatmul.mubr.bf16.vlgmr.msra.gmra.mxu0 %v3486_v15  ;;  %4086 = vmatmul.mubr.bf16.vlgmr.msra.gmra.mxu1 %v3488_v63  ;;  %v7093_v31 = vld [vmem:[%s11464_s9 + $0x180] sm:$0xff]  }
 0x651   :  { %6807 = vmatpush3.bf16.msra.mxu0 %v7064_v12  ;;  %6829 = vmatpush3.bf16.msra.mxu1 %v7065_v1  ;;  %v4231_v15 = vld [vmem:[%s11466_s11 + $0x1c0] sm:$0xff] }
 0x652   :  { %6808 = vmatprep.subr.bf16.mxu0 %v7066_v60  ;;  %6830 = vmatprep.subr.bf16.mxu1 %v7067_v22  ;;  %v4235_v63 = vld [vmem:[%s11466_s11 + $0x1e0] sm:$0xff]  ;;  %v4232_v60 = vld [vmem:[%s11466_s11 + $0x1c8] sm:$0xff] }
 0x653   :  { %v5657_v22 = vcombine.low %v4231_v15, %v4235_v63 }
 0x655   :  { %6809 = vmatpush3.bf16.msra.mxu0 %v7068_v40  ;;  %6831 = vmatpush3.bf16.msra.mxu1 %v7069_v7  ;;  %v5658_v40 = vcombine.high %v4231_v15, %v4235_v63  ;;  %v4236_v7 = vld [vmem:[%s11466_s11 + $0x1e8] sm:$0xff] }
 0x656   :  { %v3430_v6 = vpop.f32.mrf.mxu0  ;;  %v3471_v38 = vpop.f32.mrf.mxu1  ;;  %6810 = vmatprep.subr.bf16.mxu0 %v7070_v20  ;;  %6832 = vmatprep.subr.bf16.mxu1 %v7071_v62  ;;  %v4223_v20 = vld [vmem:[%s11466_s11 + $0x180] sm:$0xff] }
 0x657   :  { %v3431_v30 = vadd.f32 %v3430_v6, %v3129_v29  ;;  %v3472_v13 = vadd.f32 %v3471_v38, %v3137_v50  ;;  %v4227_v62 = vld [vmem:[%s11466_s11 + $0x1a0] sm:$0xff]  ;;  %v4228_v6 = vld [vmem:[%s11466_s11 + $0x1a8] sm:$0xff] }
 0x658   :  { %v3432_v5 = vpop.f32.mrf.mxu0  ;;  %v3473_v46 = vpop.f32.mrf.mxu1  ;;  %v4215_v38 = vld [vmem:[%s11466_s11 + $0x140] sm:$0xff] }
 0x659   :  { %v3433_v23 = vadd.f32 %v3432_v5, %v3133_v42  ;;  %v3474_v61 = vadd.f32 %v3473_v46, %v3141_v14  ;;  %6811 = vmatpush3.bf16.msra.mxu0 %v7072_v52  ;;  %6833 = vmatpush3.bf16.msra.mxu1 %v7073_v16  ;;  %v3482_v28 = vmax.f32 %v3431_v30, 0.0  ;;  %v3484_v56 = vmax.f32 %v3472_v13, 0.0  ;;  %v4224_v16 = vld [vmem:[%s11466_s11 + $0x188] sm:$0xff] }
 0x65a   :  { %v3434_v41 = vpop.f32.mrf.mxu0  ;;  %v3475_v57 = vpop.f32.mrf.mxu1  ;;  %6812 = vmatprep.subr.bf16.mxu0 %v7074_v17  ;;  %6834 = vmatprep.subr.bf16.mxu1 %v7075_v53  ;;  %v5659_v42 = vcombine.low %v4232_v60, %v4236_v7  ;;  %v5660_v14 = vcombine.high %v4232_v60, %v4236_v7  ;;  %v5650_v52 = vcombine.high %v4223_v20, %v4227_v62  ;;  %v4219_v53 = vld [vmem:[%s11466_s11 + $0x160] sm:$0xff]  ;;  %v4216_v5 = vld [vmem:[%s11466_s11 + $0x148] sm:$0xff] }
 0x65b   :  { %v3483_v10 = vmax.f32 %v3433_v23, 0.0  ;;  %v3485_v48 = vmax.f32 %v3474_v61, 0.0  ;;  %v3490_v12 = vpack.c.bf16 %v3482_v28, %v3482_v28  ;;  %v3492_v1 = vpack.c.bf16 %v3484_v56, %v3484_v56  ;;  %v4220_v46 = vld [vmem:[%s11466_s11 + $0x168] sm:$0xff]  ;;  %v4207_v41 = vld [vmem:[%s11466_s11 + $0x100] sm:$0xff] }
 0x65c   :  { %v3435_v43 = vpop.f32.mrf.mxu0  ;;  %v3476_v21 = vpop.f32.mrf.mxu1  ;;  %v5652_v17 = vcombine.high %v4224_v16, %v4228_v6  ;;  %v5649_v23 = vcombine.low %v4223_v20, %v4227_v62  ;;  %v5651_v61 = vcombine.low %v4224_v16, %v4228_v6  ;;  %v4211_v57 = vld [vmem:[%s11466_s11 + $0x120] sm:$0xff]  ;;  %v4196_v30 = vld [vmem:[%s11466_s11 + $0xa8] sm:$0xff]  ;;  %v4237_v16 = vld [vmem:[%s11466_s11 + $0x1f0] sm:$0xff] }
 0x65d   :  { %v3491_v25 = vpack.c.bf16 %v3483_v10, %v3483_v10  ;;  %v3493_v24 = vpack.c.bf16 %v3485_v48, %v3485_v48  ;;  %6813 = vmatpush3.bf16.msra.mxu0 %v7076_v33  ;;  %6835 = vmatpush3.bf16.msra.mxu1 %v7077_v45  ;;  %v5642_v33 = vcombine.high %v4215_v38, %v4219_v53  ;;  %v4184_v28 = vld [vmem:[%s11466_s11 + $0x48] sm:$0xff]  ;;  %v4175_v60 = vld [vmem:[%s11466_s11] sm:$0xff]  ;;  %v4234_v6 = vld [vmem:[%s11466_s11 + $0x1d8] sm:$0xff] }
 0x65e   :  { %6814 = vmatprep.subr.bf16.mxu0 %v7078_v4  ;;  %6836 = vmatprep.subr.bf16.mxu1 %v7079_v47  ;;  %v5644_v45 = vcombine.high %v4216_v5, %v4220_v46  ;;  %v4208_v4 = vld [vmem:[%s11466_s11 + $0x108] sm:$0xff]  ;;  %v5641_v10 = vcombine.low %v4215_v38, %v4219_v53  ;;  %v5643_v48 = vcombine.low %v4216_v5, %v4220_v46 }
 0x65f   :  { %4125 = vmatprep.mubr.bf16.mxu0 %v3491_v25  ;;  %4165 = vmatprep.mubr.bf16.mxu1 %v3493_v24  ;;  %v4212_v47 = vld [vmem:[%s11466_s11 + $0x128] sm:$0xff]  ;;  %v5634_v43 = vcombine.high %v4207_v41, %v4211_v57  ;;  %v4199_v25 = vld [vmem:[%s11466_s11 + $0xc0] sm:$0xff] }
 0x660   :  { %v5636_v21 = vcombine.high %v4208_v4, %v4212_v47  ;;  %v4203_v24 = vld [vmem:[%s11466_s11 + $0xe0] sm:$0xff]  ;;  %v4180_v20 = vld [vmem:[%s11466_s11 + $0x28] sm:$0xff] }
 0x661   :  { %6815 = vmatpush3.bf16.msra.mxu0 %v7080_v11  ;;  %6837 = vmatpush3.bf16.msra.mxu1 %v7081_v39  ;;  %v4200_v11 = vld [vmem:[%s11466_s11 + $0xc8] sm:$0xff]  ;;  %v5625_v29 = vcombine.low %v4199_v25, %v4203_v24 }
 0x662   :  { %6816 = vmatprep.subr.bf16.mxu0 %v7082_v8  ;;  %6838 = vmatprep.subr.bf16.mxu1 %v7083_v3  ;;  %v4204_v39 = vld [vmem:[%s11466_s11 + $0xe8] sm:$0xff]  ;;  %v5633_v8 = vcombine.low %v4207_v41, %v4211_v57  ;;  %v5635_v3 = vcombine.low %v4208_v4, %v4212_v47 }
 0x663   :  { %v5627_v50 = vcombine.low %v4200_v11, %v4204_v39 }
 0x665   :  { %6817 = vmatpush3.bf16.msra.mxu0 %v7084_v34  ;;  %6839 = vmatpush3.bf16.msra.mxu1 %v7085_v54  ;;  %v5626_v34 = vcombine.high %v4199_v25, %v4203_v24  ;;  %v5628_v54 = vcombine.high %v4200_v11, %v4204_v39 }
 0x666   :  { %6818 = vmatprep.subr.bf16.mxu0 %v7086_v0  ;;  %6840 = vmatprep.subr.bf16.mxu1 %v7087_v19  ;;  %v4191_v0 = vld [vmem:[%s11466_s11 + $0x80] sm:$0xff] }
 0x667   :  { %v4195_v19 = vld [vmem:[%s11466_s11 + $0xa0] sm:$0xff] }
 0x668   :  { %v5617_v13 = vcombine.low %v4191_v0, %v4195_v19 }
 0x669   :  { %6819 = vmatpush3.bf16.msra.mxu0 %v7088_v36  ;;  %6841 = vmatpush3.bf16.msra.mxu1 %v7089_v55  ;;  %v4192_v36 = vld [vmem:[%s11466_s11 + $0x88] sm:$0xff]  ;;  %v5618_v55 = vcombine.high %v4191_v0, %v4195_v19 }
 0x66a   :  { %6820 = vmatprep.subr.bf16.mxu0 %v7090_v51  ;;  %6842 = vmatprep.subr.bf16.mxu1 %v7091_v58  ;;  %v5619_v51 = vcombine.low %v4192_v36, %v4196_v30  ;;  %v5620_v58 = vcombine.high %v4192_v36, %v4196_v30  ;;  %v4229_v30 = vld [vmem:[%s11466_s11 + $0x1b0] sm:$0xff] }
 0x66d   :  { %6821 = vmatpush3.bf16.msra.mxu0 %v7092_v44  ;;  %6843 = vmatpush3.bf16.msra.mxu1 %v7093_v31  ;;  %v4183_v44 = vld [vmem:[%s11466_s11 + $0x40] sm:$0xff] }
 0x66e   :  { %4601 = vmatprep.subr.bf16.mxu0 %v5658_v40  ;;  %4642 = vmatprep.subr.bf16.mxu1 %v5660_v14  ;;  %v4187_v31 = vld [vmem:[%s11466_s11 + $0x60] sm:$0xff]  ;;  %v4176_v40 = vld [vmem:[%s11466_s11 + $0x8] sm:$0xff] }
 0x66f   :  { %v5610_v56 = vcombine.high %v4183_v44, %v4187_v31  ;;  %v5604_v14 = vcombine.high %v4176_v40, %v4180_v20 }
 0x670   :  { %4126 = vmatmul.mubr.bf16.vlgmr.msra.gmra.mxu0 %v3490_v12  ;;  %4166 = vmatmul.mubr.bf16.vlgmr.msra.gmra.mxu1 %v3492_v1  ;;  %v4188_v12 = vld [vmem:[%s11466_s11 + $0x68] sm:$0xff]  ;;  %v5609_v1 = vcombine.low %v4183_v44, %v4187_v31 }
 0x671   :  { %4633 = vmatprep.mubr.bf16.mxu0 %v7575_v2  ;;  %4674 = vmatprep.mubr.bf16.mxu1 %v7575_v2  ;;  %v5611_v15 = vcombine.low %v4184_v28, %v4188_v12  ;;  %v5612_v63 = vcombine.high %v4184_v28, %v4188_v12  ;;  %v4221_v12 = vld [vmem:[%s11466_s11 + $0x170] sm:$0xff] }
 0x672   :  { %4602 = vmatpush1.bf16.msra.mxu0 %v5657_v22  ;;  %4643 = vmatpush1.bf16.msra.mxu1 %v5659_v42  ;;  %v4179_v22 = vld [vmem:[%s11466_s11 + $0x20] sm:$0xff]  ;;  %v5603_v42 = vcombine.low %v4176_v40, %v4180_v20  ;;  %v4213_v20 = vld [vmem:[%s11466_s11 + $0x130] sm:$0xff] }
 0x673   :  { %4603 = vmatprep.subr.bf16.mxu0 %v5650_v52  ;;  %4644 = vmatprep.subr.bf16.mxu1 %v5652_v17  ;;  %v5602_v7 = vcombine.high %v4175_v60, %v4179_v22  ;;  %v5601_v62 = vcombine.low %v4175_v60, %v4179_v22  ;;  %v4233_v52 = vld [vmem:[%s11466_s11 + $0x1d0] sm:$0xff]  ;;  %v4238_v17 = vld [vmem:[%s11466_s11 + $0x1f8] sm:$0xff] }
 0x674   :  { %v5662_v38 = vcombine.high %v4233_v52, %v4237_v16  ;;  %v5661_v53 = vcombine.low %v4233_v52, %v4237_v16  ;;  %v5663_v5 = vcombine.low %v4234_v6, %v4238_v17  ;;  %v5664_v46 = vcombine.high %v4234_v6, %v4238_v17  ;;  %v4205_v17 = vld [vmem:[%s11466_s11 + $0xf0] sm:$0xff] }
 0x676   :  { %4604 = vmatpush1.bf16.msra.mxu0 %v5649_v23  ;;  %4645 = vmatpush1.bf16.msra.mxu1 %v5651_v61 }
 0x677   :  { %4605 = vmatprep.subr.bf16.mxu0 %v5642_v33  ;;  %4646 = vmatprep.subr.bf16.mxu1 %v5644_v45 }
 0x67a   :  { %4606 = vmatpush1.bf16.msra.mxu0 %v5641_v10  ;;  %4647 = vmatpush1.bf16.msra.mxu1 %v5643_v48  ;;  %v5536_v48 = vld [vmem:[%s11465_s10] ss:$0 sm:$0xff] }
 0x67b   :  { %4607 = vmatprep.subr.bf16.mxu0 %v5634_v43  ;;  %4648 = vmatprep.subr.bf16.mxu1 %v5636_v21 }
 0x67e   :  { %4608 = vmatpush1.bf16.msra.mxu0 %v5633_v8  ;;  %4649 = vmatpush1.bf16.msra.mxu1 %v5635_v3 }
 0x67f   :  { %4609 = vmatprep.subr.bf16.mxu0 %v5626_v34  ;;  %4650 = vmatprep.subr.bf16.mxu1 %v5628_v54 }
 0x682   :  { %4610 = vmatpush1.bf16.msra.mxu0 %v5625_v29  ;;  %4651 = vmatpush1.bf16.msra.mxu1 %v5627_v50 }
 0x683   :  { %4611 = vmatprep.subr.bf16.mxu0 %v5618_v55  ;;  %4652 = vmatprep.subr.bf16.mxu1 %v5620_v58  ;;  %v4225_v55 = vld [vmem:[%s11466_s11 + $0x190] sm:$0xff] }
 0x684   :  { %v5654_v31 = vcombine.high %v4225_v55, %v4229_v30 }
 0x686   :  { %4612 = vmatpush1.bf16.msra.mxu0 %v5617_v13  ;;  %4653 = vmatpush1.bf16.msra.mxu1 %v5619_v51  ;;  %v4226_v13 = vld [vmem:[%s11466_s11 + $0x198] sm:$0xff] }
 0x687   :  { %4613 = vmatprep.subr.bf16.mxu0 %v5610_v56  ;;  %4654 = vmatprep.subr.bf16.mxu1 %v5612_v63  ;;  %v4230_v51 = vld [vmem:[%s11466_s11 + $0x1b8] sm:$0xff]  ;;  %v4217_v56 = vld [vmem:[%s11466_s11 + $0x150] sm:$0xff]  ;;  %v5653_v63 = vcombine.low %v4225_v55, %v4229_v30 }
 0x688   :  { %v5656_v28 = vcombine.high %v4226_v13, %v4230_v51  ;;  %v5655_v60 = vcombine.low %v4226_v13, %v4230_v51  ;;  %v5646_v22 = vcombine.high %v4217_v56, %v4221_v12  ;;  %v7094_v51 = vld [vmem:[%s11468_s13 + $0x78] sm:$0xff]  }
 0x68a   :  { %4614 = vmatpush1.bf16.msra.mxu0 %v5609_v1  ;;  %4655 = vmatpush1.bf16.msra.mxu1 %v5611_v15  ;;  %v4218_v1 = vld [vmem:[%s11466_s11 + $0x158] sm:$0xff] }
 0x68b   :  { %4615 = vmatprep.subr.bf16.mxu0 %v5602_v7  ;;  %4656 = vmatprep.subr.bf16.mxu1 %v5604_v14  ;;  %v4222_v15 = vld [vmem:[%s11466_s11 + $0x178] sm:$0xff]  ;;  %v4209_v7 = vld [vmem:[%s11466_s11 + $0x110] sm:$0xff]  ;;  %v5645_v14 = vcombine.low %v4217_v56, %v4221_v12 }
 0x68c   :  { %v5648_v40 = vcombine.high %v4218_v1, %v4222_v15  ;;  %v5647_v52 = vcombine.low %v4218_v1, %v4222_v15  ;;  %v5638_v16 = vcombine.high %v4209_v7, %v4213_v20  ;;  %v7098_v56 = vld [vmem:[%s11468_s13 + $0x70] sm:$0xff]  }
 0x68d   :  { %v7099_v12 = vld [vmem:[%s11468_s13 + $0xf0] sm:$0xff]  }
 0x68e   :  { %4616 = vmatpush1.bf16.msra.mxu0 %v5601_v62  ;;  %4657 = vmatpush1.bf16.msra.mxu1 %v5603_v42  ;;  %v4210_v62 = vld [vmem:[%s11466_s11 + $0x118] sm:$0xff]  ;;  %v7100_v1 = vld [vmem:[%s11468_s13 + $0x30] sm:$0xff]  }
 0x68f   :  { %4683 = vmatprep.subr.bf16.mxu0 %v5662_v38  ;;  %4724 = vmatprep.subr.bf16.mxu1 %v5664_v46  ;;  %v4214_v42 = vld [vmem:[%s11466_s11 + $0x138] sm:$0xff]  ;;  %v4201_v38 = vld [vmem:[%s11466_s11 + $0xd0] sm:$0xff] }
 0x690   :  { %v5640_v6 = vcombine.high %v4210_v62, %v4214_v42  ;;  %v5639_v46 = vcombine.low %v4210_v62, %v4214_v42  ;;  %v7101_v15 = vld [vmem:[%s11468_s13 + $0xb0] sm:$0xff]   ;;  %v7109_v62 = vld [vmem:[%s11468_s13 + $0xa0] sm:$0xff]   ;;  %v7110_v42 = vld [vmem:[%s11468_s13 + $0x58] sm:$0xff]  }
 0x710   :  { %v6778_v23 = vpop.f32.mrf.mxu0  ;;  %v6800_v61 = vpop.f32.mrf.mxu1 }
 0x712   :  { %v6779_v33 = vpop.f32.mrf.mxu0  ;;  %v6801_v45 = vpop.f32.mrf.mxu1 }
 0x713   :  { %v6780_v10 = vadd.f32 %v6779_v33, %v6778_v23  ;;  %v6802_v24 = vadd.f32 %v6801_v45, %v6800_v61  ;;  %v5630_v23 = vcombine.high %v4201_v38, %v4205_v17  ;;  %v4193_v33 = vld [vmem:[%s11466_s11 + $0x90] sm:$0xff] }
 0x714   :  { %v6781_v41 = vpop.f32.mrf.mxu0  ;;  %v6803_v57 = vpop.f32.mrf.mxu1  ;;  %v4197_v45 = vld [vmem:[%s11466_s11 + $0xb0] sm:$0xff] }
 0x715   :  { %v4048_v43 = vadd.f32 %v6780_v10, %v5536_v48  ;;  %v4194_v41 = vld [vmem:[%s11466_s11 + $0x98] sm:$0xff]  ;;  %v5622_v10 = vcombine.high %v4193_v33, %v4197_v45 }
 0x716   :  { %v6782_v4 = vpop.f32.mrf.mxu0  ;;  %v6804_v47 = vpop.f32.mrf.mxu1  ;;  %v4198_v57 = vld [vmem:[%s11466_s11 + $0xb8] sm:$0xff] }
 0x717   :  { %v4088_v8 = vadd.f32 %v6802_v24, %v4048_v43  ;;  %v5629_v4 = vcombine.low %v4201_v38, %v4205_v17  ;;  %v5624_v48 = vcombine.high %v4194_v41, %v4198_v57  ;;  %v4185_v43 = vld [vmem:[%s11466_s11 + $0x50] sm:$0xff]  ;;  %v4190_v24 = vld [vmem:[%s11466_s11 + $0x78] sm:$0xff] }
 0x718   :  { %v7115_v38 = vld [vmem:[%s11468_s13 + $0xd0] sm:$0xff]  }
 0x719   :  { %v7116_v17 = vld [vmem:[%s11468_s13 + $0x10] sm:$0xff]  }
 0x730   :  { %v6822_v21 = vpop.f32.mrf.mxu0  ;;  %v6844_v25 = vpop.f32.mrf.mxu1 }
 0x732   :  { %v6823_v11 = vpop.f32.mrf.mxu0  ;;  %v6845_v39 = vpop.f32.mrf.mxu1 }
 0x733   :  { %v6824_v3 = vadd.f32 %v6823_v11, %v6822_v21  ;;  %v6846_v50 = vadd.f32 %v6845_v39, %v6844_v25  ;;  %v4189_v21 = vld [vmem:[%s11466_s11 + $0x70] sm:$0xff]  ;;  %v4186_v25 = vld [vmem:[%s11466_s11 + $0x58] sm:$0xff]  ;;  %v5621_v11 = vcombine.low %v4193_v33, %v4197_v45  ;;  %v5623_v39 = vcombine.low %v4194_v41, %v4198_v57  ;;  %v7123_v33 = vld [vmem:[%s11468_s13 + $0xc0] sm:$0xff]  }
 0x734   :  { %v6825_v34 = vpop.f32.mrf.mxu0  ;;  %v6847_v54 = vpop.f32.mrf.mxu1  ;;  %v7124_v45 = vld [vmem:[%s11468_s13] sm:$0xff]   ;;  %v7126_v57 = vld [vmem:[%s11468_s13 + $0x178] sm:$0xff]  }
 0x735   :  { %v4128_v29 = vadd.f32 %v6824_v3, %v4088_v8  ;;  %v5614_v8 = vcombine.high %v4185_v43, %v4189_v21  ;;  %v5616_v3 = vcombine.high %v4186_v25, %v4190_v24  ;;  %v4177_v34 = vld [vmem:[%s11466_s11 + $0x10] sm:$0xff]  ;;  %v7125_v41 = vld [vmem:[%s11468_s13 + $0x80] sm:$0xff]  }
 0x736   :  { %v6826_v0 = vpop.f32.mrf.mxu0  ;;  %v6848_v19 = vpop.f32.mrf.mxu1  ;;  %v4181_v54 = vld [vmem:[%s11466_s11 + $0x30] sm:$0xff] }
 0x737   :  { %v4168_v36 = vadd.f32 %v6846_v50, %v4128_v29  ;;  %v4178_v29 = vld [vmem:[%s11466_s11 + $0x18] sm:$0xff]  ;;  %v5613_v0 = vcombine.low %v4185_v43, %v4189_v21  ;;  %v5615_v19 = vcombine.low %v4186_v25, %v4190_v24  ;;  %v5605_v30 = vcombine.low %v4177_v34, %v4181_v54 }
 0x738   :  { %v4182_v50 = vld [vmem:[%s11466_s11 + $0x38] sm:$0xff] }
 0x739   :  { %v4173_v58 = vmax.f32 %v4168_v36, 0.0  ;;  %v5606_v36 = vcombine.high %v4177_v34, %v4181_v54  ;;  %v5608_v55 = vcombine.high %v4178_v29, %v4182_v50  ;;  %v5607_v13 = vcombine.low %v4178_v29, %v4182_v50 }
 0x73b   :  { %v11148_v44 = vpack.c.bf16 %v4173_v58, %v4173_v58  ;;  %v7095_v58 = vld [vmem:[%s11468_s13 + $0xf8] sm:$0xff]  }
 0x73d   :  { %4634 = vmatmul.mubr.bf16.vlgmr.msra.gmra.mxu0 %v11148_v44  ;;  %4675 = vmatmul.mubr.bf16.vlgmr.msra.gmra.mxu1 %v11148_v44 }
 0x73e   :  { %4684 = vmatpush1.bf16.msra.mxu0 %v5661_v53  ;;  %4725 = vmatpush1.bf16.msra.mxu1 %v5663_v5  ;;  %v4206_v53 = vld [vmem:[%s11466_s11 + $0xf8] sm:$0xff]  ;;  %v5637_v5 = vcombine.low %v4209_v7, %v4213_v20  ;;  %v7107_v7 = vld [vmem:[%s11468_s13 + $0xe0] sm:$0xff]  }
 0x73f   :  { %4685 = vmatprep.subr.bf16.mxu0 %v5654_v31  ;;  %4726 = vmatprep.subr.bf16.mxu1 %v5656_v28  ;;  %v7096_v31 = vld [vmem:[%s11468_s13 + $0x38] sm:$0xff]   ;;  %v7108_v20 = vld [vmem:[%s11468_s13 + $0x20] sm:$0xff]  }
 0x740   :  { %4715 = vmatprep.mubr.bf16.mxu0 %v7575_v2  ;;  %4756 = vmatprep.mubr.bf16.mxu1 %v7575_v2  ;;  %v4202_v2 = vld [vmem:[%s11466_s11 + $0xd8] sm:$0xff] }
 0x741   :  { %v5632_v61 = vcombine.high %v4202_v2, %v4206_v53  ;;  %v5631_v47 = vcombine.low %v4202_v2, %v4206_v53  ;;  %v7097_v28 = vld [vmem:[%s11468_s13 + $0xb8] sm:$0xff]   ;;  %v7117_v2 = vld [vmem:[%s11468_s13 + $0x90] sm:$0xff]   ;;  %v7118_v53 = vld [vmem:[%s11468_s13 + $0x48] sm:$0xff]  }
 0x742   :  { %4686 = vmatpush1.bf16.msra.mxu0 %v5653_v63  ;;  %4727 = vmatpush1.bf16.msra.mxu1 %v5655_v60  ;;  %v7102_v63 = vld [vmem:[%s11468_s13 + $0x68] sm:$0xff]  }
 0x743   :  { %4687 = vmatprep.subr.bf16.mxu0 %v5646_v22  ;;  %4728 = vmatprep.subr.bf16.mxu1 %v5648_v40  ;;  %v7104_v60 = vld [vmem:[%s11468_s13 + $0x28] sm:$0xff]   ;;  %v7106_v40 = vld [vmem:[%s11468_s13 + $0x60] sm:$0xff]  }
 0x744   :  { %v7105_v22 = vld [vmem:[%s11468_s13 + $0xa8] sm:$0xff]  }
 0x746   :  { %4688 = vmatpush1.bf16.msra.mxu0 %v5645_v14  ;;  %4729 = vmatpush1.bf16.msra.mxu1 %v5647_v52  ;;  %v7111_v14 = vld [vmem:[%s11468_s13 + $0xd8] sm:$0xff]  }
 0x747   :  { %4689 = vmatprep.subr.bf16.mxu0 %v5638_v16  ;;  %4730 = vmatprep.subr.bf16.mxu1 %v5640_v6  ;;  %v7112_v52 = vld [vmem:[%s11468_s13 + $0x18] sm:$0xff]   ;;  %v7114_v6 = vld [vmem:[%s11468_s13 + $0x50] sm:$0xff]  }
 0x748   :  { %v7113_v16 = vld [vmem:[%s11468_s13 + $0x98] sm:$0xff]  }
 0x74a   :  { %4690 = vmatpush1.bf16.msra.mxu0 %v5637_v5  ;;  %4731 = vmatpush1.bf16.msra.mxu1 %v5639_v46  ;;  %v7119_v5 = vld [vmem:[%s11468_s13 + $0xc8] sm:$0xff]  }
 0x74b   :  { %4691 = vmatprep.subr.bf16.mxu0 %v5630_v23  ;;  %4732 = vmatprep.subr.bf16.mxu1 %v5632_v61  ;;  %v7120_v46 = vld [vmem:[%s11468_s13 + $0x8] sm:$0xff]   ;;  %v7122_v61 = vld [vmem:[%s11468_s13 + $0x40] sm:$0xff]  }
 0x74c   :  { %v7121_v23 = vld [vmem:[%s11468_s13 + $0x88] sm:$0xff]  }
 0x74e   :  { %4692 = vmatpush1.bf16.msra.mxu0 %v5629_v4  ;;  %4733 = vmatpush1.bf16.msra.mxu1 %v5631_v47  ;;  %v7127_v4 = vld [vmem:[%s11468_s13 + $0x1f8] sm:$0xff]   ;;  %v11333_v47 = vld [vmem:[%s11467_s12] sm:$0xff] }
 0x74f   :  { %4693 = vmatprep.subr.bf16.mxu0 %v5622_v10  ;;  %4734 = vmatprep.subr.bf16.mxu1 %v5624_v48  ;;  %v4244_v10 = vrot.slane %v11333_v47, %v3112_v18  ;;  %v4252_v48 = vrot.slane %v11333_v47, %v3120_v37  ;;  %v4248_v43 = vrot.slane %v11333_v47, %v3116_v49 }
 0x750   :  { %v4256_v21 = vrot.slane %v11333_v47, %v3124_v26  ;;  %v7128_v26 = vld [vmem:[%s11468_s13 + $0x138] sm:$0xff]  }
 0x752   :  { %4694 = vmatpush1.bf16.msra.mxu0 %v5621_v11  ;;  %4735 = vmatpush1.bf16.msra.mxu1 %v5623_v39 }
 0x753   :  { %4695 = vmatprep.subr.bf16.mxu0 %v5614_v8  ;;  %4736 = vmatprep.subr.bf16.mxu1 %v5616_v3 }
 0x756   :  { %4696 = vmatpush1.bf16.msra.mxu0 %v5613_v0  ;;  %4737 = vmatpush1.bf16.msra.mxu1 %v5615_v19 }
 0x757   :  { %4697 = vmatprep.subr.bf16.mxu0 %v5606_v36  ;;  %4738 = vmatprep.subr.bf16.mxu1 %v5608_v55 }
 0x75a   :  { %4698 = vmatpush1.bf16.msra.mxu0 %v5605_v30  ;;  %4739 = vmatpush1.bf16.msra.mxu1 %v5607_v13  ;;  %v7129_v13 = vld [vmem:[%s11468_s13 + $0x1b8] sm:$0xff]  }
 0x75b   :  { %6850 = vmatprep.subr.bf16.mxu0 %v7094_v51  ;;  %6872 = vmatprep.subr.bf16.mxu1 %v7095_v58 }
 0x75d   :  { %4716 = vmatmul.mubr.bf16.vlgmr.msra.gmra.mxu0 %v11148_v44  ;;  %4757 = vmatmul.mubr.bf16.vlgmr.msra.gmra.mxu1 %v11148_v44  ;;  %v7103_v44 = vld [vmem:[%s11468_s13 + $0xe8] sm:$0xff]  }
 0x75e   :  { %6851 = vmatpush3.bf16.msra.mxu0 %v7096_v31  ;;  %6873 = vmatpush3.bf16.msra.mxu1 %v7097_v28  ;;  %v7130_v31 = vld [vmem:[%s11468_s13 + $0x170] sm:$0xff]  }
 0x75f   :  { %6852 = vmatprep.subr.bf16.mxu0 %v7098_v56  ;;  %6874 = vmatprep.subr.bf16.mxu1 %v7099_v12  ;;  %v7131_v28 = vld [vmem:[%s11468_s13 + $0x1f0] sm:$0xff]  }
 0x760   :  { %v7132_v56 = vld [vmem:[%s11468_s13 + $0x130] sm:$0xff]  }
 0x761   :  { %v7133_v12 = vld [vmem:[%s11468_s13 + $0x1b0] sm:$0xff]  }
 0x762   :  { %6853 = vmatpush3.bf16.msra.mxu0 %v7100_v1  ;;  %6875 = vmatpush3.bf16.msra.mxu1 %v7101_v15  ;;  %v7134_v1 = vld [vmem:[%s11468_s13 + $0x168] sm:$0xff]  }
 0x763   :  { %6854 = vmatprep.subr.bf16.mxu0 %v7102_v63  ;;  %6876 = vmatprep.subr.bf16.mxu1 %v7103_v44  ;;  %v7135_v15 = vld [vmem:[%s11468_s13 + $0x1e8] sm:$0xff]  }
 0x764   :  { %v7136_v63 = vld [vmem:[%s11468_s13 + $0x128] sm:$0xff]  }
 0x765   :  { %v7137_v44 = vld [vmem:[%s11468_s13 + $0x1a8] sm:$0xff]  }
 0x766   :  { %6855 = vmatpush3.bf16.msra.mxu0 %v7104_v60  ;;  %6877 = vmatpush3.bf16.msra.mxu1 %v7105_v22  ;;  %v7138_v60 = vld [vmem:[%s11468_s13 + $0x160] sm:$0xff]  }
 0x767   :  { %6856 = vmatprep.subr.bf16.mxu0 %v7106_v40  ;;  %6878 = vmatprep.subr.bf16.mxu1 %v7107_v7  ;;  %v7139_v22 = vld [vmem:[%s11468_s13 + $0x1e0] sm:$0xff]  }
 0x768   :  { %v7140_v40 = vld [vmem:[%s11468_s13 + $0x120] sm:$0xff]  }
 0x769   :  { %v7141_v7 = vld [vmem:[%s11468_s13 + $0x1a0] sm:$0xff]  }
 0x76a   :  { %6857 = vmatpush3.bf16.msra.mxu0 %v7108_v20  ;;  %6879 = vmatpush3.bf16.msra.mxu1 %v7109_v62  ;;  %v7142_v20 = vld [vmem:[%s11468_s13 + $0x158] sm:$0xff]  }
 0x76b   :  { %6858 = vmatprep.subr.bf16.mxu0 %v7110_v42  ;;  %6880 = vmatprep.subr.bf16.mxu1 %v7111_v14  ;;  %v7143_v62 = vld [vmem:[%s11468_s13 + $0x1d8] sm:$0xff]  }
 0x76c   :  { %v7144_v42 = vld [vmem:[%s11468_s13 + $0x118] sm:$0xff]  }
 0x76d   :  { %v7145_v14 = vld [vmem:[%s11468_s13 + $0x198] sm:$0xff]  }
 0x76e   :  { %6859 = vmatpush3.bf16.msra.mxu0 %v7112_v52  ;;  %6881 = vmatpush3.bf16.msra.mxu1 %v7113_v16  ;;  %v7146_v52 = vld [vmem:[%s11468_s13 + $0x150] sm:$0xff]  }
 0x76f   :  { %6860 = vmatprep.subr.bf16.mxu0 %v7114_v6  ;;  %6882 = vmatprep.subr.bf16.mxu1 %v7115_v38  ;;  %v7147_v16 = vld [vmem:[%s11468_s13 + $0x1d0] sm:$0xff]  }
 0x770   :  { %v7148_v6 = vld [vmem:[%s11468_s13 + $0x110] sm:$0xff]  }
 0x771   :  { %v7149_v38 = vld [vmem:[%s11468_s13 + $0x190] sm:$0xff]  }
 0x772   :  { %6861 = vmatpush3.bf16.msra.mxu0 %v7116_v17  ;;  %6883 = vmatpush3.bf16.msra.mxu1 %v7117_v2  ;;  %v7150_v17 = vld [vmem:[%s11468_s13 + $0x148] sm:$0xff]  }
 0x773   :  { %6862 = vmatprep.subr.bf16.mxu0 %v7118_v53  ;;  %6884 = vmatprep.subr.bf16.mxu1 %v7119_v5  ;;  %v7151_v2 = vld [vmem:[%s11468_s13 + $0x1c8] sm:$0xff]   ;;  %v4260_v53 = vrot.slane %v11333_v47, %v3128_v35  ;;  %v4268_v5 = vrot.slane %v11333_v47, %v3136_v59 }
 0x774   :  { %v7153_v35 = vld [vmem:[%s11468_s13 + $0x188] sm:$0xff]  }
 0x776   :  { %6863 = vmatpush3.bf16.msra.mxu0 %v7120_v46  ;;  %6885 = vmatpush3.bf16.msra.mxu1 %v7121_v23  ;;  %v4264_v46 = vrot.slane %v11333_v47, %v3132_v9  ;;  %v4272_v23 = vrot.slane %v11333_v47, %v3140_v27  ;;  %v7154_v9 = vld [vmem:[%s11468_s13 + $0x140] sm:$0xff]  }
 0x777   :  { %6864 = vmatprep.subr.bf16.mxu0 %v7122_v61  ;;  %6886 = vmatprep.subr.bf16.mxu1 %v7123_v33  ;;  %v7152_v61 = vld [vmem:[%s11468_s13 + $0x108] sm:$0xff]  }
 0x77a   :  { %6865 = vmatpush3.bf16.msra.mxu0 %v7124_v45  ;;  %6887 = vmatpush3.bf16.msra.mxu1 %v7125_v41 }
 0x77b   :  { %6894 = vmatprep.subr.bf16.mxu0 %v7126_v57  ;;  %6916 = vmatprep.subr.bf16.mxu1 %v7127_v4 }
 0x7fd   :  { %v4635_v25 = vpop.f32.mrf.mxu0  ;;  %v4676_v24 = vpop.f32.mrf.mxu1 }
 0x7fe   :  { %v4636_v11 = vadd.f32 %v4635_v25, %v4244_v10  ;;  %v4677_v39 = vadd.f32 %v4676_v24, %v4252_v48  ;;  %v7156_v10 = vld [vmem:[%s11468_s13 + $0x100] sm:$0xff]  }
 0x7ff   :  { %v4637_v8 = vpop.f32.mrf.mxu0  ;;  %v4678_v3 = vpop.f32.mrf.mxu1  ;;  %v7157_v48 = vld [vmem:[%s11468_s13 + $0x180] sm:$0xff]  }
 0x800   :  { %v4638_v34 = vadd.f32 %v4637_v8, %v4248_v43  ;;  %v4679_v18 = vadd.f32 %v4678_v3, %v4256_v21  ;;  %v4765_v54 = vmax.f32 %v4636_v11, 0.0  ;;  %v4767_v29 = vmax.f32 %v4677_v39, 0.0 }
 0x801   :  { %v4639_v50 = vpop.f32.mrf.mxu0  ;;  %v4680_v37 = vpop.f32.mrf.mxu1 }
 0x802   :  { %v4766_v0 = vmax.f32 %v4638_v34, 0.0  ;;  %v4768_v19 = vmax.f32 %v4679_v18, 0.0  ;;  %v4773_v51 = vpack.c.bf16 %v4765_v54, %v4765_v54  ;;  %v4775_v58 = vpack.c.bf16 %v4767_v29, %v4767_v29 }
 0x803   :  { %v4640_v36 = vpop.f32.mrf.mxu0  ;;  %v4681_v49 = vpop.f32.mrf.mxu1 }
 0x804   :  { %v4774_v55 = vpack.c.bf16 %v4766_v0, %v4766_v0  ;;  %v4776_v30 = vpack.c.bf16 %v4768_v19, %v4768_v19 }
 0x806   :  { %5332 = vmatprep.mubr.bf16.mxu0 %v4774_v55  ;;  %5372 = vmatprep.mubr.bf16.mxu1 %v4776_v30 }
 0x807   :  { %5333 = vmatmul.mubr.bf16.vlgmr.msra.gmra.mxu0 %v4773_v51  ;;  %5373 = vmatmul.mubr.bf16.vlgmr.msra.gmra.mxu1 %v4775_v58 }
 0x808   :  { %6895 = vmatpush3.bf16.msra.mxu0 %v7128_v26  ;;  %6917 = vmatpush3.bf16.msra.mxu1 %v7129_v13  ;;  %v5665_v13 = vld [vmem:[%s11469_s14] ss:$0 sm:$0xff]  ;;  %s7553_s14 = scalar_lea.vmem %s5468_s1, 32 }
 0x809   :  { %6896 = vmatprep.subr.bf16.mxu0 %v7130_v31  ;;  %6918 = vmatprep.subr.bf16.mxu1 %v7131_v28  ;;  %p7554_p0 = scmp.ne.s32.totalorder %s5468_s1, %s7553_s14  ;;  %p7559_p2 = scmp.lt.s32.totalorder %s7553_s14, %s7553_s14 }
 0x80b   :  { %p7560_p3 = por %p7559_p2, %p7558_p1 }
 0x80c   :  { %6897 = vmatpush3.bf16.msra.mxu0 %v7132_v56  ;;  %6919 = vmatpush3.bf16.msra.mxu1 %v7133_v12 }
 0x80d   :  { %6898 = vmatprep.subr.bf16.mxu0 %v7134_v1  ;;  %6920 = vmatprep.subr.bf16.mxu1 %v7135_v15  ;;  %p7561_p4 = pnand %p7560_p3, %p7554_p0 }
 0x810   :  { %6899 = vmatpush3.bf16.msra.mxu0 %v7136_v63  ;;  %6921 = vmatpush3.bf16.msra.mxu1 %v7137_v44 }
 0x811   :  { %6900 = vmatprep.subr.bf16.mxu0 %v7138_v60  ;;  %6922 = vmatprep.subr.bf16.mxu1 %v7139_v22 }
 0x814   :  { %6901 = vmatpush3.bf16.msra.mxu0 %v7140_v40  ;;  %6923 = vmatpush3.bf16.msra.mxu1 %v7141_v7 }
 0x815   :  { %6902 = vmatprep.subr.bf16.mxu0 %v7142_v20  ;;  %6924 = vmatprep.subr.bf16.mxu1 %v7143_v62 }
 0x818   :  { %6903 = vmatpush3.bf16.msra.mxu0 %v7144_v42  ;;  %6925 = vmatpush3.bf16.msra.mxu1 %v7145_v14 }
 0x819   :  { %6904 = vmatprep.subr.bf16.mxu0 %v7146_v52  ;;  %6926 = vmatprep.subr.bf16.mxu1 %v7147_v16 }
 0x81c   :  { %6905 = vmatpush3.bf16.msra.mxu0 %v7148_v6  ;;  %6927 = vmatpush3.bf16.msra.mxu1 %v7149_v38 }
 0x81d   :  { %v4717_v33 = vpop.f32.mrf.mxu0  ;;  %v4758_v59 = vpop.f32.mrf.mxu1  ;;  %6906 = vmatprep.subr.bf16.mxu0 %v7150_v17  ;;  %6928 = vmatprep.subr.bf16.mxu1 %v7151_v2 }
 0x81e   :  { %v4718_v27 = vadd.f32 %v4717_v33, %v4260_v53  ;;  %v4759_v45 = vadd.f32 %v4758_v59, %v4268_v5 }
 0x81f   :  { %v4719_v41 = vpop.f32.mrf.mxu0  ;;  %v4760_v57 = vpop.f32.mrf.mxu1 }
 0x820   :  { %v4720_v4 = vadd.f32 %v4719_v41, %v4264_v46  ;;  %v4761_v47 = vadd.f32 %v4760_v57, %v4272_v23  ;;  %6907 = vmatpush3.bf16.msra.mxu0 %v7152_v61  ;;  %6929 = vmatpush3.bf16.msra.mxu1 %v7153_v35  ;;  %v4769_v43 = vmax.f32 %v4718_v27, 0.0  ;;  %v4771_v21 = vmax.f32 %v4759_v45, 0.0 }
 0x821   :  { %v4721_v25 = vpop.f32.mrf.mxu0  ;;  %v4762_v24 = vpop.f32.mrf.mxu1  ;;  %6908 = vmatprep.subr.bf16.mxu0 %v7154_v9  ;;  %6930 = vmatprep.subr.bf16.mxu1 %v7155_v32 }
 0x822   :  { %v4770_v11 = vmax.f32 %v4720_v4, 0.0  ;;  %v4772_v39 = vmax.f32 %v4761_v47, 0.0  ;;  %v4777_v54 = vpack.c.bf16 %v4769_v43, %v4769_v43  ;;  %v4779_v29 = vpack.c.bf16 %v4771_v21, %v4771_v21 }
 0x823   :  { %v4722_v8 = vpop.f32.mrf.mxu0  ;;  %v4763_v3 = vpop.f32.mrf.mxu1 }
 0x824   :  { %v4778_v34 = vpack.c.bf16 %v4770_v11, %v4770_v11  ;;  %v4780_v18 = vpack.c.bf16 %v4772_v39, %v4772_v39  ;;  %6909 = vmatpush3.bf16.msra.mxu0 %v7156_v10  ;;  %6931 = vmatpush3.bf16.msra.mxu1 %v7157_v48 }
 0x826   :  { %5412 = vmatprep.mubr.bf16.mxu0 %v4778_v34  ;;  %5452 = vmatprep.mubr.bf16.mxu1 %v4780_v18 }
 0x827   :  { %5413 = vmatmul.mubr.bf16.vlgmr.msra.gmra.mxu0 %v4777_v54  ;;  %5453 = vmatmul.mubr.bf16.vlgmr.msra.gmra.mxu1 %v4779_v29 }
 0x8c7   :  { %v6866_v50 = vpop.f32.mrf.mxu0  ;;  %v6888_v37 = vpop.f32.mrf.mxu1 }
 0x8c9   :  { %v6867_v0 = vpop.f32.mrf.mxu0  ;;  %v6889_v19 = vpop.f32.mrf.mxu1 }
 0x8ca   :  { %v6868_v26 = vadd.f32 %v6867_v0, %v6866_v50  ;;  %v6890_v28 = vadd.f32 %v6889_v19, %v6888_v37 }
 0x8cb   :  { %v6869_v36 = vpop.f32.mrf.mxu0  ;;  %v6891_v49 = vpop.f32.mrf.mxu1 }
 0x8cc   :  { %v5335_v51 = vadd.f32 %v6868_v26, %v5665_v13 }
 0x8cd   :  { %v6870_v55 = vpop.f32.mrf.mxu0  ;;  %v6892_v30 = vpop.f32.mrf.mxu1 }
 0x8ce   :  { %v5375_v1 = vadd.f32 %v6890_v28, %v5335_v51 }
 0x8e7   :  { %v6910_v58 = vpop.f32.mrf.mxu0  ;;  %v6932_v31 = vpop.f32.mrf.mxu1 }
 0x8e9   :  { %v6911_v56 = vpop.f32.mrf.mxu0  ;;  %v6933_v12 = vpop.f32.mrf.mxu1 }
 0x8ea   :  { %v6912_v15 = vadd.f32 %v6911_v56, %v6910_v58  ;;  %v6934_v22 = vadd.f32 %v6933_v12, %v6932_v31 }
 0x8eb   :  { %v6913_v63 = vpop.f32.mrf.mxu0  ;;  %v6935_v44 = vpop.f32.mrf.mxu1 }
 0x8ec   :  { %v5415_v60 = vadd.f32 %v6912_v15, %v5375_v1 }
 0x8ed   :  { %v6914_v40 = vpop.f32.mrf.mxu0  ;;  %v6936_v7 = vpop.f32.mrf.mxu1 }
 0x8ee   :  { %v5455_v20 = vadd.f32 %v6934_v22, %v5415_v60 }
 0x8f0   :  { %5460 = vst [vmem:[#allocation2] sm:$0x3] %v5455_v20 }
 0x8f1   :  { %7564 = shalt.err (!%p7561_p4)
}
 0x8f2   :  { %5470 = dma.vmem_to_hbm [thread:$0]  %s5468_s1, 32, %s11470_s15, [#allocation3]  }
 0x8f3   :  { %7573 = dma.done.wait [#allocation3], 32  }
 0x8f4   :  { %7574 = vsyncadd [#allocation3], 4294967264 }
 0x8f5   :  { %5474 = vsyncpa [#allocation3], 1 }

</bundles_post_ra>
